<compile_context>
chip_gen: v6e
topology: v6e:2x2x1
jax: 0.10.0
libtpu: 0.0.40
codegen_flags: <defaults>
</compile_context>

<pallas_src>
import functools

import jax
import jax.numpy as jnp
from jax.experimental import pallas as pl
from jax.experimental.pallas import tpu as pltpu

IN_F = 12
H1 = 128
H2 = 256          # GRU input == hidden size
OUT_F = 2
OUT_PAD = 128     # lane-dense padded width for the final projection
VMEM_LIMIT = 32 * 1024 * 1024   # safe on v5e/v6e (128 MiB) and v7x (64 MiB physical)
TILE_BUDGET = 12 << 20          # working-set budget used to size tiles


# ----------------------------------------------------------------------------
# Kernel A: fused MLP + GRU input projection (gi staged in bf16).
# ----------------------------------------------------------------------------
def mlp_gi_kernel(x_ref, w1_ref, b1_ref, w2_ref, b2_ref, wih_ref, bih_ref, gi_ref):
    h1 = jnp.dot(x_ref[...], w1_ref[...], preferred_element_type=jnp.float32)
    h1 = jnp.maximum(h1 + b1_ref[...], 0.0)
    h2 = jnp.dot(h1, w2_ref[...], preferred_element_type=jnp.float32)
    h2 = jnp.maximum(h2 + b2_ref[...], 0.0)
    # TODO(synk): Dropout1 (p=0.168) is the identity (eval mode); training parity
    # would need pltpu.prng_seed / pltpu.prng_random_bits masking here.
    gi = jnp.dot(h2.astype(jnp.bfloat16), wih_ref[...],
                 preferred_element_type=jnp.float32) + bih_ref[...]
    gi_ref[...] = gi.astype(jnp.bfloat16)


def _row_tile(n):
    # Bytes per row: double-buffered x (f32) + gi (bf16) tiles + f32 intermediates.
    per_row = IN_F * 4 * 2 + 3 * H2 * 2 * 2 + (H1 + H2) * 4
    tm = min(2048, TILE_BUDGET // per_row)
    tm = max(256, (tm // 256) * 256)
    return n if n <= tm else tm


def mlp_gi_forward(x2d, w1t, b1, w2t, b2, wih_bf16, b_ih_eff, *, tm):
    n = x2d.shape[0]
    return pl.pallas_call(
        mlp_gi_kernel,
        out_shape=jax.ShapeDtypeStruct((n, 3 * H2), jnp.bfloat16),
        grid=(pl.cdiv(n, tm),),
        in_specs=[
            pl.BlockSpec((tm, IN_F), lambda i: (i, 0)),
            pl.BlockSpec((IN_F, H1), lambda i: (0, 0)),
            pl.BlockSpec((1, H1), lambda i: (0, 0)),
            pl.BlockSpec((H1, H2), lambda i: (0, 0)),
            pl.BlockSpec((1, H2), lambda i: (0, 0)),
            pl.BlockSpec((H2, 3 * H2), lambda i: (0, 0)),
            pl.BlockSpec((1, 3 * H2), lambda i: (0, 0)),
        ],
        out_specs=pl.BlockSpec((tm, 3 * H2), lambda i: (i, 0)),
        compiler_params=pltpu.CompilerParams(
            dimension_semantics=("parallel",),
            vmem_limit_bytes=VMEM_LIMIT),
    )(x2d, w1t, b1, w2t, b2, wih_bf16, b_ih_eff)


# ----------------------------------------------------------------------------
# Kernel B: single-layer GRU (torch.nn.GRU semantics, h0 = 0) + batched Linear3.
#   gates ordered [r | z | n]; b_hr/b_hz already folded into gi, only b_hn here.
# ----------------------------------------------------------------------------
def gru_kernel(gi_ref, whh_ref, bhn_ref, w3_ref, b3_ref, y_ref, h_ref, hseq_ref,
               *, t_blk, b_pad):
    tb = pl.program_id(0)

    @pl.when(tb == 0)
    def _():
        h_ref[...] = jnp.zeros_like(h_ref)

    whh = whh_ref[...]          # (H2, 3*H2) bf16, VMEM-resident across the grid
    bhn = bhn_ref[...]          # (1, H2) f32

    def step(s, h):
        gi_t = gi_ref[s].astype(jnp.float32)                    # (B_pad, 3*H2)
        gh = jnp.dot(h.astype(jnp.bfloat16), whh,
                     preferred_element_type=jnp.float32)
        r = jax.nn.sigmoid(gi_t[:, 0 * H2:1 * H2] + gh[:, 0 * H2:1 * H2])
        z = jax.nn.sigmoid(gi_t[:, 1 * H2:2 * H2] + gh[:, 1 * H2:2 * H2])
        n = jnp.tanh(gi_t[:, 2 * H2:3 * H2] + r * (gh[:, 2 * H2:3 * H2] + bhn))
        h_new = (1.0 - z) * n + z * h
        hseq_ref[s] = h_new                                     # cheap VMEM store
        return h_new

    unroll = True if t_blk <= 16 else 8
    h_ref[...] = jax.lax.fori_loop(0, t_blk, step, h_ref[...], unroll=unroll)

    # Batched Linear3 epilogue: one (t_blk*B_pad, H2) GEMM + one lane-dense store.
    # B_pad is a multiple of 8 so both reshapes are layout-trivial.
    h_seq = hseq_ref[...].reshape(t_blk * b_pad, H2)
    y = jnp.dot(h_seq, w3_ref[...], preferred_element_type=jnp.float32) + b3_ref[...]
    y_ref[...] = y.reshape(t_blk, b_pad, OUT_PAD)


def _time_block(T, b_pad):
    """(t_blk, T_pad): block sized against a VMEM budget, T padded to a multiple."""
    # Per time step: gi (bf16, x2 bufs) + y (f32, x2 bufs) + hseq scratch (f32).
    per_t = b_pad * (3 * H2 * 2 * 2 + OUT_PAD * 4 * 2 + H2 * 4)
    cap = max(8, min(32, TILE_BUDGET // max(per_t, 1)))
    if T <= cap:
        return T, T
    for cand in range(cap, 7, -1):
        if T % cand == 0:
            return cand, T
    t_blk = 16 if cap >= 16 else 8          # no good divisor: pad T instead
    return t_blk, ((T + t_blk - 1) // t_blk) * t_blk


def gru_forward(gi_tm, whh_bf16, b_hn, w3_pad, b3_pad, *, t_blk):
    T_pad, B_pad, _ = gi_tm.shape
    kernel = functools.partial(gru_kernel, t_blk=t_blk, b_pad=B_pad)
    return pl.pallas_call(
        kernel,
        out_shape=jax.ShapeDtypeStruct((T_pad, B_pad, OUT_PAD), jnp.float32),
        grid=(T_pad // t_blk,),
        in_specs=[
            pl.BlockSpec((t_blk, B_pad, 3 * H2), lambda tb: (tb, 0, 0)),
            pl.BlockSpec((H2, 3 * H2), lambda tb: (0, 0)),
            pl.BlockSpec((1, H2), lambda tb: (0, 0)),
            pl.BlockSpec((H2, OUT_PAD), lambda tb: (0, 0)),
            pl.BlockSpec((1, OUT_PAD), lambda tb: (0, 0)),
        ],
        out_specs=pl.BlockSpec((t_blk, B_pad, OUT_PAD), lambda tb: (tb, 0, 0)),
        scratch_shapes=[
            pltpu.VMEM((B_pad, H2), jnp.float32),          # carried hidden state
            pltpu.VMEM((t_blk, B_pad, H2), jnp.float32),   # per-block h sequence
        ],
        compiler_params=pltpu.CompilerParams(
            dimension_semantics=("arbitrary",),
            vmem_limit_bytes=VMEM_LIMIT),
    )(gi_tm, whh_bf16, b_hn, w3_pad, b3_pad)


# ----------------------------------------------------------------------------
# Full forward (eval mode: Dropout(0.168) is the identity).
# ----------------------------------------------------------------------------
@jax.jit
def ccv3_forward(x, params):
    B, T, _ = x.shape
    B_pad = ((B + 7) // 8) * 8
    t_blk, T_pad = _time_block(T, B_pad)

    # Fold b_hh's r/z columns into b_ih (they sit outside the r-gating);
    # only b_hn must stay inside the r*(...) term in the sequential kernel.
    b_ih_eff = params["b_ih"] + jnp.concatenate(
        [params["b_hh"][:, :2 * H2], jnp.zeros((1, H2), jnp.float32)], axis=1)
    b_hn = params["b_hh"][:, 2 * H2:]

    # bf16 copies of the large GEMM weights (accumulation stays f32 in-kernel).
    wih_bf16 = params["wih_t"].astype(jnp.bfloat16)
    whh_bf16 = params["whh_t"].astype(jnp.bfloat16)

    # Pad batch to a sublane multiple and time to a multiple of t_blk (zeros),
    # then go time-major so gi is produced in the layout the GRU kernel wants.
    x_p = jnp.pad(x, ((0, B_pad - B), (0, T_pad - T), (0, 0)))
    x_tm = jnp.transpose(x_p, (1, 0, 2)).reshape(T_pad * B_pad, IN_F)

    tm = _row_tile(T_pad * B_pad)
    gi = mlp_gi_forward(x_tm, params["w1t"], params["b1"], params["w2t"],
                        params["b2"], wih_bf16, b_ih_eff, tm=tm)   # (T_pad*B_pad, 768) bf16
    gi_tm = gi.reshape(T_pad, B_pad, 3 * H2)

    # Lane-dense padded Linear3 weights (zeros beyond column OUT_F).
    w3_pad = jnp.pad(params["w3t"], ((0, 0), (0, OUT_PAD - OUT_F)))
    b3_pad = jnp.pad(params["b3"], ((0, 0), (0, OUT_PAD - OUT_F)))

    y_tm = gru_forward(gi_tm, whh_bf16, b_hn, w3_pad, b3_pad, t_blk=t_blk)

    # Slice away time/batch/lane padding, then transpose the tiny result.
    return jnp.transpose(y_tm[:T, :B, :OUT_F], (1, 0, 2))          # (B, T, 2)


# ----------------------------------------------------------------------------
# Pure-JAX f32 reference (for correctness check).
# ----------------------------------------------------------------------------
def ccv3_reference(x, params):
    B, T, _ = x.shape
    h = jnp.maximum(x.reshape(B * T, IN_F) @ params["w1t"] + params["b1"], 0.0)
    h = jnp.maximum(h @ params["w2t"] + params["b2"], 0.0)
    h = h.reshape(B, T, H2)

    def step(h_prev, x_t):
        gi = x_t @ params["wih_t"] + params["b_ih"][0]
        gh = h_prev @ params["whh_t"] + params["b_hh"][0]
        r = jax.nn.sigmoid(gi[:, :H2] + gh[:, :H2])
        z = jax.nn.sigmoid(gi[:, H2:2 * H2] + gh[:, H2:2 * H2])
        n = jnp.tanh(gi[:, 2 * H2:] + r * gh[:, 2 * H2:])
        h_new = (1.0 - z) * n + z * h_prev
        return h_new, h_new

    h0 = jnp.zeros((B, H2), jnp.float32)
    _, hs = jax.lax.scan(step, h0, h.transpose(1, 0, 2))      # (T, B, H2)
    hs = hs.transpose(1, 0, 2).reshape(B * T, H2)
    y = hs @ params["w3t"] + params["b3"]
    return y.reshape(B, T, OUT_F)


# ----------------------------------------------------------------------------
# Deterministic parameter init (shapes match the torch module).
# ----------------------------------------------------------------------------
def init_params(key):
    ks = jax.random.split(key, 10)

    def uni(k, shape, fan_in):
        lim = 1.0 / jnp.sqrt(jnp.float32(fan_in))
        return jax.random.uniform(k, shape, jnp.float32, -lim, lim)

    return {
        # Linear1: (128, 12) stored transposed as (12, 128)
        "w1t": uni(ks[0], (IN_F, H1), IN_F),
        "b1": uni(ks[1], (1, H1), IN_F),
        # Linear2: (256, 128) stored transposed as (128, 256)
        "w2t": uni(ks[2], (H1, H2), H1),
        "b2": uni(ks[3], (1, H2), H1),
        # GRU: weight_ih_l0 (768, 256) -> transposed (256, 768), gates [r|z|n]
        "wih_t": uni(ks[4], (H2, 3 * H2), H2),
        "whh_t": uni(ks[5], (H2, 3 * H2), H2),
        "b_ih": uni(ks[6], (1, 3 * H2), H2),
        "b_hh": uni(ks[7], (1, 3 * H2), H2),
        # Linear3: (2, 256) stored transposed as (256, 2)
        "w3t": uni(ks[8], (H2, OUT_F), H2),
        "b3": uni(ks[9], (1, OUT_F), H2),
    }


if __name__ == "__main__":
    key = jax.random.PRNGKey(0)
    pkey, xkey = jax.random.split(key)
    params = init_params(pkey)

    B, T = 2, 8
    x = jax.random.normal(xkey, (B, T, IN_F), jnp.float32)

    out = ccv3_forward(x, params)
    out = jax.block_until_ready(out)

    ref = ccv3_reference(x, params)
    assert out.shape == (B, T, OUT_F)
    # bf16 gi staging / bf16 GEMM operands (f32 accumulation) -> looser tolerance.
    assert jnp.allclose(out, ref, atol=3e-2, rtol=3e-2), "mismatch vs reference"

    print("KERNEL_OK")
</pallas_src>

<mosaic_0001>
module attributes {stable_mosaic.version = 11 : i64} {
  func.func @mlp_gi_kernel(%arg0: i32, %arg1: memref<64x12xf32, #tpu.memory_space<vmem>>, %arg2: memref<12x128xf32, #tpu.memory_space<vmem>>, %arg3: memref<1x128xf32, #tpu.memory_space<vmem>>, %arg4: memref<128x256xf32, #tpu.memory_space<vmem>>, %arg5: memref<1x256xf32, #tpu.memory_space<vmem>>, %arg6: memref<256x768xbf16, #tpu.memory_space<vmem>>, %arg7: memref<1x768xf32, #tpu.memory_space<vmem>>, %arg8: memref<64x768xbf16, #tpu.memory_space<vmem>>) attributes {dimension_semantics = [#tpu.dimension_semantics<parallel>], iteration_bounds = array<i64: 1>, scalar_prefetch = 0 : i64, scratch_operands = 0 : i64, tpu.core_type = #tpu.core_type<tc>, window_params = [{transform_indices = @transform_0, window_bounds = array<i64: 64, 12>}, {pipeline_mode = #tpu.pipeline_mode<synchronous>, transform_indices = @transform_1, window_bounds = array<i64: 12, 128>}, {pipeline_mode = #tpu.pipeline_mode<synchronous>, transform_indices = @transform_2, window_bounds = array<i64: 1, 128>}, {pipeline_mode = #tpu.pipeline_mode<synchronous>, transform_indices = @transform_3, window_bounds = array<i64: 128, 256>}, {pipeline_mode = #tpu.pipeline_mode<synchronous>, transform_indices = @transform_4, window_bounds = array<i64: 1, 256>}, {pipeline_mode = #tpu.pipeline_mode<synchronous>, transform_indices = @transform_5, window_bounds = array<i64: 256, 768>}, {pipeline_mode = #tpu.pipeline_mode<synchronous>, transform_indices = @transform_6, window_bounds = array<i64: 1, 768>}, {transform_indices = @transform_7, window_bounds = array<i64: 64, 768>}]} {
    %c0 = arith.constant 0 : index
    %c0_0 = arith.constant 0 : index
    %0 = vector.load %arg1[%c0, %c0_0] : memref<64x12xf32, #tpu.memory_space<vmem>>, vector<64x12xf32>
    %c0_1 = arith.constant 0 : index
    %c0_2 = arith.constant 0 : index
    %1 = vector.load %arg2[%c0_1, %c0_2] : memref<12x128xf32, #tpu.memory_space<vmem>>, vector<12x128xf32>
    %cst = arith.constant dense<0.000000e+00> : vector<64x128xf32>
    %2 = tpu.matmul %0, %1, %cst {dimension_numbers = #tpu.dot_dimension_numbers<[1], [0], [0], [1], [0, 0, 1, 1], [], []>} : vector<64x12xf32>, vector<12x128xf32>, vector<64x128xf32> -> vector<64x128xf32>
    %c0_3 = arith.constant 0 : index
    %c0_4 = arith.constant 0 : index
    %3 = vector.load %arg3[%c0_3, %c0_4] : memref<1x128xf32, #tpu.memory_space<vmem>>, vector<1x128xf32>
    %4 = vector.broadcast %3 : vector<1x128xf32> to vector<64x128xf32>
    %5 = arith.addf %2, %4 : vector<64x128xf32>
    %cst_5 = arith.constant 0.000000e+00 : f32
    %6 = vector.broadcast %cst_5 : f32 to vector<64x128xf32>
    %7 = arith.maximumf %5, %6 : vector<64x128xf32>
    %c0_6 = arith.constant 0 : index
    %c0_7 = arith.constant 0 : index
    %8 = vector.load %arg4[%c0_6, %c0_7] : memref<128x256xf32, #tpu.memory_space<vmem>>, vector<128x256xf32>
    %cst_8 = arith.constant dense<0.000000e+00> : vector<64x256xf32>
    %9 = tpu.matmul %7, %8, %cst_8 {dimension_numbers = #tpu.dot_dimension_numbers<[1], [0], [0], [1], [0, 0, 1, 1], [], []>} : vector<64x128xf32>, vector<128x256xf32>, vector<64x256xf32> -> vector<64x256xf32>
    %c0_9 = arith.constant 0 : index
    %c0_10 = arith.constant 0 : index
    %10 = vector.load %arg5[%c0_9, %c0_10] : memref<1x256xf32, #tpu.memory_space<vmem>>, vector<1x256xf32>
    %11 = vector.broadcast %10 : vector<1x256xf32> to vector<64x256xf32>
    %12 = arith.addf %9, %11 : vector<64x256xf32>
    %cst_11 = arith.constant 0.000000e+00 : f32
    %13 = vector.broadcast %cst_11 : f32 to vector<64x256xf32>
    %14 = arith.maximumf %12, %13 : vector<64x256xf32>
    %15 = arith.truncf %14 : vector<64x256xf32> to vector<64x256xbf16>
    %c0_12 = arith.constant 0 : index
    %c0_13 = arith.constant 0 : index
    %16 = vector.load %arg6[%c0_12, %c0_13] : memref<256x768xbf16, #tpu.memory_space<vmem>>, vector<256x768xbf16>
    %cst_14 = arith.constant dense<0.000000e+00> : vector<64x768xf32>
    %17 = tpu.matmul %15, %16, %cst_14 {dimension_numbers = #tpu.dot_dimension_numbers<[1], [0], [0], [1], [0, 0, 1, 1], [], []>} : vector<64x256xbf16>, vector<256x768xbf16>, vector<64x768xf32> -> vector<64x768xf32>
    %c0_15 = arith.constant 0 : index
    %c0_16 = arith.constant 0 : index
    %18 = vector.load %arg7[%c0_15, %c0_16] : memref<1x768xf32, #tpu.memory_space<vmem>>, vector<1x768xf32>
    %19 = vector.broadcast %18 : vector<1x768xf32> to vector<64x768xf32>
    %20 = arith.addf %17, %19 : vector<64x768xf32>
    %21 = arith.truncf %20 : vector<64x768xf32> to vector<64x768xbf16>
    %c0_17 = arith.constant 0 : index
    %c0_18 = arith.constant 0 : index
    %22 = vector.load %arg8[%c0_17, %c0_18] : memref<64x768xbf16, #tpu.memory_space<vmem>>, vector<64x768xbf16>
    tpu.vector_store %arg8[%c0_17, %c0_18], %21 {strides = array<i32>} : memref<64x768xbf16, #tpu.memory_space<vmem>>, vector<64x768xbf16>,
    return
  }
  func.func @transform_0(%arg0: i32) -> (i32, i32) {
    %c0_i32 = arith.constant 0 : i32
    %c0_i32_0 = arith.constant 0 : i32
    return %arg0, %c0_i32 : i32, i32
  }
  func.func @transform_1(%arg0: i32) -> (i32, i32) {
    %c0_i32 = arith.constant 0 : i32
    %c0_i32_0 = arith.constant 0 : i32
    %c0_i32_1 = arith.constant 0 : i32
    return %c0_i32, %c0_i32_0 : i32, i32
  }
  func.func @transform_2(%arg0: i32) -> (i32, i32) {
    %c0_i32 = arith.constant 0 : i32
    %c0_i32_0 = arith.constant 0 : i32
    %c0_i32_1 = arith.constant 0 : i32
    return %c0_i32, %c0_i32_0 : i32, i32
  }
  func.func @transform_3(%arg0: i32) -> (i32, i32) {
    %c0_i32 = arith.constant 0 : i32
    %c0_i32_0 = arith.constant 0 : i32
    %c0_i32_1 = arith.constant 0 : i32
    return %c0_i32, %c0_i32_0 : i32, i32
  }
  func.func @transform_4(%arg0: i32) -> (i32, i32) {
    %c0_i32 = arith.constant 0 : i32
    %c0_i32_0 = arith.constant 0 : i32
    %c0_i32_1 = arith.constant 0 : i32
    return %c0_i32, %c0_i32_0 : i32, i32
  }
  func.func @transform_5(%arg0: i32) -> (i32, i32) {
    %c0_i32 = arith.constant 0 : i32
    %c0_i32_0 = arith.constant 0 : i32
    %c0_i32_1 = arith.constant 0 : i32
    return %c0_i32, %c0_i32_0 : i32, i32
  }
  func.func @transform_6(%arg0: i32) -> (i32, i32) {
    %c0_i32 = arith.constant 0 : i32
    %c0_i32_0 = arith.constant 0 : i32
    %c0_i32_1 = arith.constant 0 : i32
    return %c0_i32, %c0_i32_0 : i32, i32
  }
  func.func @transform_7(%arg0: i32) -> (i32, i32) {
    %c0_i32 = arith.constant 0 : i32
    %c0_i32_0 = arith.constant 0 : i32
    return %arg0, %c0_i32 : i32, i32
  }
}

module attributes {stable_mosaic.version = 11 : i64} {
  func.func @gru_kernel(%arg0: i32, %arg1: memref<8x8x768xbf16, #tpu.memory_space<vmem>>, %arg2: memref<256x768xbf16, #tpu.memory_space<vmem>>, %arg3: memref<1x256xf32, #tpu.memory_space<vmem>>, %arg4: memref<256x128xf32, #tpu.memory_space<vmem>>, %arg5: memref<1x128xf32, #tpu.memory_space<vmem>>, %arg6: memref<8x8x128xf32, #tpu.memory_space<vmem>>, %arg7: memref<8x256xf32, #tpu.memory_space<vmem>>, %arg8: memref<8x8x256xf32, #tpu.memory_space<vmem>>) attributes {dimension_semantics = [#tpu.dimension_semantics<arbitrary>], iteration_bounds = array<i64: 1>, scalar_prefetch = 0 : i64, scratch_operands = 2 : i64, tpu.core_type = #tpu.core_type<tc>, window_params = [{transform_indices = @transform_0, window_bounds = array<i64: 8, 8, 768>}, {pipeline_mode = #tpu.pipeline_mode<synchronous>, transform_indices = @transform_1, window_bounds = array<i64: 256, 768>}, {pipeline_mode = #tpu.pipeline_mode<synchronous>, transform_indices = @transform_2, window_bounds = array<i64: 1, 256>}, {pipeline_mode = #tpu.pipeline_mode<synchronous>, transform_indices = @transform_3, window_bounds = array<i64: 256, 128>}, {pipeline_mode = #tpu.pipeline_mode<synchronous>, transform_indices = @transform_4, window_bounds = array<i64: 1, 128>}, {transform_indices = @transform_5, window_bounds = array<i64: 8, 8, 128>}]} {
    %c0_i32 = arith.constant 0 : i32
    %0 = arith.cmpi eq, %arg0, %c0_i32 : i32
    %1 = arith.extui %0 : i1 to i32
    %c0_i32_0 = arith.constant 0 : i32
    %2 = arith.cmpi ne, %1, %c0_i32_0 : i32
    scf.if %2 {
      %cst_83 = arith.constant 0.000000e+00 : f32
      %320 = vector.broadcast %cst_83 : f32 to vector<8x256xf32>
      %c0_84 = arith.constant 0 : index
      %c0_85 = arith.constant 0 : index
      %321 = vector.load %arg7[%c0_84, %c0_85] : memref<8x256xf32, #tpu.memory_space<vmem>>, vector<8x256xf32>
      tpu.vector_store %arg7[%c0_84, %c0_85], %320 {strides = array<i32>} : memref<8x256xf32, #tpu.memory_space<vmem>>, vector<8x256xf32>,
    } else {
    }
    %c0 = arith.constant 0 : index
    %c0_1 = arith.constant 0 : index
    %3 = vector.load %arg2[%c0, %c0_1] : memref<256x768xbf16, #tpu.memory_space<vmem>>, vector<256x768xbf16>
    %c0_2 = arith.constant 0 : index
    %c0_3 = arith.constant 0 : index
    %4 = vector.load %arg3[%c0_2, %c0_3] : memref<1x256xf32, #tpu.memory_space<vmem>>, vector<1x256xf32>
    %c0_4 = arith.constant 0 : index
    %c0_5 = arith.constant 0 : index
    %5 = vector.load %arg7[%c0_4, %c0_5] : memref<8x256xf32, #tpu.memory_space<vmem>>, vector<8x256xf32>
    %c0_i32_6 = arith.constant 0 : i32
    %6 = arith.index_cast %c0_i32_6 : i32 to index
    %c0_7 = arith.constant 0 : index
    %c0_8 = arith.constant 0 : index
    %7 = vector.load %arg1[%6, %c0_7, %c0_8] : memref<8x8x768xbf16, #tpu.memory_space<vmem>>, vector<1x8x768xbf16>
    %8 = vector.shape_cast %7 : vector<1x8x768xbf16> to vector<8x768xbf16>
    %9 = arith.extf %8 : vector<8x768xbf16> to vector<8x768xf32>
    %10 = arith.truncf %5 : vector<8x256xf32> to vector<8x256xbf16>
    %cst = arith.constant dense<0.000000e+00> : vector<8x768xf32>
    %11 = tpu.matmul %10, %3, %cst {dimension_numbers = #tpu.dot_dimension_numbers<[1], [0], [0], [1], [0, 0, 1, 1], [], []>} : vector<8x256xbf16>, vector<256x768xbf16>, vector<8x768xf32> -> vector<8x768xf32>
    %12 = vector.extract_strided_slice %9 {offsets = [0, 0], sizes = [8, 256], strides = [1, 1]} : vector<8x768xf32> to vector<8x256xf32>
    %13 = vector.extract_strided_slice %11 {offsets = [0, 0], sizes = [8, 256], strides = [1, 1]} : vector<8x768xf32> to vector<8x256xf32>
    %14 = arith.addf %12, %13 : vector<8x256xf32>
    %15 = arith.negf %14 : vector<8x256xf32>
    %16 = math.exp %15 : vector<8x256xf32>
    %cst_9 = arith.constant 1.000000e+00 : f32
    %17 = vector.broadcast %cst_9 : f32 to vector<8x256xf32>
    %18 = arith.addf %17, %16 : vector<8x256xf32>
    %19 = arith.divf %17, %18 : vector<8x256xf32>
    %20 = vector.extract_strided_slice %9 {offsets = [0, 256], sizes = [8, 256], strides = [1, 1]} : vector<8x768xf32> to vector<8x256xf32>
    %21 = vector.extract_strided_slice %11 {offsets = [0, 256], sizes = [8, 256], strides = [1, 1]} : vector<8x768xf32> to vector<8x256xf32>
    %22 = arith.addf %20, %21 : vector<8x256xf32>
    %23 = arith.negf %22 : vector<8x256xf32>
    %24 = math.exp %23 : vector<8x256xf32>
    %cst_10 = arith.constant 1.000000e+00 : f32
    %25 = vector.broadcast %cst_10 : f32 to vector<8x256xf32>
    %26 = arith.addf %25, %24 : vector<8x256xf32>
    %27 = arith.divf %25, %26 : vector<8x256xf32>
    %28 = vector.extract_strided_slice %9 {offsets = [0, 512], sizes = [8, 256], strides = [1, 1]} : vector<8x768xf32> to vector<8x256xf32>
    %29 = vector.extract_strided_slice %11 {offsets = [0, 512], sizes = [8, 256], strides = [1, 1]} : vector<8x768xf32> to vector<8x256xf32>
    %30 = vector.broadcast %4 : vector<1x256xf32> to vector<8x256xf32>
    %31 = arith.addf %29, %30 : vector<8x256xf32>
    %32 = arith.mulf %19, %31 : vector<8x256xf32>
    %33 = arith.addf %28, %32 : vector<8x256xf32>
    %34 = math.tanh %33 : vector<8x256xf32>
    %cst_11 = arith.constant 1.000000e+00 : f32
    %35 = vector.broadcast %cst_11 : f32 to vector<8x256xf32>
    %36 = arith.subf %35, %27 : vector<8x256xf32>
    %37 = arith.mulf %36, %34 : vector<8x256xf32>
    %38 = arith.mulf %27, %5 : vector<8x256xf32>
    %39 = arith.addf %37, %38 : vector<8x256xf32>
    %40 = arith.index_cast %c0_i32_6 : i32 to index
    %c0_12 = arith.constant 0 : index
    %c0_13 = arith.constant 0 : index
    %41 = vector.load %arg8[%40, %c0_12, %c0_13] : memref<8x8x256xf32, #tpu.memory_space<vmem>>, vector<1x8x256xf32>
    %42 = vector.shape_cast %41 : vector<1x8x256xf32> to vector<8x256xf32>
    %43 = vector.shape_cast %39 : vector<8x256xf32> to vector<1x8x256xf32>
    tpu.vector_store %arg8[%40, %c0_12, %c0_13], %43 {strides = array<i32>} : memref<8x8x256xf32, #tpu.memory_space<vmem>>, vector<1x8x256xf32>,
    %c1_i32 = arith.constant 1 : i32
    %44 = arith.index_cast %c1_i32 : i32 to index
    %c0_14 = arith.constant 0 : index
    %c0_15 = arith.constant 0 : index
    %45 = vector.load %arg1[%44, %c0_14, %c0_15] : memref<8x8x768xbf16, #tpu.memory_space<vmem>>, vector<1x8x768xbf16>
    %46 = vector.shape_cast %45 : vector<1x8x768xbf16> to vector<8x768xbf16>
    %47 = arith.extf %46 : vector<8x768xbf16> to vector<8x768xf32>
    %48 = arith.truncf %39 : vector<8x256xf32> to vector<8x256xbf16>
    %cst_16 = arith.constant dense<0.000000e+00> : vector<8x768xf32>
    %49 = tpu.matmul %48, %3, %cst_16 {dimension_numbers = #tpu.dot_dimension_numbers<[1], [0], [0], [1], [0, 0, 1, 1], [], []>} : vector<8x256xbf16>, vector<256x768xbf16>, vector<8x768xf32> -> vector<8x768xf32>
    %50 = vector.extract_strided_slice %47 {offsets = [0, 0], sizes = [8, 256], strides = [1, 1]} : vector<8x768xf32> to vector<8x256xf32>
    %51 = vector.extract_strided_slice %49 {offsets = [0, 0], sizes = [8, 256], strides = [1, 1]} : vector<8x768xf32> to vector<8x256xf32>
    %52 = arith.addf %50, %51 : vector<8x256xf32>
    %53 = arith.negf %52 : vector<8x256xf32>
    %54 = math.exp %53 : vector<8x256xf32>
    %cst_17 = arith.constant 1.000000e+00 : f32
    %55 = vector.broadcast %cst_17 : f32 to vector<8x256xf32>
    %56 = arith.addf %55, %54 : vector<8x256xf32>
    %57 = arith.divf %55, %56 : vector<8x256xf32>
    %58 = vector.extract_strided_slice %47 {offsets = [0, 256], sizes = [8, 256], strides = [1, 1]} : vector<8x768xf32> to vector<8x256xf32>
    %59 = vector.extract_strided_slice %49 {offsets = [0, 256], sizes = [8, 256], strides = [1, 1]} : vector<8x768xf32> to vector<8x256xf32>
    %60 = arith.addf %58, %59 : vector<8x256xf32>
    %61 = arith.negf %60 : vector<8x256xf32>
    %62 = math.exp %61 : vector<8x256xf32>
    %cst_18 = arith.constant 1.000000e+00 : f32
    %63 = vector.broadcast %cst_18 : f32 to vector<8x256xf32>
    %64 = arith.addf %63, %62 : vector<8x256xf32>
    %65 = arith.divf %63, %64 : vector<8x256xf32>
    %66 = vector.extract_strided_slice %47 {offsets = [0, 512], sizes = [8, 256], strides = [1, 1]} : vector<8x768xf32> to vector<8x256xf32>
    %67 = vector.extract_strided_slice %49 {offsets = [0, 512], sizes = [8, 256], strides = [1, 1]} : vector<8x768xf32> to vector<8x256xf32>
    %68 = vector.broadcast %4 : vector<1x256xf32> to vector<8x256xf32>
    %69 = arith.addf %67, %68 : vector<8x256xf32>
    %70 = arith.mulf %57, %69 : vector<8x256xf32>
    %71 = arith.addf %66, %70 : vector<8x256xf32>
    %72 = math.tanh %71 : vector<8x256xf32>
    %cst_19 = arith.constant 1.000000e+00 : f32
    %73 = vector.broadcast %cst_19 : f32 to vector<8x256xf32>
    %74 = arith.subf %73, %65 : vector<8x256xf32>
    %75 = arith.mulf %74, %72 : vector<8x256xf32>
    %76 = arith.mulf %65, %39 : vector<8x256xf32>
    %77 = arith.addf %75, %76 : vector<8x256xf32>
    %78 = arith.index_cast %c1_i32 : i32 to index
    %c0_20 = arith.constant 0 : index
    %c0_21 = arith.constant 0 : index
    %79 = vector.load %arg8[%78, %c0_20, %c0_21] : memref<8x8x256xf32, #tpu.memory_space<vmem>>, vector<1x8x256xf32>
    %80 = vector.shape_cast %79 : vector<1x8x256xf32> to vector<8x256xf32>
    %81 = vector.shape_cast %77 : vector<8x256xf32> to vector<1x8x256xf32>
    tpu.vector_store %arg8[%78, %c0_20, %c0_21], %81 {strides = array<i32>} : memref<8x8x256xf32, #tpu.memory_space<vmem>>, vector<1x8x256xf32>,
    %c2_i32 = arith.constant 2 : i32
    %82 = arith.index_cast %c2_i32 : i32 to index
    %c0_22 = arith.constant 0 : index
    %c0_23 = arith.constant 0 : index
    %83 = vector.load %arg1[%82, %c0_22, %c0_23] : memref<8x8x768xbf16, #tpu.memory_space<vmem>>, vector<1x8x768xbf16>
    %84 = vector.shape_cast %83 : vector<1x8x768xbf16> to vector<8x768xbf16>
    %85 = arith.extf %84 : vector<8x768xbf16> to vector<8x768xf32>
    %86 = arith.truncf %77 : vector<8x256xf32> to vector<8x256xbf16>
    %cst_24 = arith.constant dense<0.000000e+00> : vector<8x768xf32>
    %87 = tpu.matmul %86, %3, %cst_24 {dimension_numbers = #tpu.dot_dimension_numbers<[1], [0], [0], [1], [0, 0, 1, 1], [], []>} : vector<8x256xbf16>, vector<256x768xbf16>, vector<8x768xf32> -> vector<8x768xf32>
    %88 = vector.extract_strided_slice %85 {offsets = [0, 0], sizes = [8, 256], strides = [1, 1]} : vector<8x768xf32> to vector<8x256xf32>
    %89 = vector.extract_strided_slice %87 {offsets = [0, 0], sizes = [8, 256], strides = [1, 1]} : vector<8x768xf32> to vector<8x256xf32>
    %90 = arith.addf %88, %89 : vector<8x256xf32>
    %91 = arith.negf %90 : vector<8x256xf32>
    %92 = math.exp %91 : vector<8x256xf32>
    %cst_25 = arith.constant 1.000000e+00 : f32
    %93 = vector.broadcast %cst_25 : f32 to vector<8x256xf32>
    %94 = arith.addf %93, %92 : vector<8x256xf32>
    %95 = arith.divf %93, %94 : vector<8x256xf32>
    %96 = vector.extract_strided_slice %85 {offsets = [0, 256], sizes = [8, 256], strides = [1, 1]} : vector<8x768xf32> to vector<8x256xf32>
    %97 = vector.extract_strided_slice %87 {offsets = [0, 256], sizes = [8, 256], strides = [1, 1]} : vector<8x768xf32> to vector<8x256xf32>
    %98 = arith.addf %96, %97 : vector<8x256xf32>
    %99 = arith.negf %98 : vector<8x256xf32>
    %100 = math.exp %99 : vector<8x256xf32>
    %cst_26 = arith.constant 1.000000e+00 : f32
    %101 = vector.broadcast %cst_26 : f32 to vector<8x256xf32>
    %102 = arith.addf %101, %100 : vector<8x256xf32>
    %103 = arith.divf %101, %102 : vector<8x256xf32>
    %104 = vector.extract_strided_slice %85 {offsets = [0, 512], sizes = [8, 256], strides = [1, 1]} : vector<8x768xf32> to vector<8x256xf32>
    %105 = vector.extract_strided_slice %87 {offsets = [0, 512], sizes = [8, 256], strides = [1, 1]} : vector<8x768xf32> to vector<8x256xf32>
    %106 = vector.broadcast %4 : vector<1x256xf32> to vector<8x256xf32>
    %107 = arith.addf %105, %106 : vector<8x256xf32>
    %108 = arith.mulf %95, %107 : vector<8x256xf32>
    %109 = arith.addf %104, %108 : vector<8x256xf32>
    %110 = math.tanh %109 : vector<8x256xf32>
    %cst_27 = arith.constant 1.000000e+00 : f32
    %111 = vector.broadcast %cst_27 : f32 to vector<8x256xf32>
    %112 = arith.subf %111, %103 : vector<8x256xf32>
    %113 = arith.mulf %112, %110 : vector<8x256xf32>
    %114 = arith.mulf %103, %77 : vector<8x256xf32>
    %115 = arith.addf %113, %114 : vector<8x256xf32>
    %116 = arith.index_cast %c2_i32 : i32 to index
    %c0_28 = arith.constant 0 : index
    %c0_29 = arith.constant 0 : index
    %117 = vector.load %arg8[%116, %c0_28, %c0_29] : memref<8x8x256xf32, #tpu.memory_space<vmem>>, vector<1x8x256xf32>
    %118 = vector.shape_cast %117 : vector<1x8x256xf32> to vector<8x256xf32>
    %119 = vector.shape_cast %115 : vector<8x256xf32> to vector<1x8x256xf32>
    tpu.vector_store %arg8[%116, %c0_28, %c0_29], %119 {strides = array<i32>} : memref<8x8x256xf32, #tpu.memory_space<vmem>>, vector<1x8x256xf32>,
    %c3_i32 = arith.constant 3 : i32
    %120 = arith.index_cast %c3_i32 : i32 to index
    %c0_30 = arith.constant 0 : index
    %c0_31 = arith.constant 0 : index
    %121 = vector.load %arg1[%120, %c0_30, %c0_31] : memref<8x8x768xbf16, #tpu.memory_space<vmem>>, vector<1x8x768xbf16>
    %122 = vector.shape_cast %121 : vector<1x8x768xbf16> to vector<8x768xbf16>
    %123 = arith.extf %122 : vector<8x768xbf16> to vector<8x768xf32>
    %124 = arith.truncf %115 : vector<8x256xf32> to vector<8x256xbf16>
    %cst_32 = arith.constant dense<0.000000e+00> : vector<8x768xf32>
    %125 = tpu.matmul %124, %3, %cst_32 {dimension_numbers = #tpu.dot_dimension_numbers<[1], [0], [0], [1], [0, 0, 1, 1], [], []>} : vector<8x256xbf16>, vector<256x768xbf16>, vector<8x768xf32> -> vector<8x768xf32>
    %126 = vector.extract_strided_slice %123 {offsets = [0, 0], sizes = [8, 256], strides = [1, 1]} : vector<8x768xf32> to vector<8x256xf32>
    %127 = vector.extract_strided_slice %125 {offsets = [0, 0], sizes = [8, 256], strides = [1, 1]} : vector<8x768xf32> to vector<8x256xf32>
    %128 = arith.addf %126, %127 : vector<8x256xf32>
    %129 = arith.negf %128 : vector<8x256xf32>
    %130 = math.exp %129 : vector<8x256xf32>
    %cst_33 = arith.constant 1.000000e+00 : f32
    %131 = vector.broadcast %cst_33 : f32 to vector<8x256xf32>
    %132 = arith.addf %131, %130 : vector<8x256xf32>
    %133 = arith.divf %131, %132 : vector<8x256xf32>
    %134 = vector.extract_strided_slice %123 {offsets = [0, 256], sizes = [8, 256], strides = [1, 1]} : vector<8x768xf32> to vector<8x256xf32>
    %135 = vector.extract_strided_slice %125 {offsets = [0, 256], sizes = [8, 256], strides = [1, 1]} : vector<8x768xf32> to vector<8x256xf32>
    %136 = arith.addf %134, %135 : vector<8x256xf32>
    %137 = arith.negf %136 : vector<8x256xf32>
    %138 = math.exp %137 : vector<8x256xf32>
    %cst_34 = arith.constant 1.000000e+00 : f32
    %139 = vector.broadcast %cst_34 : f32 to vector<8x256xf32>
    %140 = arith.addf %139, %138 : vector<8x256xf32>
    %141 = arith.divf %139, %140 : vector<8x256xf32>
    %142 = vector.extract_strided_slice %123 {offsets = [0, 512], sizes = [8, 256], strides = [1, 1]} : vector<8x768xf32> to vector<8x256xf32>
    %143 = vector.extract_strided_slice %125 {offsets = [0, 512], sizes = [8, 256], strides = [1, 1]} : vector<8x768xf32> to vector<8x256xf32>
    %144 = vector.broadcast %4 : vector<1x256xf32> to vector<8x256xf32>
    %145 = arith.addf %143, %144 : vector<8x256xf32>
    %146 = arith.mulf %133, %145 : vector<8x256xf32>
    %147 = arith.addf %142, %146 : vector<8x256xf32>
    %148 = math.tanh %147 : vector<8x256xf32>
    %cst_35 = arith.constant 1.000000e+00 : f32
    %149 = vector.broadcast %cst_35 : f32 to vector<8x256xf32>
    %150 = arith.subf %149, %141 : vector<8x256xf32>
    %151 = arith.mulf %150, %148 : vector<8x256xf32>
    %152 = arith.mulf %141, %115 : vector<8x256xf32>
    %153 = arith.addf %151, %152 : vector<8x256xf32>
    %154 = arith.index_cast %c3_i32 : i32 to index
    %c0_36 = arith.constant 0 : index
    %c0_37 = arith.constant 0 : index
    %155 = vector.load %arg8[%154, %c0_36, %c0_37] : memref<8x8x256xf32, #tpu.memory_space<vmem>>, vector<1x8x256xf32>
    %156 = vector.shape_cast %155 : vector<1x8x256xf32> to vector<8x256xf32>
    %157 = vector.shape_cast %153 : vector<8x256xf32> to vector<1x8x256xf32>
    tpu.vector_store %arg8[%154, %c0_36, %c0_37], %157 {strides = array<i32>} : memref<8x8x256xf32, #tpu.memory_space<vmem>>, vector<1x8x256xf32>,
    %c4_i32 = arith.constant 4 : i32
    %158 = arith.index_cast %c4_i32 : i32 to index
    %c0_38 = arith.constant 0 : index
    %c0_39 = arith.constant 0 : index
    %159 = vector.load %arg1[%158, %c0_38, %c0_39] : memref<8x8x768xbf16, #tpu.memory_space<vmem>>, vector<1x8x768xbf16>
    %160 = vector.shape_cast %159 : vector<1x8x768xbf16> to vector<8x768xbf16>
    %161 = arith.extf %160 : vector<8x768xbf16> to vector<8x768xf32>
    %162 = arith.truncf %153 : vector<8x256xf32> to vector<8x256xbf16>
    %cst_40 = arith.constant dense<0.000000e+00> : vector<8x768xf32>
    %163 = tpu.matmul %162, %3, %cst_40 {dimension_numbers = #tpu.dot_dimension_numbers<[1], [0], [0], [1], [0, 0, 1, 1], [], []>} : vector<8x256xbf16>, vector<256x768xbf16>, vector<8x768xf32> -> vector<8x768xf32>
    %164 = vector.extract_strided_slice %161 {offsets = [0, 0], sizes = [8, 256], strides = [1, 1]} : vector<8x768xf32> to vector<8x256xf32>
    %165 = vector.extract_strided_slice %163 {offsets = [0, 0], sizes = [8, 256], strides = [1, 1]} : vector<8x768xf32> to vector<8x256xf32>
    %166 = arith.addf %164, %165 : vector<8x256xf32>
    %167 = arith.negf %166 : vector<8x256xf32>
    %168 = math.exp %167 : vector<8x256xf32>
    %cst_41 = arith.constant 1.000000e+00 : f32
    %169 = vector.broadcast %cst_41 : f32 to vector<8x256xf32>
    %170 = arith.addf %169, %168 : vector<8x256xf32>
    %171 = arith.divf %169, %170 : vector<8x256xf32>
    %172 = vector.extract_strided_slice %161 {offsets = [0, 256], sizes = [8, 256], strides = [1, 1]} : vector<8x768xf32> to vector<8x256xf32>
    %173 = vector.extract_strided_slice %163 {offsets = [0, 256], sizes = [8, 256], strides = [1, 1]} : vector<8x768xf32> to vector<8x256xf32>
    %174 = arith.addf %172, %173 : vector<8x256xf32>
    %175 = arith.negf %174 : vector<8x256xf32>
    %176 = math.exp %175 : vector<8x256xf32>
    %cst_42 = arith.constant 1.000000e+00 : f32
    %177 = vector.broadcast %cst_42 : f32 to vector<8x256xf32>
    %178 = arith.addf %177, %176 : vector<8x256xf32>
    %179 = arith.divf %177, %178 : vector<8x256xf32>
    %180 = vector.extract_strided_slice %161 {offsets = [0, 512], sizes = [8, 256], strides = [1, 1]} : vector<8x768xf32> to vector<8x256xf32>
    %181 = vector.extract_strided_slice %163 {offsets = [0, 512], sizes = [8, 256], strides = [1, 1]} : vector<8x768xf32> to vector<8x256xf32>
    %182 = vector.broadcast %4 : vector<1x256xf32> to vector<8x256xf32>
    %183 = arith.addf %181, %182 : vector<8x256xf32>
    %184 = arith.mulf %171, %183 : vector<8x256xf32>
    %185 = arith.addf %180, %184 : vector<8x256xf32>
    %186 = math.tanh %185 : vector<8x256xf32>
    %cst_43 = arith.constant 1.000000e+00 : f32
    %187 = vector.broadcast %cst_43 : f32 to vector<8x256xf32>
    %188 = arith.subf %187, %179 : vector<8x256xf32>
    %189 = arith.mulf %188, %186 : vector<8x256xf32>
    %190 = arith.mulf %179, %153 : vector<8x256xf32>
    %191 = arith.addf %189, %190 : vector<8x256xf32>
    %192 = arith.index_cast %c4_i32 : i32 to index
    %c0_44 = arith.constant 0 : index
    %c0_45 = arith.constant 0 : index
    %193 = vector.load %arg8[%192, %c0_44, %c0_45] : memref<8x8x256xf32, #tpu.memory_space<vmem>>, vector<1x8x256xf32>
    %194 = vector.shape_cast %193 : vector<1x8x256xf32> to vector<8x256xf32>
    %195 = vector.shape_cast %191 : vector<8x256xf32> to vector<1x8x256xf32>
    tpu.vector_store %arg8[%192, %c0_44, %c0_45], %195 {strides = array<i32>} : memref<8x8x256xf32, #tpu.memory_space<vmem>>, vector<1x8x256xf32>,
    %c5_i32 = arith.constant 5 : i32
    %196 = arith.index_cast %c5_i32 : i32 to index
    %c0_46 = arith.constant 0 : index
    %c0_47 = arith.constant 0 : index
    %197 = vector.load %arg1[%196, %c0_46, %c0_47] : memref<8x8x768xbf16, #tpu.memory_space<vmem>>, vector<1x8x768xbf16>
    %198 = vector.shape_cast %197 : vector<1x8x768xbf16> to vector<8x768xbf16>
    %199 = arith.extf %198 : vector<8x768xbf16> to vector<8x768xf32>
    %200 = arith.truncf %191 : vector<8x256xf32> to vector<8x256xbf16>
    %cst_48 = arith.constant dense<0.000000e+00> : vector<8x768xf32>
    %201 = tpu.matmul %200, %3, %cst_48 {dimension_numbers = #tpu.dot_dimension_numbers<[1], [0], [0], [1], [0, 0, 1, 1], [], []>} : vector<8x256xbf16>, vector<256x768xbf16>, vector<8x768xf32> -> vector<8x768xf32>
    %202 = vector.extract_strided_slice %199 {offsets = [0, 0], sizes = [8, 256], strides = [1, 1]} : vector<8x768xf32> to vector<8x256xf32>
    %203 = vector.extract_strided_slice %201 {offsets = [0, 0], sizes = [8, 256], strides = [1, 1]} : vector<8x768xf32> to vector<8x256xf32>
    %204 = arith.addf %202, %203 : vector<8x256xf32>
    %205 = arith.negf %204 : vector<8x256xf32>
    %206 = math.exp %205 : vector<8x256xf32>
    %cst_49 = arith.constant 1.000000e+00 : f32
    %207 = vector.broadcast %cst_49 : f32 to vector<8x256xf32>
    %208 = arith.addf %207, %206 : vector<8x256xf32>
    %209 = arith.divf %207, %208 : vector<8x256xf32>
    %210 = vector.extract_strided_slice %199 {offsets = [0, 256], sizes = [8, 256], strides = [1, 1]} : vector<8x768xf32> to vector<8x256xf32>
    %211 = vector.extract_strided_slice %201 {offsets = [0, 256], sizes = [8, 256], strides = [1, 1]} : vector<8x768xf32> to vector<8x256xf32>
    %212 = arith.addf %210, %211 : vector<8x256xf32>
    %213 = arith.negf %212 : vector<8x256xf32>
    %214 = math.exp %213 : vector<8x256xf32>
    %cst_50 = arith.constant 1.000000e+00 : f32
    %215 = vector.broadcast %cst_50 : f32 to vector<8x256xf32>
    %216 = arith.addf %215, %214 : vector<8x256xf32>
    %217 = arith.divf %215, %216 : vector<8x256xf32>
    %218 = vector.extract_strided_slice %199 {offsets = [0, 512], sizes = [8, 256], strides = [1, 1]} : vector<8x768xf32> to vector<8x256xf32>
    %219 = vector.extract_strided_slice %201 {offsets = [0, 512], sizes = [8, 256], strides = [1, 1]} : vector<8x768xf32> to vector<8x256xf32>
    %220 = vector.broadcast %4 : vector<1x256xf32> to vector<8x256xf32>
    %221 = arith.addf %219, %220 : vector<8x256xf32>
    %222 = arith.mulf %209, %221 : vector<8x256xf32>
    %223 = arith.addf %218, %222 : vector<8x256xf32>
    %224 = math.tanh %223 : vector<8x256xf32>
    %cst_51 = arith.constant 1.000000e+00 : f32
    %225 = vector.broadcast %cst_51 : f32 to vector<8x256xf32>
    %226 = arith.subf %225, %217 : vector<8x256xf32>
    %227 = arith.mulf %226, %224 : vector<8x256xf32>
    %228 = arith.mulf %217, %191 : vector<8x256xf32>
    %229 = arith.addf %227, %228 : vector<8x256xf32>
    %230 = arith.index_cast %c5_i32 : i32 to index
    %c0_52 = arith.constant 0 : index
    %c0_53 = arith.constant 0 : index
    %231 = vector.load %arg8[%230, %c0_52, %c0_53] : memref<8x8x256xf32, #tpu.memory_space<vmem>>, vector<1x8x256xf32>
    %232 = vector.shape_cast %231 : vector<1x8x256xf32> to vector<8x256xf32>
    %233 = vector.shape_cast %229 : vector<8x256xf32> to vector<1x8x256xf32>
    tpu.vector_store %arg8[%230, %c0_52, %c0_53], %233 {strides = array<i32>} : memref<8x8x256xf32, #tpu.memory_space<vmem>>, vector<1x8x256xf32>,
    %c6_i32 = arith.constant 6 : i32
    %234 = arith.index_cast %c6_i32 : i32 to index
    %c0_54 = arith.constant 0 : index
    %c0_55 = arith.constant 0 : index
    %235 = vector.load %arg1[%234, %c0_54, %c0_55] : memref<8x8x768xbf16, #tpu.memory_space<vmem>>, vector<1x8x768xbf16>
    %236 = vector.shape_cast %235 : vector<1x8x768xbf16> to vector<8x768xbf16>
    %237 = arith.extf %236 : vector<8x768xbf16> to vector<8x768xf32>
    %238 = arith.truncf %229 : vector<8x256xf32> to vector<8x256xbf16>
    %cst_56 = arith.constant dense<0.000000e+00> : vector<8x768xf32>
    %239 = tpu.matmul %238, %3, %cst_56 {dimension_numbers = #tpu.dot_dimension_numbers<[1], [0], [0], [1], [0, 0, 1, 1], [], []>} : vector<8x256xbf16>, vector<256x768xbf16>, vector<8x768xf32> -> vector<8x768xf32>
    %240 = vector.extract_strided_slice %237 {offsets = [0, 0], sizes = [8, 256], strides = [1, 1]} : vector<8x768xf32> to vector<8x256xf32>
    %241 = vector.extract_strided_slice %239 {offsets = [0, 0], sizes = [8, 256], strides = [1, 1]} : vector<8x768xf32> to vector<8x256xf32>
    %242 = arith.addf %240, %241 : vector<8x256xf32>
    %243 = arith.negf %242 : vector<8x256xf32>
    %244 = math.exp %243 : vector<8x256xf32>
    %cst_57 = arith.constant 1.000000e+00 : f32
    %245 = vector.broadcast %cst_57 : f32 to vector<8x256xf32>
    %246 = arith.addf %245, %244 : vector<8x256xf32>
    %247 = arith.divf %245, %246 : vector<8x256xf32>
    %248 = vector.extract_strided_slice %237 {offsets = [0, 256], sizes = [8, 256], strides = [1, 1]} : vector<8x768xf32> to vector<8x256xf32>
    %249 = vector.extract_strided_slice %239 {offsets = [0, 256], sizes = [8, 256], strides = [1, 1]} : vector<8x768xf32> to vector<8x256xf32>
    %250 = arith.addf %248, %249 : vector<8x256xf32>
    %251 = arith.negf %250 : vector<8x256xf32>
    %252 = math.exp %251 : vector<8x256xf32>
    %cst_58 = arith.constant 1.000000e+00 : f32
    %253 = vector.broadcast %cst_58 : f32 to vector<8x256xf32>
    %254 = arith.addf %253, %252 : vector<8x256xf32>
    %255 = arith.divf %253, %254 : vector<8x256xf32>
    %256 = vector.extract_strided_slice %237 {offsets = [0, 512], sizes = [8, 256], strides = [1, 1]} : vector<8x768xf32> to vector<8x256xf32>
    %257 = vector.extract_strided_slice %239 {offsets = [0, 512], sizes = [8, 256], strides = [1, 1]} : vector<8x768xf32> to vector<8x256xf32>
    %258 = vector.broadcast %4 : vector<1x256xf32> to vector<8x256xf32>
    %259 = arith.addf %257, %258 : vector<8x256xf32>
    %260 = arith.mulf %247, %259 : vector<8x256xf32>
    %261 = arith.addf %256, %260 : vector<8x256xf32>
    %262 = math.tanh %261 : vector<8x256xf32>
    %cst_59 = arith.constant 1.000000e+00 : f32
    %263 = vector.broadcast %cst_59 : f32 to vector<8x256xf32>
    %264 = arith.subf %263, %255 : vector<8x256xf32>
    %265 = arith.mulf %264, %262 : vector<8x256xf32>
    %266 = arith.mulf %255, %229 : vector<8x256xf32>
    %267 = arith.addf %265, %266 : vector<8x256xf32>
    %268 = arith.index_cast %c6_i32 : i32 to index
    %c0_60 = arith.constant 0 : index
    %c0_61 = arith.constant 0 : index
    %269 = vector.load %arg8[%268, %c0_60, %c0_61] : memref<8x8x256xf32, #tpu.memory_space<vmem>>, vector<1x8x256xf32>
    %270 = vector.shape_cast %269 : vector<1x8x256xf32> to vector<8x256xf32>
    %271 = vector.shape_cast %267 : vector<8x256xf32> to vector<1x8x256xf32>
    tpu.vector_store %arg8[%268, %c0_60, %c0_61], %271 {strides = array<i32>} : memref<8x8x256xf32, #tpu.memory_space<vmem>>, vector<1x8x256xf32>,
    %c7_i32 = arith.constant 7 : i32
    %272 = arith.index_cast %c7_i32 : i32 to index
    %c0_62 = arith.constant 0 : index
    %c0_63 = arith.constant 0 : index
    %273 = vector.load %arg1[%272, %c0_62, %c0_63] : memref<8x8x768xbf16, #tpu.memory_space<vmem>>, vector<1x8x768xbf16>
    %274 = vector.shape_cast %273 : vector<1x8x768xbf16> to vector<8x768xbf16>
    %275 = arith.extf %274 : vector<8x768xbf16> to vector<8x768xf32>
    %276 = arith.truncf %267 : vector<8x256xf32> to vector<8x256xbf16>
    %cst_64 = arith.constant dense<0.000000e+00> : vector<8x768xf32>
    %277 = tpu.matmul %276, %3, %cst_64 {dimension_numbers = #tpu.dot_dimension_numbers<[1], [0], [0], [1], [0, 0, 1, 1], [], []>} : vector<8x256xbf16>, vector<256x768xbf16>, vector<8x768xf32> -> vector<8x768xf32>
    %278 = vector.extract_strided_slice %275 {offsets = [0, 0], sizes = [8, 256], strides = [1, 1]} : vector<8x768xf32> to vector<8x256xf32>
    %279 = vector.extract_strided_slice %277 {offsets = [0, 0], sizes = [8, 256], strides = [1, 1]} : vector<8x768xf32> to vector<8x256xf32>
    %280 = arith.addf %278, %279 : vector<8x256xf32>
    %281 = arith.negf %280 : vector<8x256xf32>
    %282 = math.exp %281 : vector<8x256xf32>
    %cst_65 = arith.constant 1.000000e+00 : f32
    %283 = vector.broadcast %cst_65 : f32 to vector<8x256xf32>
    %284 = arith.addf %283, %282 : vector<8x256xf32>
    %285 = arith.divf %283, %284 : vector<8x256xf32>
    %286 = vector.extract_strided_slice %275 {offsets = [0, 256], sizes = [8, 256], strides = [1, 1]} : vector<8x768xf32> to vector<8x256xf32>
    %287 = vector.extract_strided_slice %277 {offsets = [0, 256], sizes = [8, 256], strides = [1, 1]} : vector<8x768xf32> to vector<8x256xf32>
    %288 = arith.addf %286, %287 : vector<8x256xf32>
    %289 = arith.negf %288 : vector<8x256xf32>
    %290 = math.exp %289 : vector<8x256xf32>
    %cst_66 = arith.constant 1.000000e+00 : f32
    %291 = vector.broadcast %cst_66 : f32 to vector<8x256xf32>
    %292 = arith.addf %291, %290 : vector<8x256xf32>
    %293 = arith.divf %291, %292 : vector<8x256xf32>
    %294 = vector.extract_strided_slice %275 {offsets = [0, 512], sizes = [8, 256], strides = [1, 1]} : vector<8x768xf32> to vector<8x256xf32>
    %295 = vector.extract_strided_slice %277 {offsets = [0, 512], sizes = [8, 256], strides = [1, 1]} : vector<8x768xf32> to vector<8x256xf32>
    %296 = vector.broadcast %4 : vector<1x256xf32> to vector<8x256xf32>
    %297 = arith.addf %295, %296 : vector<8x256xf32>
    %298 = arith.mulf %285, %297 : vector<8x256xf32>
    %299 = arith.addf %294, %298 : vector<8x256xf32>
    %300 = math.tanh %299 : vector<8x256xf32>
    %cst_67 = arith.constant 1.000000e+00 : f32
    %301 = vector.broadcast %cst_67 : f32 to vector<8x256xf32>
    %302 = arith.subf %301, %293 : vector<8x256xf32>
    %303 = arith.mulf %302, %300 : vector<8x256xf32>
    %304 = arith.mulf %293, %267 : vector<8x256xf32>
    %305 = arith.addf %303, %304 : vector<8x256xf32>
    %306 = arith.index_cast %c7_i32 : i32 to index
    %c0_68 = arith.constant 0 : index
    %c0_69 = arith.constant 0 : index
    %307 = vector.load %arg8[%306, %c0_68, %c0_69] : memref<8x8x256xf32, #tpu.memory_space<vmem>>, vector<1x8x256xf32>
    %308 = vector.shape_cast %307 : vector<1x8x256xf32> to vector<8x256xf32>
    %309 = vector.shape_cast %305 : vector<8x256xf32> to vector<1x8x256xf32>
    tpu.vector_store %arg8[%306, %c0_68, %c0_69], %309 {strides = array<i32>} : memref<8x8x256xf32, #tpu.memory_space<vmem>>, vector<1x8x256xf32>,
    %c8_i32 = arith.constant 8 : i32
    %c0_70 = arith.constant 0 : index
    %c0_71 = arith.constant 0 : index
    %310 = vector.load %arg7[%c0_70, %c0_71] : memref<8x256xf32, #tpu.memory_space<vmem>>, vector<8x256xf32>
    tpu.vector_store %arg7[%c0_70, %c0_71], %305 {strides = array<i32>} : memref<8x256xf32, #tpu.memory_space<vmem>>, vector<8x256xf32>,
    %c0_72 = arith.constant 0 : index
    %c0_73 = arith.constant 0 : index
    %c0_74 = arith.constant 0 : index
    %311 = vector.load %arg8[%c0_72, %c0_73, %c0_74] : memref<8x8x256xf32, #tpu.memory_space<vmem>>, vector<8x8x256xf32>
    %312 = vector.shape_cast %311 : vector<8x8x256xf32> to vector<64x256xf32>
    %c0_75 = arith.constant 0 : index
    %c0_76 = arith.constant 0 : index
    %313 = vector.load %arg4[%c0_75, %c0_76] : memref<256x128xf32, #tpu.memory_space<vmem>>, vector<256x128xf32>
    %cst_77 = arith.constant dense<0.000000e+00> : vector<64x128xf32>
    %314 = tpu.matmul %312, %313, %cst_77 {dimension_numbers = #tpu.dot_dimension_numbers<[1], [0], [0], [1], [0, 0, 1, 1], [], []>} : vector<64x256xf32>, vector<256x128xf32>, vector<64x128xf32> -> vector<64x128xf32>
    %c0_78 = arith.constant 0 : index
    %c0_79 = arith.constant 0 : index
    %315 = vector.load %arg5[%c0_78, %c0_79] : memref<1x128xf32, #tpu.memory_space<vmem>>, vector<1x128xf32>
    %316 = vector.broadcast %315 : vector<1x128xf32> to vector<64x128xf32>
    %317 = arith.addf %314, %316 : vector<64x128xf32>
    %318 = vector.shape_cast %317 : vector<64x128xf32> to vector<8x8x128xf32>
    %c0_80 = arith.constant 0 : index
    %c0_81 = arith.constant 0 : index
    %c0_82 = arith.constant 0 : index
    %319 = vector.load %arg6[%c0_80, %c0_81, %c0_82] : memref<8x8x128xf32, #tpu.memory_space<vmem>>, vector<8x8x128xf32>
    tpu.vector_store %arg6[%c0_80, %c0_81, %c0_82], %318 {strides = array<i32>} : memref<8x8x128xf32, #tpu.memory_space<vmem>>, vector<8x8x128xf32>,
    return
  }
  func.func @transform_0(%arg0: i32) -> (i32, i32, i32) {
    %c0_i32 = arith.constant 0 : i32
    %c0_i32_0 = arith.constant 0 : i32
    %c0_i32_1 = arith.constant 0 : i32
    return %arg0, %c0_i32, %c0_i32_0 : i32, i32, i32
  }
  func.func @transform_1(%arg0: i32) -> (i32, i32) {
    %c0_i32 = arith.constant 0 : i32
    %c0_i32_0 = arith.constant 0 : i32
    %c0_i32_1 = arith.constant 0 : i32
    return %c0_i32, %c0_i32_0 : i32, i32
  }
  func.func @transform_2(%arg0: i32) -> (i32, i32) {
    %c0_i32 = arith.constant 0 : i32
    %c0_i32_0 = arith.constant 0 : i32
    %c0_i32_1 = arith.constant 0 : i32
    return %c0_i32, %c0_i32_0 : i32, i32
  }
  func.func @transform_3(%arg0: i32) -> (i32, i32) {
    %c0_i32 = arith.constant 0 : i32
    %c0_i32_0 = arith.constant 0 : i32
    %c0_i32_1 = arith.constant 0 : i32
    return %c0_i32, %c0_i32_0 : i32, i32
  }
  func.func @transform_4(%arg0: i32) -> (i32, i32) {
    %c0_i32 = arith.constant 0 : i32
    %c0_i32_0 = arith.constant 0 : i32
    %c0_i32_1 = arith.constant 0 : i32
    return %c0_i32, %c0_i32_0 : i32, i32
  }
  func.func @transform_5(%arg0: i32) -> (i32, i32, i32) {
    %c0_i32 = arith.constant 0 : i32
    %c0_i32_0 = arith.constant 0 : i32
    %c0_i32_1 = arith.constant 0 : i32
    return %arg0, %c0_i32, %c0_i32_0 : i32, i32, i32
  }
}

</mosaic_0001>

<bundles_post_ra>
// kernel: ccv3_forward.2
= control target key start
LH: loop header
LB: loop body
LE: loop exit
PB: predicated region body
PF: predicated region fallthrough
CT: control target
= control target key end

     0   :  { %vm68_vm0 = vcmask 1043456   ;;  %vm43_vm1 = vcmask 97280   ;;  %v1690_v42 = vmov 0.0   ;;  %s2356_s1 = inlined_call_operand.vmem [shape: f32[12,128], index: 1, kind: input, shape index: {}]   ;;  %s2357_s0 = inlined_call_operand.vmem [shape: f32[64,12], index: 0, kind: input, shape index: {}]   ;;  %s2358_s3 = inlined_call_operand.vmem [shape: f32[128,256], index: 3, kind: input, shape index: {}]   ;;  %s2359_s5 = inlined_call_operand.vmem [shape: bf16[256,768], index: 5, kind: input, shape index: {}]   ;;  %s2360_s2 = inlined_call_operand.vmem [shape: f32[1,128], index: 2, kind: input, shape index: {}]   ;;  %s2361_s4 = inlined_call_operand.vmem [shape: f32[1,256], index: 4, kind: input, shape index: {}]   ;;  %s2362_s6 = inlined_call_operand.vmem [shape: f32[1,768], index: 6, kind: input, shape index: {}]   ;;  %s2363_s7 = inlined_call_operand.vmem [shape: bf16[64,768], index: 7, kind: output, shape index: {}]  }
   0x1   :  { %v35_v0 = vld [vmem:[%s2356_s1 + $0x8] sm:$0xf]  ;;  %v34_v1 = vld [vmem:[%s2356_s1] sm:$0xff]  ;;  %v28_v4 = vld [vmem:[%s2357_s0 + $0x10] sm:$0xff] }
   0x2   :  { %v26_v2 = vld [vmem:[%s2357_s0] sm:$0xff]  ;;  %1529 = vmatprep.subr.msk.mxu1 %vm68_vm0, %v35_v0  ;;  %v27_v3 = vld [vmem:[%s2357_s0 + $0x8] sm:$0xff]  ;;  %v216_v5 = vld [vmem:[%s2358_s3 + $0xf8] sm:$0xff] }
   0x3   :  { %1533 = vmatprep.mubr.msk.f32.mxu1 %vm43_vm1, %v26_v2  ;;  %1530 = vmatpush3.msk.msra.mxu1 %vm68_vm0, %v35_v0  ;;  %v215_v6 = vld [vmem:[%s2358_s3 + $0xf0] sm:$0xff]  ;;  %v214_v7 = vld [vmem:[%s2358_s3 + $0xe8] sm:$0xff]  ;;  %v213_v8 = vld [vmem:[%s2358_s3 + $0xe0] sm:$0xff] }
   0x4   :  { %1531 = vmatprep.subr.mxu1 %v34_v1  ;;  %v29_v9 = vld [vmem:[%s2357_s0 + $0x18] sm:$0xff]  ;;  %v30_v11 = vld [vmem:[%s2357_s0 + $0x20] sm:$0xff]  ;;  %v211_v12 = vld [vmem:[%s2358_s3 + $0xd0] sm:$0xff] }
   0x5   :  { %1532 = vmatpush3.msra.mxu1 %v34_v1  ;;  %v212_v10 = vld [vmem:[%s2358_s3 + $0xd8] sm:$0xff]  ;;  %v210_v13 = vld [vmem:[%s2358_s3 + $0xc8] sm:$0xff]  ;;  %v209_v14 = vld [vmem:[%s2358_s3 + $0xc0] sm:$0xff] }
   0x6   :  { %1534 = vmatmul.mubr.msk.f32.vlgmr.msra.gmra.mxu1 %vm43_vm1, %v27_v3  ;;  %229 = vmatprep.subr.mxu1 %v216_v5  ;;  %v31_v15 = vld [vmem:[%s2357_s0 + $0x28] sm:$0xff]  ;;  %v208_v16 = vld [vmem:[%s2358_s3 + $0xb8] sm:$0xff]  ;;  %v32_v17 = vld [vmem:[%s2357_s0 + $0x30] sm:$0xff] }
   0x7   :  { %1536 = vmatprep.mubr.msk.f32.mxu1 %vm43_vm1, %v28_v4  ;;  %230 = vmatpush1.msra.mxu1 %v215_v6  ;;  %v207_v18 = vld [vmem:[%s2358_s3 + $0xb0] sm:$0xff]  ;;  %v206_v19 = vld [vmem:[%s2358_s3 + $0xa8] sm:$0xff]  ;;  %v205_v20 = vld [vmem:[%s2358_s3 + $0xa0] sm:$0xff] }
   0x8   :  { %231 = vmatprep.subr.mxu1 %v214_v7  ;;  %v33_v21 = vld [vmem:[%s2357_s0 + $0x38] sm:$0xff]  ;;  %v203_v23 = vld [vmem:[%s2358_s3 + $0x90] sm:$0xff]  ;;  %v202_v24 = vld [vmem:[%s2358_s3 + $0x88] sm:$0xff] }
   0x9   :  { %232 = vmatpush1.msra.mxu1 %v213_v8  ;;  %v204_v22 = vld [vmem:[%s2358_s3 + $0x98] sm:$0xff]  ;;  %v201_v25 = vld [vmem:[%s2358_s3 + $0x80] sm:$0xff]  ;;  %v199_v27 = vld [vmem:[%s2358_s3 + $0x70] sm:$0xff] }
   0xa   :  { %1537 = vmatmul.mubr.msk.f32.gmra.mxu1 %vm43_vm1, %v29_v9  ;;  %233 = vmatprep.subr.mxu1 %v212_v10  ;;  %v200_v26 = vld [vmem:[%s2358_s3 + $0x78] sm:$0xff]  ;;  %v198_v28 = vld [vmem:[%s2358_s3 + $0x68] sm:$0xff]  ;;  %v197_v29 = vld [vmem:[%s2358_s3 + $0x60] sm:$0xff] }
   0xb   :  { %1539 = vmatprep.mubr.msk.f32.mxu1 %vm43_vm1, %v30_v11  ;;  %234 = vmatpush1.msra.mxu1 %v211_v12  ;;  %v196_v30 = vld [vmem:[%s2358_s3 + $0x58] sm:$0xff]  ;;  %v195_v31 = vld [vmem:[%s2358_s3 + $0x50] sm:$0xff]  ;;  %v194_v32 = vld [vmem:[%s2358_s3 + $0x48] sm:$0xff] }
   0xc   :  { %235 = vmatprep.subr.mxu1 %v210_v13  ;;  %v193_v33 = vld [vmem:[%s2358_s3 + $0x40] sm:$0xff]  ;;  %v192_v34 = vld [vmem:[%s2358_s3 + $0x38] sm:$0xff]  ;;  %v191_v35 = vld [vmem:[%s2358_s3 + $0x30] sm:$0xff] }
   0xd   :  { %236 = vmatpush1.msra.mxu1 %v209_v14  ;;  %v190_v36 = vld [vmem:[%s2358_s3 + $0x28] sm:$0xff]  ;;  %v189_v37 = vld [vmem:[%s2358_s3 + $0x20] sm:$0xff]  ;;  %v188_v38 = vld [vmem:[%s2358_s3 + $0x18] sm:$0xff] }
   0xe   :  { %1540 = vmatmul.mubr.msk.f32.gmra.mxu1 %vm43_vm1, %v31_v15  ;;  %237 = vmatprep.subr.mxu1 %v208_v16  ;;  %v187_v39 = vld [vmem:[%s2358_s3 + $0x10] sm:$0xff]  ;;  %v186_v40 = vld [vmem:[%s2358_s3 + $0x8] sm:$0xff]  ;;  %v185_v41 = vld [vmem:[%s2358_s3] sm:$0xff] }
   0xf   :  { %1542 = vmatprep.mubr.msk.f32.mxu1 %vm43_vm1, %v32_v17  ;;  %238 = vmatpush1.msra.mxu1 %v207_v18  ;;  %v1546_v43 = vld [vmem:[%s2359_s5 + $0x154] ss:$24 sps:$4 sm:$0xff]   ;;  %v1548_v44 = vld [vmem:[%s2359_s5 + $0x150] ss:$24 sps:$4 sm:$0xff]   ;;  %v1552_v46 = vld [vmem:[%s2359_s5 + $0x124] ss:$24 sps:$4 sm:$0xff]  }
  0x10   :  { %239 = vmatprep.subr.mxu1 %v206_v19  ;;  %974 = vmatprep.subr.bf16.mxu0 %v1546_v43  ;;  %v1551_v45 = vld [vmem:[%s2359_s5 + $0x15c] ss:$24 sps:$4 sm:$0xff]   ;;  %v1554_v47 = vld [vmem:[%s2359_s5 + $0x120] ss:$24 sps:$4 sm:$0xff]   ;;  %v1560_v49 = vld [vmem:[%s2359_s5 + $0xf0] ss:$24 sps:$4 sm:$0xff]  }
  0x11   :  { %240 = vmatpush1.msra.mxu1 %v205_v20  ;;  %975 = vmatpush1.bf16.msra.mxu0 %v1548_v44  ;;  %v1558_v48 = vld [vmem:[%s2359_s5 + $0xf4] ss:$24 sps:$4 sm:$0xff]   ;;  %v1564_v50 = vld [vmem:[%s2359_s5 + $0xc4] ss:$24 sps:$4 sm:$0xff]   ;;  %v1566_v51 = vld [vmem:[%s2359_s5 + $0xc0] ss:$24 sps:$4 sm:$0xff]  }
  0x12   :  { %1543 = vmatmul.mubr.msk.f32.gmra.mxu1 %vm43_vm1, %v33_v21  ;;  %241 = vmatprep.subr.mxu1 %v204_v22  ;;  %v1570_v52 = vld [vmem:[%s2359_s5 + $0x94] ss:$24 sps:$4 sm:$0xff]   ;;  %v1572_v53 = vld [vmem:[%s2359_s5 + $0x90] ss:$24 sps:$4 sm:$0xff]   ;;  %v1576_v54 = vld [vmem:[%s2359_s5 + $0x64] ss:$24 sps:$4 sm:$0xff]  }
  0x13   :  { %242 = vmatpush1.msra.mxu1 %v203_v23  ;;  %293 = vmatprep.mubr.f32.mxu1 %v1690_v42  ;;  %v1578_v55 = vld [vmem:[%s2359_s5 + $0x60] ss:$24 sps:$4 sm:$0xff]   ;;  %v1582_v56 = vld [vmem:[%s2359_s5 + $0x34] ss:$24 sps:$4 sm:$0xff]   ;;  %v1584_v57 = vld [vmem:[%s2359_s5 + $0x30] ss:$24 sps:$4 sm:$0xff]  }
  0x14   :  { %243 = vmatprep.subr.mxu1 %v202_v24  ;;  %976 = vmatprep.subr.bf16.mxu0 %v1552_v46  ;;  %v1588_v58 = vld [vmem:[%s2359_s5 + $0x4] ss:$24 sps:$4 sm:$0xff]   ;;  %v1590_v59 = vld [vmem:[%s2359_s5] ss:$24 sps:$4 sm:$0xff]   ;;  %v1594_v60 = vld [vmem:[%s2359_s5 + $0x2d4] ss:$24 sps:$4 sm:$0xff]  }
  0x15   :  { %244 = vmatpush1.msra.mxu1 %v201_v25  ;;  %977 = vmatpush1.bf16.msra.mxu0 %v1554_v47  ;;  %v1596_v61 = vld [vmem:[%s2359_s5 + $0x2d0] ss:$24 sps:$4 sm:$0xff]   ;;  %v1600_v62 = vld [vmem:[%s2359_s5 + $0x2a4] ss:$24 sps:$4 sm:$0xff]   ;;  %v1602_v63 = vld [vmem:[%s2359_s5 + $0x2a0] ss:$24 sps:$4 sm:$0xff]  }
  0x16   :  { %245 = vmatprep.subr.mxu1 %v200_v26  ;;  %978 = vmatprep.subr.bf16.mxu0 %v1558_v48  ;;  %v1606_v0 = vld [vmem:[%s2359_s5 + $0x274] ss:$24 sps:$4 sm:$0xff]   ;;  %v1608_v1 = vld [vmem:[%s2359_s5 + $0x270] ss:$24 sps:$4 sm:$0xff]   ;;  %v1612_v2 = vld [vmem:[%s2359_s5 + $0x244] ss:$24 sps:$4 sm:$0xff]  }
  0x17   :  { %246 = vmatpush1.msra.mxu1 %v199_v27  ;;  %v1614_v3 = vld [vmem:[%s2359_s5 + $0x240] ss:$24 sps:$4 sm:$0xff]   ;;  %v1618_v4 = vld [vmem:[%s2359_s5 + $0x214] ss:$24 sps:$4 sm:$0xff]   ;;  %v1620_v5 = vld [vmem:[%s2359_s5 + $0x210] ss:$24 sps:$4 sm:$0xff]  }
  0x18   :  { %247 = vmatprep.subr.mxu1 %v198_v28  ;;  %v1365_v7 = vld [vmem:[%s2360_s2] ss:$0 sm:$0xff]  ;;  %v1549_v11 = vld [vmem:[%s2359_s5 + $0x158] ss:$24 sps:$4 sm:$0xff]   ;;  %v1557_v14 = vld [vmem:[%s2359_s5 + $0x12c] ss:$24 sps:$4 sm:$0xff]  }
  0x19   :  { %248 = vmatpush1.msra.mxu1 %v197_v29  ;;  %979 = vmatpush1.bf16.msra.mxu0 %v1560_v49  ;;  %v1555_v18 = vld [vmem:[%s2359_s5 + $0x128] ss:$24 sps:$4 sm:$0xff]   ;;  %v1563_v20 = vld [vmem:[%s2359_s5 + $0xfc] ss:$24 sps:$4 sm:$0xff]   ;;  %v1561_v24 = vld [vmem:[%s2359_s5 + $0xf8] ss:$24 sps:$4 sm:$0xff]  }
  0x1a   :  { %249 = vmatprep.subr.mxu1 %v196_v30  ;;  %980 = vmatprep.subr.bf16.mxu0 %v1564_v50  ;;  %v1569_v25 = vld [vmem:[%s2359_s5 + $0xcc] ss:$24 sps:$4 sm:$0xff]   ;;  %v1567_v29 = vld [vmem:[%s2359_s5 + $0xc8] ss:$24 sps:$4 sm:$0xff]   ;;  %v1575_v30 = vld [vmem:[%s2359_s5 + $0x9c] ss:$24 sps:$4 sm:$0xff]  }
  0x1b   :  { %250 = vmatpush1.msra.mxu1 %v195_v31  ;;  %v1585_v43 = vld [vmem:[%s2359_s5 + $0x38] ss:$24 sps:$4 sm:$0xff]   ;;  %v1593_v44 = vld [vmem:[%s2359_s5 + $0xc] ss:$24 sps:$4 sm:$0xff]   ;;  %v1591_v46 = vld [vmem:[%s2359_s5 + $0x8] ss:$24 sps:$4 sm:$0xff]  }
  0x1c   :  { %251 = vmatprep.subr.mxu1 %v194_v32  ;;  %v1599_v47 = vld [vmem:[%s2359_s5 + $0x2dc] ss:$24 sps:$4 sm:$0xff]   ;;  %v1597_v48 = vld [vmem:[%s2359_s5 + $0x2d8] ss:$24 sps:$4 sm:$0xff]   ;;  %v1603_v49 = vld [vmem:[%s2359_s5 + $0x2a8] ss:$24 sps:$4 sm:$0xff]  }
  0x1d   :  { %252 = vmatpush1.msra.mxu1 %v193_v33  ;;  %981 = vmatpush1.bf16.msra.mxu0 %v1566_v51  ;;  %v1611_v50 = vld [vmem:[%s2359_s5 + $0x27c] ss:$24 sps:$4 sm:$0xff]   ;;  %v1609_v51 = vld [vmem:[%s2359_s5 + $0x278] ss:$24 sps:$4 sm:$0xff]  }
  0x1e   :  { %253 = vmatprep.subr.mxu1 %v192_v34  ;;  %982 = vmatprep.subr.bf16.mxu0 %v1570_v52  ;;  %v1573_v34 = vld [vmem:[%s2359_s5 + $0x98] ss:$24 sps:$4 sm:$0xff]   ;;  %v1617_v52 = vld [vmem:[%s2359_s5 + $0x24c] ss:$24 sps:$4 sm:$0xff]  }
  0x1f   :  { %254 = vmatpush1.msra.mxu1 %v191_v35  ;;  %v1581_v35 = vld [vmem:[%s2359_s5 + $0x6c] ss:$24 sps:$4 sm:$0xff]  }
  0x20   :  { %255 = vmatprep.subr.mxu1 %v190_v36 }
  0x21   :  { %256 = vmatpush1.msra.mxu1 %v189_v37  ;;  %983 = vmatpush1.bf16.msra.mxu0 %v1572_v53  ;;  %v1615_v53 = vld [vmem:[%s2359_s5 + $0x248] ss:$24 sps:$4 sm:$0xff]  }
  0x22   :  { %257 = vmatprep.subr.mxu1 %v188_v38  ;;  %984 = vmatprep.subr.bf16.mxu0 %v1576_v54  ;;  %v1579_v38 = vld [vmem:[%s2359_s5 + $0x68] ss:$24 sps:$4 sm:$0xff]   ;;  %v1623_v54 = vld [vmem:[%s2359_s5 + $0x21c] ss:$24 sps:$4 sm:$0xff]  }
  0x23   :  { %258 = vmatpush1.msra.mxu1 %v187_v39  ;;  %v1587_v39 = vld [vmem:[%s2359_s5 + $0x3c] ss:$24 sps:$4 sm:$0xff]  }
  0x24   :  { %259 = vmatprep.subr.mxu1 %v186_v40 }
  0x25   :  { %260 = vmatpush1.msra.mxu1 %v185_v41  ;;  %985 = vmatpush1.bf16.msra.mxu0 %v1578_v55  ;;  %v1621_v55 = vld [vmem:[%s2359_s5 + $0x218] ss:$24 sps:$4 sm:$0xff]  }
  0x26   :  { %1047 = vmatprep.subr.bf16.mxu1 %v1551_v45  ;;  %986 = vmatprep.subr.bf16.mxu0 %v1582_v56  ;;  %v1624_v56 = vld [vmem:[%s2359_s5 + $0x1e4] ss:$24 sps:$4 sm:$0xff]  }
  0x29   :  { %987 = vmatpush1.bf16.msra.mxu0 %v1584_v57  ;;  %v1626_v57 = vld [vmem:[%s2359_s5 + $0x1e0] ss:$24 sps:$4 sm:$0xff]  }
  0x2a   :  { %988 = vmatprep.subr.bf16.mxu0 %v1588_v58  ;;  %v1629_v58 = vld [vmem:[%s2359_s5 + $0x1ec] ss:$24 sps:$4 sm:$0xff]  }
  0x2d   :  { %989 = vmatpush1.bf16.msra.mxu0 %v1590_v59  ;;  %v1627_v59 = vld [vmem:[%s2359_s5 + $0x1e8] ss:$24 sps:$4 sm:$0xff]  }
  0x2e   :  { %990 = vmatprep.subr.bf16.mxu0 %v1594_v60  ;;  %v1630_v60 = vld [vmem:[%s2359_s5 + $0x1b4] ss:$24 sps:$4 sm:$0xff]  }
  0x31   :  { %991 = vmatpush2.bf16.msra.mxu0 %v1596_v61  ;;  %v1632_v61 = vld [vmem:[%s2359_s5 + $0x1b0] ss:$24 sps:$4 sm:$0xff]  }
  0x32   :  { %992 = vmatprep.subr.bf16.mxu0 %v1600_v62  ;;  %v1635_v62 = vld [vmem:[%s2359_s5 + $0x1bc] ss:$24 sps:$4 sm:$0xff]  }
  0x35   :  { %993 = vmatpush2.bf16.msra.mxu0 %v1602_v63  ;;  %v1633_v63 = vld [vmem:[%s2359_s5 + $0x1b8] ss:$24 sps:$4 sm:$0xff]  }
  0x36   :  { %994 = vmatprep.subr.bf16.mxu0 %v1606_v0  ;;  %v1636_v0 = vld [vmem:[%s2359_s5 + $0x184] ss:$24 sps:$4 sm:$0xff]  }
  0x39   :  { %995 = vmatpush2.bf16.msra.mxu0 %v1608_v1  ;;  %v1638_v1 = vld [vmem:[%s2359_s5 + $0x180] ss:$24 sps:$4 sm:$0xff]  }
  0x3a   :  { %996 = vmatprep.subr.bf16.mxu0 %v1612_v2  ;;  %v1641_v2 = vld [vmem:[%s2359_s5 + $0x18c] ss:$24 sps:$4 sm:$0xff]  }
  0x3d   :  { %997 = vmatpush2.bf16.msra.mxu0 %v1614_v3  ;;  %v1639_v3 = vld [vmem:[%s2359_s5 + $0x188] ss:$24 sps:$4 sm:$0xff]  }
  0x3e   :  { %998 = vmatprep.subr.bf16.mxu0 %v1618_v4  ;;  %v1644_v4 = vld [vmem:[%s2359_s5 + $0x164] ss:$24 sps:$4 sm:$0xff]  }
  0x41   :  { %999 = vmatpush2.bf16.msra.mxu0 %v1620_v5  ;;  %v219_v5 = vlaneseq }
  0x42   :  { %1000 = vmatprep.subr.bf16.mxu0 %v1624_v56 }
  0x45   :  { %1001 = vmatpush2.bf16.msra.mxu0 %v1626_v57  ;;  %v1651_v57 = vld [vmem:[%s2359_s5 + $0xd0] ss:$24 sps:$4 sm:$0xff]  }
  0x46   :  { %1002 = vmatprep.subr.bf16.mxu0 %v1630_v60 }
  0x49   :  { %1003 = vmatpush2.bf16.msra.mxu0 %v1632_v61 }
  0x4a   :  { %1004 = vmatprep.subr.bf16.mxu0 %v1636_v0 }
  0x4d   :  { %1005 = vmatpush2.bf16.msra.mxu0 %v1638_v1 }
  0x4e   :  { %1120 = vmatprep.subr.bf16.mxu0 %v1644_v4  ;;  %v1659_v4 = vld [vmem:[%s2359_s5 + $0x74] ss:$24 sps:$4 sm:$0xff]  }
  0xc6   :  { %v1535_v6 = vpop.f32.mrf.mxu1 }
  0xc7   :  { %v144_v12 = vadd.f32 %v1535_v6, %v1365_v7  ;;  %v2071_v6 = vshrl.u32 %v219_v5, 7 }
  0xc8   :  { %v138_v8 = vpop.f32.mrf.mxu1 }
  0xc9   :  { %v139_v9 = vadd.f32 %v1365_v7, %v138_v8  ;;  %v178_v19 = vmax.f32 %v144_v12, 0.0  ;;  %v221_v8 = vsub.s32 0, %v2071_v6 }
  0xca   :  { %v1538_v10 = vpop.f32.mrf.mxu1 }
  0xcb   :  { %v177_v13 = vmax.f32 %v139_v9, 0.0  ;;  %v154_v21 = vadd.f32 %v1538_v10, %v1365_v7  ;;  %v217_v9 = vld [vmem:[%s2361_s4] sm:$0x3] }
  0xcc   :  { %v148_v15 = vpop.f32.mrf.mxu1  ;;  %v2084_v12 = vrot.slane %v217_v9, %v221_v8 }
  0xcd   :  { %294 = vmatmul.mubr.f32.vlgmr.msra.gmra.mxu1 %v177_v13  ;;  %v149_v16 = vadd.f32 %v1365_v7, %v148_v15  ;;  %v180_v26 = vmax.f32 %v154_v21, 0.0 }
  0xce   :  { %299 = vmatprep.mubr.f32.mxu1 %v1690_v42  ;;  %v1541_v17 = vpop.f32.mrf.mxu1  ;;  %1048 = vmatpush1.bf16.msra.mxu1 %v1549_v11 }
  0xcf   :  { %1049 = vmatprep.subr.bf16.mxu1 %v1557_v14  ;;  %v179_v22 = vmax.f32 %v149_v16, 0.0  ;;  %v164_v31 = vadd.f32 %v1541_v17, %v1365_v7 }
  0xd0   :  { %v158_v23 = vpop.f32.mrf.mxu1 }
  0xd1   :  { %300 = vmatmul.mubr.f32.gmra.mxu1 %v178_v19  ;;  %v159_v27 = vadd.f32 %v1365_v7, %v158_v23  ;;  %v182_v36 = vmax.f32 %v164_v31, 0.0 }
  0xd2   :  { %305 = vmatprep.mubr.f32.mxu1 %v1690_v42  ;;  %1050 = vmatpush1.bf16.msra.mxu1 %v1555_v18  ;;  %v1544_v28 = vpop.f32.mrf.mxu1 }
  0xd3   :  { %1051 = vmatprep.subr.bf16.mxu1 %v1563_v20  ;;  %v181_v32 = vmax.f32 %v159_v27, 0.0  ;;  %v174_v40 = vadd.f32 %v1544_v28, %v1365_v7 }
  0xd4   :  { %v168_v33 = vpop.f32.mrf.mxu1 }
  0xd5   :  { %306 = vmatmul.mubr.f32.gmra.mxu1 %v179_v22  ;;  %v169_v37 = vadd.f32 %v1365_v7, %v168_v33  ;;  %v184_v45 = vmax.f32 %v174_v40, 0.0  ;;  %v225_v7 = vsub.s32 1, %v2071_v6 }
  0xd6   :  { %311 = vmatprep.mubr.f32.mxu1 %v1690_v42  ;;  %1052 = vmatpush1.bf16.msra.mxu1 %v1561_v24 }
  0xd7   :  { %1053 = vmatprep.subr.bf16.mxu1 %v1569_v25  ;;  %v183_v41 = vmax.f32 %v169_v37, 0.0  ;;  %v2080_v11 = vrot.slane %v217_v9, %v225_v7 }
  0xd9   :  { %312 = vmatmul.mubr.f32.gmra.mxu1 %v180_v26 }
  0xda   :  { %317 = vmatprep.mubr.f32.mxu1 %v1690_v42  ;;  %1054 = vmatpush1.bf16.msra.mxu1 %v1567_v29  ;;  %v1642_v29 = vld [vmem:[%s2359_s5 + $0x160] ss:$24 sps:$4 sm:$0xff]  }
  0xdb   :  { %1055 = vmatprep.subr.bf16.mxu1 %v1575_v30 }
  0xdd   :  { %318 = vmatmul.mubr.f32.gmra.mxu1 %v181_v32  ;;  %v1647_v32 = vld [vmem:[%s2359_s5 + $0x134] ss:$24 sps:$4 sm:$0xff]  }
  0xde   :  { %323 = vmatprep.mubr.f32.mxu1 %v1690_v42  ;;  %1056 = vmatpush1.bf16.msra.mxu1 %v1573_v34 }
  0xdf   :  { %1057 = vmatprep.subr.bf16.mxu1 %v1581_v35 }
  0xe1   :  { %324 = vmatmul.mubr.f32.gmra.mxu1 %v182_v36 }
  0xe2   :  { %329 = vmatprep.mubr.f32.mxu1 %v1690_v42  ;;  %1058 = vmatpush1.bf16.msra.mxu1 %v1579_v38 }
  0xe3   :  { %1059 = vmatprep.subr.bf16.mxu1 %v1587_v39  ;;  %v1645_v39 = vld [vmem:[%s2359_s5 + $0x130] ss:$24 sps:$4 sm:$0xff]  }
  0xe5   :  { %330 = vmatmul.mubr.f32.gmra.mxu1 %v183_v41  ;;  %v1650_v41 = vld [vmem:[%s2359_s5 + $0x104] ss:$24 sps:$4 sm:$0xff]  }
  0xe6   :  { %335 = vmatprep.mubr.f32.mxu1 %v1690_v42  ;;  %1060 = vmatpush1.bf16.msra.mxu1 %v1585_v43  ;;  %v1605_v42 = vld [vmem:[%s2359_s5 + $0x2ac] ss:$24 sps:$4 sm:$0xff]  }
  0xe7   :  { %1061 = vmatprep.subr.bf16.mxu1 %v1593_v44 }
  0xe9   :  { %336 = vmatmul.mubr.f32.gmra.mxu1 %v184_v45 }
  0xea   :  { %1062 = vmatpush1.bf16.msra.mxu1 %v1591_v46 }
  0xeb   :  { %1063 = vmatprep.subr.bf16.mxu1 %v1599_v47 }
  0xee   :  { %1064 = vmatpush2.bf16.msra.mxu1 %v1597_v48 }
  0xef   :  { %1065 = vmatprep.subr.bf16.mxu1 %v1605_v42  ;;  %v1648_v42 = vld [vmem:[%s2359_s5 + $0x100] ss:$24 sps:$4 sm:$0xff]  }
  0xf2   :  { %1066 = vmatpush2.bf16.msra.mxu1 %v1603_v49 }
  0xf3   :  { %1067 = vmatprep.subr.bf16.mxu1 %v1611_v50  ;;  %v1653_v50 = vld [vmem:[%s2359_s5 + $0xd4] ss:$24 sps:$4 sm:$0xff]  }
  0xf6   :  { %1068 = vmatpush2.bf16.msra.mxu1 %v1609_v51 }
  0xf7   :  { %1069 = vmatprep.subr.bf16.mxu1 %v1617_v52 }
  0xfa   :  { %1070 = vmatpush2.bf16.msra.mxu1 %v1615_v53 }
  0xfb   :  { %1071 = vmatprep.subr.bf16.mxu1 %v1623_v54 }
  0xfe   :  { %1072 = vmatpush2.bf16.msra.mxu1 %v1621_v55 }
  0xff   :  { %1073 = vmatprep.subr.bf16.mxu1 %v1629_v58 }
 0x102   :  { %1074 = vmatpush2.bf16.msra.mxu1 %v1627_v59  ;;  %v1656_v59 = vld [vmem:[%s2359_s5 + $0xa4] ss:$24 sps:$4 sm:$0xff]  }
 0x103   :  { %1075 = vmatprep.subr.bf16.mxu1 %v1635_v62 }
 0x106   :  { %1076 = vmatpush2.bf16.msra.mxu1 %v1633_v63 }
 0x107   :  { %1077 = vmatprep.subr.bf16.mxu1 %v1641_v2  ;;  %v1654_v2 = vld [vmem:[%s2359_s5 + $0xa0] ss:$24 sps:$4 sm:$0xff]  }
 0x10a   :  { %1078 = vmatpush2.bf16.msra.mxu1 %v1639_v3 }
 0x18d   :  { %v295_v10 = vpop.f32.mrf.mxu1 }
 0x18e   :  { %v296_v17 = vadd.f32 %v295_v10, %v2084_v12 }
 0x18f   :  { %v297_v13 = vpop.f32.mrf.mxu1 }
 0x190   :  { %v298_v15 = vadd.f32 %v297_v13, %v2080_v11  ;;  %v342_v24 = vmax.f32 %v296_v17, 0.0 }
 0x191   :  { %v301_v14 = vpop.f32.mrf.mxu1 }
 0x192   :  { %v302_v16 = vadd.f32 %v301_v14, %v2084_v12  ;;  %v343_v22 = vmax.f32 %v298_v15, 0.0 }
 0x193   :  { %v303_v18 = vpop.f32.mrf.mxu1 }
 0x194   :  { %v304_v19 = vadd.f32 %v303_v18, %v2080_v11  ;;  %v344_v20 = vmax.f32 %v302_v16, 0.0  ;;  %v1657_v16 = vld [vmem:[%s2359_s5 + $0x70] ss:$24 sps:$4 sm:$0xff]  }
 0x195   :  { %v307_v21 = vpop.f32.mrf.mxu1 }
 0x196   :  { %v345_v23 = vmax.f32 %v304_v19, 0.0  ;;  %v308_v25 = vadd.f32 %v307_v21, %v2084_v12  ;;  %v2097_v30 = vpack.c.bf16 %v344_v20, %v342_v24  ;;  %v1660_v20 = vld [vmem:[%s2359_s5 + $0x40] ss:$24 sps:$4 sm:$0xff]   ;;  %v1663_v21 = vld [vmem:[%s2359_s5 + $0x10] ss:$24 sps:$4 sm:$0xff]  }
 0x197   :  { %v309_v26 = vpop.f32.mrf.mxu1  ;;  %v1671_v24 = vld [vmem:[%s2359_s5 + $0x2b4] ss:$24 sps:$4 sm:$0xff]  }
 0x198   :  { %v2091_v27 = vpack.c.bf16 %v345_v23, %v343_v22  ;;  %v310_v28 = vadd.f32 %v309_v26, %v2080_v11  ;;  %v346_v34 = vmax.f32 %v308_v25, 0.0  ;;  %v1668_v22 = vld [vmem:[%s2359_s5 + $0x2e4] ss:$24 sps:$4 sm:$0xff]   ;;  %v1666_v23 = vld [vmem:[%s2359_s5 + $0x2e0] ss:$24 sps:$4 sm:$0xff]  }
 0x199   :  { %v313_v31 = vpop.f32.mrf.mxu1  ;;  %v1669_v25 = vld [vmem:[%s2359_s5 + $0x2b0] ss:$24 sps:$4 sm:$0xff]   ;;  %v1674_v26 = vld [vmem:[%s2359_s5 + $0x284] ss:$24 sps:$4 sm:$0xff]  }
 0x19a   :  { %v314_v33 = vadd.f32 %v313_v31, %v2084_v12  ;;  %1006 = vmatprep.mubr.bf16.mxu0 %v2091_v27  ;;  %1079 = vmatprep.mubr.bf16.mxu1 %v2091_v27  ;;  %v347_v36 = vmax.f32 %v310_v28, 0.0  ;;  %v1677_v28 = vld [vmem:[%s2359_s5 + $0x254] ss:$24 sps:$4 sm:$0xff]   ;;  %v1680_v31 = vld [vmem:[%s2359_s5 + $0x224] ss:$24 sps:$4 sm:$0xff]  }
 0x19b   :  { %v315_v35 = vpop.f32.mrf.mxu1  ;;  %1007 = vmatmul.mubr.bf16.vlgmr.msra.gmra.mxu0 %v2097_v30  ;;  %1080 = vmatmul.mubr.bf16.vlgmr.msra.gmra.mxu1 %v2097_v30 }
 0x19c   :  { %v348_v37 = vmax.f32 %v314_v33, 0.0  ;;  %v316_v38 = vadd.f32 %v315_v35, %v2080_v11  ;;  %1121 = vmatpush1.bf16.msra.mxu0 %v1642_v29  ;;  %v1675_v29 = vld [vmem:[%s2359_s5 + $0x250] ss:$24 sps:$4 sm:$0xff]   ;;  %v1683_v33 = vld [vmem:[%s2359_s5 + $0x1f4] ss:$24 sps:$4 sm:$0xff]  }
 0x19d   :  { %v319_v40 = vpop.f32.mrf.mxu1  ;;  %1122 = vmatprep.subr.bf16.mxu0 %v1647_v32  ;;  %v1678_v32 = vld [vmem:[%s2359_s5 + $0x220] ss:$24 sps:$4 sm:$0xff]   ;;  %v1686_v35 = vld [vmem:[%s2359_s5 + $0x1c4] ss:$24 sps:$4 sm:$0xff]  }
 0x19e   :  { %v349_v43 = vmax.f32 %v316_v38, 0.0  ;;  %v2114_v44 = vpack.c.bf16 %v348_v37, %v346_v34  ;;  %v320_v45 = vadd.f32 %v319_v40, %v2084_v12  ;;  %v1681_v34 = vld [vmem:[%s2359_s5 + $0x1f0] ss:$24 sps:$4 sm:$0xff]   ;;  %v1689_v37 = vld [vmem:[%s2359_s5 + $0x194] ss:$24 sps:$4 sm:$0xff]   ;;  %v478_v40 = vsub.s32 3, %v2071_v6 }
 0x19f   :  { %v321_v46 = vpop.f32.mrf.mxu1  ;;  %v1687_v38 = vld [vmem:[%s2359_s5 + $0x190] ss:$24 sps:$4 sm:$0xff]  }
 0x1a0   :  { %v2117_v47 = vpack.c.bf16 %v349_v43, %v347_v36  ;;  %v322_v48 = vadd.f32 %v321_v46, %v2080_v11  ;;  %1123 = vmatpush1.bf16.msra.mxu0 %v1645_v39  ;;  %v350_v52 = vmax.f32 %v320_v45, 0.0  ;;  %v1684_v36 = vld [vmem:[%s2359_s5 + $0x1c0] ss:$24 sps:$4 sm:$0xff]   ;;  %v474_v39 = vsub.s32 2, %v2071_v6 }
 0x1a1   :  { %v325_v49 = vpop.f32.mrf.mxu1  ;;  %1124 = vmatprep.subr.bf16.mxu0 %v1650_v41  ;;  %v2230_v41 = vld [vmem:[%s2362_s6] sm:$0x3f] }
 0x1a2   :  { %v326_v51 = vadd.f32 %v325_v49, %v2084_v12  ;;  %1016 = vmatprep.mubr.bf16.mxu0 %v2117_v47  ;;  %1089 = vmatprep.mubr.bf16.mxu1 %v2117_v47  ;;  %v351_v54 = vmax.f32 %v322_v48, 0.0  ;;  %v2238_v43 = vrot.slane %v2230_v41, %v474_v39  ;;  %v2246_v45 = vrot.slane %v2230_v41, %v478_v40 }
 0x1a3   :  { %v327_v53 = vpop.f32.mrf.mxu1  ;;  %1017 = vmatmul.mubr.bf16.gmra.mxu0 %v2114_v44  ;;  %1090 = vmatmul.mubr.bf16.gmra.mxu1 %v2114_v44 }
 0x1a4   :  { %v352_v55 = vmax.f32 %v326_v51, 0.0  ;;  %v328_v56 = vadd.f32 %v327_v53, %v2080_v11  ;;  %1125 = vmatpush1.bf16.msra.mxu0 %v1648_v42 }
 0x1a5   :  { %v331_v58 = vpop.f32.mrf.mxu1  ;;  %1126 = vmatprep.subr.bf16.mxu0 %v1653_v50 }
 0x1a6   :  { %v353_v60 = vmax.f32 %v328_v56, 0.0  ;;  %v2138_v61 = vpack.c.bf16 %v352_v55, %v350_v52  ;;  %v332_v62 = vadd.f32 %v331_v58, %v2084_v12 }
 0x1a7   :  { %v333_v63 = vpop.f32.mrf.mxu1 }
 0x1a8   :  { %v2141_v0 = vpack.c.bf16 %v353_v60, %v351_v54  ;;  %v334_v1 = vadd.f32 %v333_v63, %v2080_v11  ;;  %1127 = vmatpush1.bf16.msra.mxu0 %v1651_v57  ;;  %v354_v9 = vmax.f32 %v332_v62, 0.0 }
 0x1a9   :  { %v337_v3 = vpop.f32.mrf.mxu1  ;;  %1128 = vmatprep.subr.bf16.mxu0 %v1656_v59 }
 0x1aa   :  { %v338_v5 = vadd.f32 %v337_v3, %v2084_v12  ;;  %1026 = vmatprep.mubr.bf16.mxu0 %v2141_v0  ;;  %1099 = vmatprep.mubr.bf16.mxu1 %v2141_v0  ;;  %v355_v13 = vmax.f32 %v334_v1, 0.0  ;;  %v1662_v12 = vld [vmem:[%s2359_s5 + $0x44] ss:$24 sps:$4 sm:$0xff]  }
 0x1ab   :  { %v339_v10 = vpop.f32.mrf.mxu1  ;;  %1027 = vmatmul.mubr.bf16.gmra.mxu0 %v2138_v61  ;;  %1100 = vmatmul.mubr.bf16.gmra.mxu1 %v2138_v61 }
 0x1ac   :  { %v356_v14 = vmax.f32 %v338_v5, 0.0  ;;  %v340_v15 = vadd.f32 %v339_v10, %v2080_v11  ;;  %1129 = vmatpush1.bf16.msra.mxu0 %v1654_v2  ;;  %v1665_v11 = vld [vmem:[%s2359_s5 + $0x14] ss:$24 sps:$4 sm:$0xff]  }
 0x1ad   :  { %1130 = vmatprep.subr.bf16.mxu0 %v1659_v4 }
 0x1ae   :  { %v357_v17 = vmax.f32 %v340_v15, 0.0  ;;  %v364_v18 = vpack.c.bf16 %v356_v14, %v354_v9 }
 0x1b0   :  { %v365_v19 = vpack.c.bf16 %v357_v17, %v355_v13  ;;  %1131 = vmatpush1.bf16.msra.mxu0 %v1657_v16 }
 0x1b1   :  { %1132 = vmatprep.subr.bf16.mxu0 %v1662_v12 }
 0x1b2   :  { %1036 = vmatprep.mubr.bf16.mxu0 %v365_v19  ;;  %1109 = vmatprep.mubr.bf16.mxu1 %v365_v19 }
 0x1b3   :  { %1037 = vmatmul.mubr.bf16.gmra.mxu0 %v364_v18  ;;  %1110 = vmatmul.mubr.bf16.gmra.mxu1 %v364_v18 }
 0x1b4   :  { %1133 = vmatpush1.bf16.msra.mxu0 %v1660_v20  ;;  %1152 = vmatprep.mubr.bf16.mxu0 %v2091_v27  ;;  %v1672_v27 = vld [vmem:[%s2359_s5 + $0x280] ss:$24 sps:$4 sm:$0xff]  }
 0x1b5   :  { %1134 = vmatprep.subr.bf16.mxu0 %v1665_v11 }
 0x1b8   :  { %1135 = vmatpush1.bf16.msra.mxu0 %v1663_v21 }
 0x1b9   :  { %1136 = vmatprep.subr.bf16.mxu0 %v1668_v22 }
 0x1bc   :  { %1137 = vmatpush2.bf16.msra.mxu0 %v1666_v23 }
 0x1bd   :  { %1138 = vmatprep.subr.bf16.mxu0 %v1671_v24 }
 0x1c0   :  { %1139 = vmatpush2.bf16.msra.mxu0 %v1669_v25 }
 0x1c1   :  { %1140 = vmatprep.subr.bf16.mxu0 %v1674_v26 }
 0x1c4   :  { %1141 = vmatpush2.bf16.msra.mxu0 %v1672_v27 }
 0x1c5   :  { %1142 = vmatprep.subr.bf16.mxu0 %v1677_v28 }
 0x1c8   :  { %1143 = vmatpush2.bf16.msra.mxu0 %v1675_v29 }
 0x1c9   :  { %1144 = vmatprep.subr.bf16.mxu0 %v1680_v31 }
 0x1cc   :  { %1145 = vmatpush2.bf16.msra.mxu0 %v1678_v32 }
 0x1cd   :  { %1146 = vmatprep.subr.bf16.mxu0 %v1683_v33 }
 0x1d0   :  { %1147 = vmatpush2.bf16.msra.mxu0 %v1681_v34 }
 0x1d1   :  { %1148 = vmatprep.subr.bf16.mxu0 %v1686_v35 }
 0x1d4   :  { %1149 = vmatpush2.bf16.msra.mxu0 %v1684_v36 }
 0x1d5   :  { %1150 = vmatprep.subr.bf16.mxu0 %v1689_v37 }
 0x1d8   :  { %1151 = vmatpush2.bf16.msra.mxu0 %v1687_v38 }
 0x1db   :  { %1153 = vmatmul.mubr.bf16.vlgmr.msra.gmra.mxu0 %v2097_v30  ;;  %v2235_v30 = vrot.slane %v2230_v41, %v221_v8 }
 0x1dc   :  { %1162 = vmatprep.mubr.bf16.mxu0 %v2117_v47 }
 0x1e3   :  { %1163 = vmatmul.mubr.bf16.gmra.mxu0 %v2114_v44  ;;  %v2243_v44 = vrot.slane %v2230_v41, %v225_v7 }
 0x1e4   :  { %1172 = vmatprep.mubr.bf16.mxu0 %v2141_v0 }
 0x1eb   :  { %1173 = vmatmul.mubr.bf16.gmra.mxu0 %v2138_v61 }
 0x1ec   :  { %1182 = vmatprep.mubr.bf16.mxu0 %v365_v19 }
 0x1f3   :  { %1183 = vmatmul.mubr.bf16.gmra.mxu0 %v364_v18 }
 0x25b   :  { %v1008_v46 = vpop.f32.mrf.mxu0  ;;  %v1081_v47 = vpop.f32.mrf.mxu1 }
 0x25c   :  { %v1009_v49 = vadd.f32 %v1008_v46, %v2235_v30  ;;  %v1082_v8 = vadd.f32 %v1081_v47, %v2238_v43 }
 0x25d   :  { %v1010_v48 = vpop.f32.mrf.mxu0  ;;  %v1083_v42 = vpop.f32.mrf.mxu1 }
 0x25e   :  { %v1011_v50 = vadd.f32 %v1010_v48, %v2243_v44  ;;  %v1084_v51 = vadd.f32 %v1083_v42, %v2246_v45 }
 0x25f   :  { %v1012_v52 = vpop.f32.mrf.mxu0  ;;  %v1085_v53 = vpop.f32.mrf.mxu1 }
 0x260   :  { %v1495_v54 = vpack.c.bf16 %v1011_v50, %v1009_v49  ;;  %v1496_v7 = vpack.c.bf16 %v1084_v51, %v1082_v8  ;;  %v1013_v57 = vadd.f32 %v1012_v52, %v2235_v30  ;;  %v1086_v58 = vadd.f32 %v1085_v53, %v2238_v43 }
 0x261   :  { %v1014_v55 = vpop.f32.mrf.mxu0  ;;  %v1087_v56 = vpop.f32.mrf.mxu1 }
 0x262   :  { %1337 = vst [vmem:[%s2363_s7] sm:$0xff] %v1495_v54  ;;  %1338 = vst [vmem:[%s2363_s7 + $0x8] sm:$0xff] %v1496_v7  ;;  %v1015_v59 = vadd.f32 %v1014_v55, %v2243_v44  ;;  %v1088_v60 = vadd.f32 %v1087_v56, %v2246_v45 }
 0x263   :  { %v1018_v61 = vpop.f32.mrf.mxu0  ;;  %v1091_v62 = vpop.f32.mrf.mxu1 }
 0x264   :  { %v1498_v63 = vpack.c.bf16 %v1015_v59, %v1013_v57  ;;  %v1499_v0 = vpack.c.bf16 %v1088_v60, %v1086_v58  ;;  %v1019_v1 = vadd.f32 %v1018_v61, %v2235_v30  ;;  %v1092_v2 = vadd.f32 %v1091_v62, %v2238_v43 }
 0x265   :  { %v1020_v3 = vpop.f32.mrf.mxu0  ;;  %v1093_v4 = vpop.f32.mrf.mxu1 }
 0x266   :  { %1340 = vst [vmem:[%s2363_s7 + $0x18] sm:$0xff] %v1498_v63  ;;  %1341 = vst [vmem:[%s2363_s7 + $0x20] sm:$0xff] %v1499_v0  ;;  %v1021_v5 = vadd.f32 %v1020_v3, %v2243_v44  ;;  %v1094_v9 = vadd.f32 %v1093_v4, %v2246_v45 }
 0x267   :  { %v1022_v10 = vpop.f32.mrf.mxu0  ;;  %v1095_v13 = vpop.f32.mrf.mxu1 }
 0x268   :  { %v1501_v14 = vpack.c.bf16 %v1021_v5, %v1019_v1  ;;  %v1502_v15 = vpack.c.bf16 %v1094_v9, %v1092_v2  ;;  %v1023_v16 = vadd.f32 %v1022_v10, %v2235_v30  ;;  %v1096_v12 = vadd.f32 %v1095_v13, %v2238_v43 }
 0x269   :  { %v1024_v17 = vpop.f32.mrf.mxu0  ;;  %v1097_v18 = vpop.f32.mrf.mxu1 }
 0x26a   :  { %1343 = vst [vmem:[%s2363_s7 + $0x30] sm:$0xff] %v1501_v14  ;;  %1344 = vst [vmem:[%s2363_s7 + $0x38] sm:$0xff] %v1502_v15  ;;  %v1025_v19 = vadd.f32 %v1024_v17, %v2243_v44  ;;  %v1098_v20 = vadd.f32 %v1097_v18, %v2246_v45 }
 0x26b   :  { %v1028_v11 = vpop.f32.mrf.mxu0  ;;  %v1101_v21 = vpop.f32.mrf.mxu1 }
 0x26c   :  { %v1504_v22 = vpack.c.bf16 %v1025_v19, %v1023_v16  ;;  %v1505_v23 = vpack.c.bf16 %v1098_v20, %v1096_v12  ;;  %v1029_v24 = vadd.f32 %v1028_v11, %v2235_v30  ;;  %v1102_v25 = vadd.f32 %v1101_v21, %v2238_v43 }
 0x26d   :  { %v1030_v26 = vpop.f32.mrf.mxu0  ;;  %v1103_v27 = vpop.f32.mrf.mxu1 }
 0x26e   :  { %1346 = vst [vmem:[%s2363_s7 + $0x48] sm:$0xff] %v1504_v22  ;;  %1347 = vst [vmem:[%s2363_s7 + $0x50] sm:$0xff] %v1505_v23  ;;  %v1031_v28 = vadd.f32 %v1030_v26, %v2243_v44  ;;  %v1104_v29 = vadd.f32 %v1103_v27, %v2246_v45 }
 0x26f   :  { %v1032_v31 = vpop.f32.mrf.mxu0  ;;  %v1105_v32 = vpop.f32.mrf.mxu1 }
 0x270   :  { %v1507_v33 = vpack.c.bf16 %v1031_v28, %v1029_v24  ;;  %v1508_v34 = vpack.c.bf16 %v1104_v29, %v1102_v25  ;;  %v1033_v35 = vadd.f32 %v1032_v31, %v2235_v30  ;;  %v1106_v36 = vadd.f32 %v1105_v32, %v2238_v43 }
 0x271   :  { %v1034_v37 = vpop.f32.mrf.mxu0  ;;  %v1107_v38 = vpop.f32.mrf.mxu1 }
 0x272   :  { %1349 = vst [vmem:[%s2363_s7 + $0x60] sm:$0xff] %v1507_v33  ;;  %1350 = vst [vmem:[%s2363_s7 + $0x68] sm:$0xff] %v1508_v34  ;;  %v1035_v39 = vadd.f32 %v1034_v37, %v2243_v44  ;;  %v1108_v40 = vadd.f32 %v1107_v38, %v2246_v45 }
 0x273   :  { %v1038_v46 = vpop.f32.mrf.mxu0  ;;  %v1111_v47 = vpop.f32.mrf.mxu1 }
 0x274   :  { %v1510_v48 = vpack.c.bf16 %v1035_v39, %v1033_v35  ;;  %v1511_v42 = vpack.c.bf16 %v1108_v40, %v1106_v36  ;;  %v1039_v49 = vadd.f32 %v1038_v46, %v2235_v30  ;;  %v1112_v8 = vadd.f32 %v1111_v47, %v2238_v43 }
 0x275   :  { %v1040_v50 = vpop.f32.mrf.mxu0  ;;  %v1113_v51 = vpop.f32.mrf.mxu1 }
 0x276   :  { %1352 = vst [vmem:[%s2363_s7 + $0x78] sm:$0xff] %v1510_v48  ;;  %1353 = vst [vmem:[%s2363_s7 + $0x80] sm:$0xff] %v1511_v42  ;;  %v1041_v52 = vadd.f32 %v1040_v50, %v2243_v44  ;;  %v1114_v53 = vadd.f32 %v1113_v51, %v2246_v45 }
 0x277   :  { %v1042_v54 = vpop.f32.mrf.mxu0  ;;  %v1115_v7 = vpop.f32.mrf.mxu1 }
 0x278   :  { %v1513_v55 = vpack.c.bf16 %v1041_v52, %v1039_v49  ;;  %v1514_v56 = vpack.c.bf16 %v1114_v53, %v1112_v8  ;;  %v1043_v57 = vadd.f32 %v1042_v54, %v2235_v30  ;;  %v1116_v58 = vadd.f32 %v1115_v7, %v2238_v43 }
 0x279   :  { %v1044_v59 = vpop.f32.mrf.mxu0  ;;  %v1117_v60 = vpop.f32.mrf.mxu1  ;;  %v482_v30 = vsub.s32 4, %v2071_v6  ;;  %v486_v43 = vsub.s32 5, %v2071_v6 }
 0x27a   :  { %1355 = vst [vmem:[%s2363_s7 + $0x90] sm:$0xff] %v1513_v55  ;;  %1356 = vst [vmem:[%s2363_s7 + $0x98] sm:$0xff] %v1514_v56  ;;  %v1045_v61 = vadd.f32 %v1044_v59, %v2243_v44  ;;  %v1118_v62 = vadd.f32 %v1117_v60, %v2246_v45 }
 0x27b   :  { %v483_v1 = vrot.slane %v2230_v41, %v482_v30  ;;  %v487_v44 = vrot.slane %v2230_v41, %v486_v43 }
 0x27c   :  { %v1516_v63 = vpack.c.bf16 %v1045_v61, %v1043_v57  ;;  %v1517_v0 = vpack.c.bf16 %v1118_v62, %v1116_v58 }
 0x27e   :  { %1358 = vst [vmem:[%s2363_s7 + $0xa8] sm:$0xff] %v1516_v63  ;;  %1359 = vst [vmem:[%s2363_s7 + $0xb0] sm:$0xff] %v1517_v0 }
 0x29b   :  { %v1154_v2 = vpop.f32.mrf.mxu0 }
 0x29c   :  { %v1155_v3 = vadd.f32 %v1154_v2, %v483_v1 }
 0x29d   :  { %v1156_v45 = vpop.f32.mrf.mxu0 }
 0x29e   :  { %v1157_v4 = vadd.f32 %v1156_v45, %v487_v44 }
 0x29f   :  { %v1158_v5 = vpop.f32.mrf.mxu0 }
 0x2a0   :  { %v1497_v9 = vpack.c.bf16 %v1157_v4, %v1155_v3  ;;  %v1159_v13 = vadd.f32 %v1158_v5, %v483_v1 }
 0x2a1   :  { %v1160_v10 = vpop.f32.mrf.mxu0 }
 0x2a2   :  { %1339 = vst [vmem:[%s2363_s7 + $0x10] sm:$0xff] %v1497_v9  ;;  %v1161_v14 = vadd.f32 %v1160_v10, %v487_v44 }
 0x2a3   :  { %v1164_v15 = vpop.f32.mrf.mxu0 }
 0x2a4   :  { %v1500_v16 = vpack.c.bf16 %v1161_v14, %v1159_v13  ;;  %v1165_v41 = vadd.f32 %v1164_v15, %v483_v1 }
 0x2a5   :  { %v1166_v6 = vpop.f32.mrf.mxu0 }
 0x2a6   :  { %1342 = vst [vmem:[%s2363_s7 + $0x28] sm:$0xff] %v1500_v16  ;;  %v1167_v12 = vadd.f32 %v1166_v6, %v487_v44 }
 0x2a7   :  { %v1168_v17 = vpop.f32.mrf.mxu0 }
 0x2a8   :  { %v1503_v18 = vpack.c.bf16 %v1167_v12, %v1165_v41  ;;  %v1169_v20 = vadd.f32 %v1168_v17, %v483_v1 }
 0x2a9   :  { %v1170_v19 = vpop.f32.mrf.mxu0 }
 0x2aa   :  { %1345 = vst [vmem:[%s2363_s7 + $0x40] sm:$0xff] %v1503_v18  ;;  %v1171_v11 = vadd.f32 %v1170_v19, %v487_v44 }
 0x2ab   :  { %v1174_v21 = vpop.f32.mrf.mxu0 }
 0x2ac   :  { %v1506_v22 = vpack.c.bf16 %v1171_v11, %v1169_v20  ;;  %v1175_v24 = vadd.f32 %v1174_v21, %v483_v1 }
 0x2ad   :  { %v1176_v23 = vpop.f32.mrf.mxu0 }
 0x2ae   :  { %1348 = vst [vmem:[%s2363_s7 + $0x58] sm:$0xff] %v1506_v22  ;;  %v1177_v25 = vadd.f32 %v1176_v23, %v487_v44 }
 0x2af   :  { %v1178_v26 = vpop.f32.mrf.mxu0 }
 0x2b0   :  { %v1509_v27 = vpack.c.bf16 %v1177_v25, %v1175_v24  ;;  %v1179_v29 = vadd.f32 %v1178_v26, %v483_v1 }
 0x2b1   :  { %v1180_v28 = vpop.f32.mrf.mxu0 }
 0x2b2   :  { %1351 = vst [vmem:[%s2363_s7 + $0x70] sm:$0xff] %v1509_v27  ;;  %v1181_v31 = vadd.f32 %v1180_v28, %v487_v44 }
 0x2b3   :  { %v1184_v32 = vpop.f32.mrf.mxu0 }
 0x2b4   :  { %v1512_v33 = vpack.c.bf16 %v1181_v31, %v1179_v29  ;;  %v1185_v35 = vadd.f32 %v1184_v32, %v483_v1 }
 0x2b5   :  { %v1186_v34 = vpop.f32.mrf.mxu0 }
 0x2b6   :  { %1354 = vst [vmem:[%s2363_s7 + $0x88] sm:$0xff] %v1512_v33  ;;  %v1187_v36 = vadd.f32 %v1186_v34, %v487_v44 }
 0x2b7   :  { %v1188_v37 = vpop.f32.mrf.mxu0 }
 0x2b8   :  { %v1515_v38 = vpack.c.bf16 %v1187_v36, %v1185_v35  ;;  %v1189_v40 = vadd.f32 %v1188_v37, %v483_v1 }
 0x2b9   :  { %v1190_v39 = vpop.f32.mrf.mxu0 }
 0x2ba   :  { %1357 = vst [vmem:[%s2363_s7 + $0xa0] sm:$0xff] %v1515_v38  ;;  %v1191_v46 = vadd.f32 %v1190_v39, %v487_v44 }
 0x2bc   :  { %v1518_v47 = vpack.c.bf16 %v1191_v46, %v1189_v40 }
 0x2be   :  { %1360 = vst [vmem:[%s2363_s7 + $0xb8] sm:$0xff] %v1518_v47 }

// kernel: ccv3_forward.3
= control target key start
LH: loop header
LB: loop body
LE: loop exit
PB: predicated region body
PF: predicated region fallthrough
CT: control target
= control target key end

     0   :  { %v5644_v1 = vmov 0.0|0.0   ;;  %s5636_s1 = inlined_call_operand.vmem [shape: bf16[256,768], index: 1, kind: input, shape index: {}]   ;;  %s5637_s0 = inlined_call_operand.vmem [shape: bf16[8,8,768], index: 0, kind: input, shape index: {}]   ;;  %s5638_s2 = inlined_call_operand.vmem [shape: f32[1,256], index: 2, kind: input, shape index: {}]   ;;  %s5639_s3 = inlined_call_operand.vmem [shape: f32[256,128], index: 3, kind: input, shape index: {}]   ;;  %s5640_s4 = inlined_call_operand.vmem [shape: f32[1,128], index: 4, kind: input, shape index: {}]   ;;  %s5641_s5 = inlined_call_operand.vmem [shape: f32[8,8,128], index: 5, kind: output, shape index: {}]  }
   0x1   :  { %v3013_v0 = vld [vmem:[%s5636_s1 + $0x154] ss:$24 sps:$4 sm:$0xff]   ;;  %648 = vmatprep.mubr.bf16.mxu0 %v5644_v1  ;;  %689 = vmatprep.mubr.bf16.mxu1 %v5644_v1  ;;  %v3020_v2 = vld [vmem:[%s5636_s1 + $0x150] ss:$24 sps:$4 sm:$0xff]   ;;  %v3026_v3 = vld [vmem:[%s5636_s1 + $0x124] ss:$24 sps:$4 sm:$0xff]  }
   0x2   :  { %616 = vmatprep.subr.bf16.mxu0 %v3013_v0  ;;  %v3032_v4 = vld [vmem:[%s5636_s1 + $0x120] ss:$24 sps:$4 sm:$0xff]   ;;  %v3038_v5 = vld [vmem:[%s5636_s1 + $0xf4] ss:$24 sps:$4 sm:$0xff]   ;;  %v3044_v6 = vld [vmem:[%s5636_s1 + $0xf0] ss:$24 sps:$4 sm:$0xff]  }
   0x3   :  { %617 = vmatpush1.bf16.msra.mxu0 %v3020_v2  ;;  %v3050_v7 = vld [vmem:[%s5636_s1 + $0xc4] ss:$24 sps:$4 sm:$0xff]   ;;  %v3056_v8 = vld [vmem:[%s5636_s1 + $0xc0] ss:$24 sps:$4 sm:$0xff]   ;;  %v3062_v9 = vld [vmem:[%s5636_s1 + $0x94] ss:$24 sps:$4 sm:$0xff]  }
   0x4   :  { %618 = vmatprep.subr.bf16.mxu0 %v3026_v3  ;;  %v3067_v10 = vld [vmem:[%s5636_s1 + $0x90] ss:$24 sps:$4 sm:$0xff]   ;;  %v3073_v11 = vld [vmem:[%s5636_s1 + $0x15c] ss:$24 sps:$4 sm:$0xff]   ;;  %v3091_v14 = vld [vmem:[%s5636_s1 + $0x12c] ss:$24 sps:$4 sm:$0xff]  }
   0x5   :  { %v3078_v12 = vld [vmem:[%s5636_s1 + $0x158] ss:$24 sps:$4 sm:$0xff]   ;;  %v3084_v13 = vld [vmem:[%s5636_s1 + $0x64] ss:$24 sps:$4 sm:$0xff]   ;;  %657 = vmatprep.subr.bf16.mxu1 %v3073_v11  ;;  %v3096_v15 = vld [vmem:[%s5636_s1 + $0x128] ss:$24 sps:$4 sm:$0xff]  }
   0x6   :  { %658 = vmatpush1.bf16.msra.mxu1 %v3078_v12  ;;  %v3102_v16 = vld [vmem:[%s5636_s1 + $0x60] ss:$24 sps:$4 sm:$0xff]   ;;  %v3107_v17 = vld [vmem:[%s5636_s1 + $0x34] ss:$24 sps:$4 sm:$0xff]   ;;  %v3126_v20 = vld [vmem:[%s5636_s1 + $0x30] ss:$24 sps:$4 sm:$0xff]  }
   0x7   :  { %619 = vmatpush1.bf16.msra.mxu0 %v3032_v4  ;;  %659 = vmatprep.subr.bf16.mxu1 %v3091_v14  ;;  %v3114_v18 = vld [vmem:[%s5636_s1 + $0xfc] ss:$24 sps:$4 sm:$0xff]   ;;  %v3120_v19 = vld [vmem:[%s5636_s1 + $0xf8] ss:$24 sps:$4 sm:$0xff]   ;;  %v3132_v21 = vld [vmem:[%s5636_s1 + $0xcc] ss:$24 sps:$4 sm:$0xff]  }
   0x8   :  { %620 = vmatprep.subr.bf16.mxu0 %v3038_v5  ;;  %5847 = vst [vmem:[#allocation4_spill] sm:$0xff] %v3120_v19  ;;  %5848 = vst [vmem:[#allocation5_spill] sm:$0xff] %v3132_v21  ;;  %v3138_v22 = vld [vmem:[%s5636_s1 + $0x4] ss:$24 sps:$4 sm:$0xff]   ;;  %v3144_v23 = vld [vmem:[%s5636_s1 + $0xc8] ss:$24 sps:$4 sm:$0xff]  }
   0x9   :  { %5849 = vst [vmem:[#allocation6_spill] sm:$0xff] %v3144_v23  ;;  %v3150_v24 = vld [vmem:[%s5636_s1] ss:$24 sps:$4 sm:$0xff]   ;;  %v3156_v25 = vld [vmem:[%s5636_s1 + $0x9c] ss:$24 sps:$4 sm:$0xff]  }
   0xa   :  { %660 = vmatpush1.bf16.msra.mxu1 %v3096_v15  ;;  %5850 = vst [vmem:[#allocation7_spill] sm:$0xff] %v3156_v25  ;;  %v3162_v26 = vld [vmem:[%s5636_s1 + $0x2d4] ss:$24 sps:$4 sm:$0xff]   ;;  %v3168_v27 = vld [vmem:[%s5636_s1 + $0x98] ss:$24 sps:$4 sm:$0xff]  }
   0xb   :  { %621 = vmatpush1.bf16.msra.mxu0 %v3044_v6  ;;  %661 = vmatprep.subr.bf16.mxu1 %v3114_v18  ;;  %5851 = vst [vmem:[#allocation8_spill] sm:$0xff] %v3168_v27  ;;  %v3174_v28 = vld [vmem:[%s5636_s1 + $0x2d0] ss:$24 sps:$4 sm:$0xff]   ;;  %v3180_v29 = vld [vmem:[%s5636_s1 + $0x6c] ss:$24 sps:$4 sm:$0xff]  }
   0xc   :  { %622 = vmatprep.subr.bf16.mxu0 %v3050_v7  ;;  %5852 = vst [vmem:[#allocation9_spill] sm:$0xff] %v3180_v29  ;;  %v3186_v30 = vld [vmem:[%s5636_s1 + $0x2a4] ss:$24 sps:$4 sm:$0xff]   ;;  %v3192_v31 = vld [vmem:[%s5636_s1 + $0x68] ss:$24 sps:$4 sm:$0xff]  }
   0xd   :  { %5853 = vst [vmem:[#allocation10_spill] sm:$0xff] %v3192_v31  ;;  %v3198_v32 = vld [vmem:[%s5636_s1 + $0x2a0] ss:$24 sps:$4 sm:$0xff]   ;;  %v3204_v33 = vld [vmem:[%s5636_s1 + $0x3c] ss:$24 sps:$4 sm:$0xff]  }
   0xe   :  { %662 = vmatpush1.bf16.msra.mxu1 %v3120_v19  ;;  %5854 = vst [vmem:[#allocation11_spill] sm:$0xff] %v3204_v33  ;;  %v3210_v34 = vld [vmem:[%s5636_s1 + $0x274] ss:$24 sps:$4 sm:$0xff]   ;;  %v3216_v35 = vld [vmem:[%s5636_s1 + $0x38] ss:$24 sps:$4 sm:$0xff]  }
   0xf   :  { %623 = vmatpush1.bf16.msra.mxu0 %v3056_v8  ;;  %663 = vmatprep.subr.bf16.mxu1 %v3132_v21  ;;  %5855 = vst [vmem:[#allocation12_spill] sm:$0xff] %v3216_v35  ;;  %v3222_v36 = vld [vmem:[%s5636_s1 + $0x270] ss:$24 sps:$4 sm:$0xff]   ;;  %v3228_v37 = vld [vmem:[%s5636_s1 + $0xc] ss:$24 sps:$4 sm:$0xff]  }
  0x10   :  { %624 = vmatprep.subr.bf16.mxu0 %v3062_v9  ;;  %5856 = vst [vmem:[#allocation13_spill] sm:$0xff] %v3228_v37  ;;  %v3234_v38 = vld [vmem:[%s5636_s1 + $0x244] ss:$24 sps:$4 sm:$0xff]   ;;  %v3240_v39 = vld [vmem:[%s5636_s1 + $0x8] ss:$24 sps:$4 sm:$0xff]  }
  0x11   :  { %5857 = vst [vmem:[#allocation14_spill] sm:$0xff] %v3240_v39  ;;  %v3246_v40 = vld [vmem:[%s5636_s1 + $0x240] ss:$24 sps:$4 sm:$0xff]   ;;  %v3252_v41 = vld [vmem:[%s5636_s1 + $0x2dc] ss:$24 sps:$4 sm:$0xff]  }
  0x12   :  { %664 = vmatpush1.bf16.msra.mxu1 %v3144_v23  ;;  %5858 = vst [vmem:[#allocation15_spill] sm:$0xff] %v3252_v41  ;;  %v3258_v42 = vld [vmem:[%s5636_s1 + $0x214] ss:$24 sps:$4 sm:$0xff]   ;;  %v3264_v43 = vld [vmem:[%s5636_s1 + $0x2d8] ss:$24 sps:$4 sm:$0xff]  }
  0x13   :  { %625 = vmatpush1.bf16.msra.mxu0 %v3067_v10  ;;  %665 = vmatprep.subr.bf16.mxu1 %v3156_v25  ;;  %5859 = vst [vmem:[#allocation16_spill] sm:$0xff] %v3264_v43  ;;  %v3270_v44 = vld [vmem:[%s5636_s1 + $0x210] ss:$24 sps:$4 sm:$0xff]   ;;  %v3276_v45 = vld [vmem:[%s5636_s1 + $0x2ac] ss:$24 sps:$4 sm:$0xff]  }
  0x14   :  { %626 = vmatprep.subr.bf16.mxu0 %v3084_v13  ;;  %5860 = vst [vmem:[#allocation17_spill] sm:$0xff] %v3276_v45  ;;  %v3282_v46 = vld [vmem:[%s5636_s1 + $0x1e4] ss:$24 sps:$4 sm:$0xff]   ;;  %v3288_v47 = vld [vmem:[%s5636_s1 + $0x2a8] ss:$24 sps:$4 sm:$0xff]  }
  0x15   :  { %5861 = vst [vmem:[#allocation18_spill] sm:$0xff] %v3288_v47  ;;  %v3294_v48 = vld [vmem:[%s5636_s1 + $0x1e0] ss:$24 sps:$4 sm:$0xff]   ;;  %v3300_v49 = vld [vmem:[%s5636_s1 + $0x27c] ss:$24 sps:$4 sm:$0xff]  }
  0x16   :  { %666 = vmatpush1.bf16.msra.mxu1 %v3168_v27  ;;  %5862 = vst [vmem:[#allocation19_spill] sm:$0xff] %v3300_v49  ;;  %v3306_v50 = vld [vmem:[%s5636_s1 + $0x1b4] ss:$24 sps:$4 sm:$0xff]   ;;  %v3312_v51 = vld [vmem:[%s5636_s1 + $0x278] ss:$24 sps:$4 sm:$0xff]  }
  0x17   :  { %627 = vmatpush1.bf16.msra.mxu0 %v3102_v16  ;;  %667 = vmatprep.subr.bf16.mxu1 %v3180_v29  ;;  %5863 = vst [vmem:[#allocation20_spill] sm:$0xff] %v3312_v51  ;;  %v3318_v52 = vld [vmem:[%s5636_s1 + $0x1b0] ss:$24 sps:$4 sm:$0xff]   ;;  %v3324_v53 = vld [vmem:[%s5636_s1 + $0x24c] ss:$24 sps:$4 sm:$0xff]  }
  0x18   :  { %628 = vmatprep.subr.bf16.mxu0 %v3107_v17  ;;  %5864 = vst [vmem:[#allocation21_spill] sm:$0xff] %v3324_v53  ;;  %v3330_v54 = vld [vmem:[%s5636_s1 + $0x184] ss:$24 sps:$4 sm:$0xff]   ;;  %v3336_v55 = vld [vmem:[%s5636_s1 + $0x248] ss:$24 sps:$4 sm:$0xff]  }
  0x19   :  { %5865 = vst [vmem:[#allocation22_spill] sm:$0xff] %v3336_v55  ;;  %v3342_v56 = vld [vmem:[%s5636_s1 + $0x180] ss:$24 sps:$4 sm:$0xff]   ;;  %v3348_v57 = vld [vmem:[%s5636_s1 + $0x21c] ss:$24 sps:$4 sm:$0xff]  }
  0x1a   :  { %668 = vmatpush1.bf16.msra.mxu1 %v3192_v31  ;;  %5866 = vst [vmem:[#allocation23_spill] sm:$0xff] %v3348_v57  ;;  %v3354_v58 = vld [vmem:[%s5636_s1 + $0x164] ss:$24 sps:$4 sm:$0xff]   ;;  %v3360_v59 = vld [vmem:[%s5636_s1 + $0x218] ss:$24 sps:$4 sm:$0xff]  }
  0x1b   :  { %629 = vmatpush1.bf16.msra.mxu0 %v3126_v20  ;;  %669 = vmatprep.subr.bf16.mxu1 %v3204_v33  ;;  %5867 = vst [vmem:[#allocation24_spill] sm:$0xff] %v3360_v59  ;;  %v3366_v60 = vld [vmem:[%s5636_s1 + $0x160] ss:$24 sps:$4 sm:$0xff]   ;;  %v3372_v61 = vld [vmem:[%s5636_s1 + $0x1ec] ss:$24 sps:$4 sm:$0xff]  }
  0x1c   :  { %630 = vmatprep.subr.bf16.mxu0 %v3138_v22  ;;  %5868 = vst [vmem:[#allocation25_spill] sm:$0xff] %v3366_v60  ;;  %5869 = vst [vmem:[#allocation26_spill] sm:$0xff] %v3372_v61  ;;  %v3378_v62 = vld [vmem:[%s5636_s1 + $0x134] ss:$24 sps:$4 sm:$0xff]   ;;  %v3385_v63 = vld [vmem:[%s5636_s1 + $0x1e8] ss:$24 sps:$4 sm:$0xff]  }
  0x1d   :  { %5870 = vst [vmem:[#allocation27_spill] sm:$0xff] %v3378_v62  ;;  %5871 = vst [vmem:[#allocation28_spill] sm:$0xff] %v3385_v63 }
  0x1e   :  { %670 = vmatpush1.bf16.msra.mxu1 %v3216_v35 }
  0x1f   :  { %631 = vmatpush1.bf16.msra.mxu0 %v3150_v24  ;;  %671 = vmatprep.subr.bf16.mxu1 %v3228_v37 }
  0x20   :  { %632 = vmatprep.subr.bf16.mxu0 %v3162_v26 }
  0x22   :  { %672 = vmatpush1.bf16.msra.mxu1 %v3240_v39 }
  0x23   :  { %633 = vmatpush2.bf16.msra.mxu0 %v3174_v28  ;;  %673 = vmatprep.subr.bf16.mxu1 %v3252_v41 }
  0x24   :  { %634 = vmatprep.subr.bf16.mxu0 %v3186_v30 }
  0x26   :  { %674 = vmatpush2.bf16.msra.mxu1 %v3264_v43 }
  0x27   :  { %635 = vmatpush2.bf16.msra.mxu0 %v3198_v32  ;;  %675 = vmatprep.subr.bf16.mxu1 %v3276_v45 }
  0x28   :  { %636 = vmatprep.subr.bf16.mxu0 %v3210_v34 }
  0x2a   :  { %676 = vmatpush2.bf16.msra.mxu1 %v3288_v47 }
  0x2b   :  { %637 = vmatpush2.bf16.msra.mxu0 %v3222_v36  ;;  %677 = vmatprep.subr.bf16.mxu1 %v3300_v49 }
  0x2c   :  { %638 = vmatprep.subr.bf16.mxu0 %v3234_v38 }
  0x2e   :  { %678 = vmatpush2.bf16.msra.mxu1 %v3312_v51 }
  0x2f   :  { %639 = vmatpush2.bf16.msra.mxu0 %v3246_v40  ;;  %679 = vmatprep.subr.bf16.mxu1 %v3324_v53 }
  0x30   :  { %640 = vmatprep.subr.bf16.mxu0 %v3258_v42 }
  0x32   :  { %680 = vmatpush2.bf16.msra.mxu1 %v3336_v55  ;;  %v3422_v55 = vld [vmem:[%s5636_s1 + $0x18c] ss:$24 sps:$4 sm:$0xff]  }
  0x33   :  { %641 = vmatpush2.bf16.msra.mxu0 %v3270_v44  ;;  %681 = vmatprep.subr.bf16.mxu1 %v3348_v57  ;;  %v3391_v57 = vld [vmem:[%s5636_s1 + $0x130] ss:$24 sps:$4 sm:$0xff]   ;;  %5878 = vst [vmem:[#allocation34_spill] sm:$0xff] %v3422_v55 }
  0x34   :  { %642 = vmatprep.subr.bf16.mxu0 %v3282_v46  ;;  %5872 = vst [vmem:[#allocation29_spill] sm:$0xff] %v3391_v57 }
  0x36   :  { %682 = vmatpush2.bf16.msra.mxu1 %v3360_v59  ;;  %v3403_v59 = vld [vmem:[%s5636_s1 + $0x104] ss:$24 sps:$4 sm:$0xff]  }
  0x37   :  { %643 = vmatpush2.bf16.msra.mxu0 %v3294_v48  ;;  %683 = vmatprep.subr.bf16.mxu1 %v3372_v61  ;;  %5874 = vst [vmem:[#allocation31_spill] sm:$0xff] %v3403_v59  ;;  %v3410_v61 = vld [vmem:[%s5636_s1 + $0x1b8] ss:$24 sps:$4 sm:$0xff]  }
  0x38   :  { %644 = vmatprep.subr.bf16.mxu0 %v3306_v50  ;;  %5876 = vst [vmem:[#allocation32_spill] sm:$0xff] %v3410_v61 }
  0x3a   :  { %684 = vmatpush2.bf16.msra.mxu1 %v3385_v63  ;;  %v3428_v63 = vld [vmem:[%s5636_s1 + $0xd4] ss:$24 sps:$4 sm:$0xff]  }
  0x3b   :  { %645 = vmatpush2.bf16.msra.mxu0 %v3318_v52  ;;  %5879 = vst [vmem:[#allocation35_spill] sm:$0xff] %v3428_v63 }
  0x3c   :  { %646 = vmatprep.subr.bf16.mxu0 %v3330_v54 }
  0x3f   :  { %647 = vmatpush2.bf16.msra.mxu0 %v3342_v56 }
  0x40   :  { %698 = vmatprep.subr.bf16.mxu0 %v3354_v58 }
  0x42   :  { %649 = vmatmul.mubr.bf16.vlgmr.msra.gmra.mxu0 %v5644_v1  ;;  %v3397_v1 = vld [vmem:[%s5636_s1 + $0x1bc] ss:$24 sps:$4 sm:$0xff]  }
  0x43   :  { %699 = vmatpush1.bf16.msra.mxu0 %v3366_v60  ;;  %5873 = vst [vmem:[#allocation30_spill] sm:$0xff] %v3397_v1  ;;  %v5875_v60 = vmov 0.0|0.0   ;;  %685 = vmatprep.subr.bf16.mxu1 %v3397_v1  ;;  %v3440_v1 = vld [vmem:[%s5636_s1 + $0xd0] ss:$24 sps:$4 sm:$0xff]  }
  0x44   :  { %700 = vmatprep.subr.bf16.mxu0 %v3378_v62  ;;  %730 = vmatprep.mubr.bf16.mxu0 %v5875_v60  ;;  %v3416_v62 = vld [vmem:[%s5636_s1 + $0x100] ss:$24 sps:$4 sm:$0xff]   ;;  %5881 = vst [vmem:[#allocation37_spill] sm:$0xff] %v3440_v1 }
  0x45   :  { %5877 = vst [vmem:[#allocation33_spill] sm:$0xff] %v3416_v62  ;;  %686 = vmatpush2.bf16.msra.mxu1 %v3410_v61 }
  0x46   :  { %687 = vmatprep.subr.bf16.mxu1 %v3422_v55 }
  0x47   :  { %701 = vmatpush1.bf16.msra.mxu0 %v3391_v57  ;;  %v3434_v57 = vld [vmem:[%s5636_s1 + $0x188] ss:$24 sps:$4 sm:$0xff]  }
  0x48   :  { %702 = vmatprep.subr.bf16.mxu0 %v3403_v59  ;;  %5880 = vst [vmem:[#allocation36_spill] sm:$0xff] %v3434_v57  ;;  %v3447_v59 = vld [vmem:[%s5636_s1 + $0xa4] ss:$24 sps:$4 sm:$0xff]  }
  0x49   :  { %5882 = vst [vmem:[#allocation38_spill] sm:$0xff] %v3447_v59  ;;  %688 = vmatpush2.bf16.msra.mxu1 %v3434_v57 }
  0x4a   :  { %808 = vmatprep.subr.bf16.mxu1 %v3013_v0 }
  0x4b   :  { %703 = vmatpush1.bf16.msra.mxu0 %v3416_v62  ;;  %v3454_v62 = vld [vmem:[%s5636_s1 + $0xa0] ss:$24 sps:$4 sm:$0xff]  }
  0x4c   :  { %704 = vmatprep.subr.bf16.mxu0 %v3428_v63  ;;  %5883 = vst [vmem:[#allocation39_spill] sm:$0xff] %v3454_v62  ;;  %v3461_v63 = vld [vmem:[%s5636_s1 + $0x74] ss:$24 sps:$4 sm:$0xff]   ;;  %690 = vmatmul.mubr.bf16.vlgmr.msra.gmra.mxu1 %v5875_v60 }
  0x4d   :  { %5884 = vst [vmem:[#allocation40_spill] sm:$0xff] %v3461_v63  ;;  %809 = vmatpush1.bf16.msra.mxu1 %v3020_v2 }
  0x4e   :  { %810 = vmatprep.subr.bf16.mxu1 %v3026_v3 }
  0x4f   :  { %705 = vmatpush1.bf16.msra.mxu0 %v3440_v1  ;;  %v3469_v1 = vld [vmem:[%s5636_s1 + $0x70] ss:$24 sps:$4 sm:$0xff]  }
  0x50   :  { %706 = vmatprep.subr.bf16.mxu0 %v3447_v59  ;;  %5885 = vst [vmem:[#allocation41_spill] sm:$0xff] %v3469_v1  ;;  %v3476_v59 = vld [vmem:[%s5636_s1 + $0x44] ss:$24 sps:$4 sm:$0xff]  }
  0x51   :  { %5886 = vst [vmem:[#allocation42_spill] sm:$0xff] %v3476_v59  ;;  %811 = vmatpush1.bf16.msra.mxu1 %v3032_v4 }
  0x52   :  { %812 = vmatprep.subr.bf16.mxu1 %v3038_v5 }
  0x53   :  { %707 = vmatpush1.bf16.msra.mxu0 %v3454_v62  ;;  %v3483_v62 = vld [vmem:[%s5636_s1 + $0x40] ss:$24 sps:$4 sm:$0xff]  }
  0x54   :  { %708 = vmatprep.subr.bf16.mxu0 %v3461_v63  ;;  %5887 = vst [vmem:[#allocation43_spill] sm:$0xff] %v3483_v62  ;;  %v3490_v63 = vld [vmem:[%s5636_s1 + $0x14] ss:$24 sps:$4 sm:$0xff]  }
  0x55   :  { %5888 = vst [vmem:[#allocation44_spill] sm:$0xff] %v3490_v63  ;;  %813 = vmatpush1.bf16.msra.mxu1 %v3044_v6 }
  0x56   :  { %814 = vmatprep.subr.bf16.mxu1 %v3050_v7 }
  0x57   :  { %709 = vmatpush1.bf16.msra.mxu0 %v3469_v1  ;;  %v3497_v1 = vld [vmem:[%s5636_s1 + $0x10] ss:$24 sps:$4 sm:$0xff]  }
  0x58   :  { %710 = vmatprep.subr.bf16.mxu0 %v3476_v59  ;;  %5889 = vst [vmem:[#allocation45_spill] sm:$0xff] %v3497_v1  ;;  %v3504_v59 = vld [vmem:[%s5636_s1 + $0x2e4] ss:$24 sps:$4 sm:$0xff]  }
  0x59   :  { %5890 = vst [vmem:[#allocation46_spill] sm:$0xff] %v3504_v59  ;;  %815 = vmatpush1.bf16.msra.mxu1 %v3056_v8 }
  0x5a   :  { %816 = vmatprep.subr.bf16.mxu1 %v3062_v9 }
  0x5b   :  { %711 = vmatpush1.bf16.msra.mxu0 %v3483_v62  ;;  %v3511_v62 = vld [vmem:[%s5636_s1 + $0x2e0] ss:$24 sps:$4 sm:$0xff]  }
  0x5c   :  { %712 = vmatprep.subr.bf16.mxu0 %v3490_v63  ;;  %5891 = vst [vmem:[#allocation47_spill] sm:$0xff] %v3511_v62  ;;  %v3518_v63 = vld [vmem:[%s5636_s1 + $0x2b4] ss:$24 sps:$4 sm:$0xff]  }
  0x5d   :  { %5892 = vst [vmem:[#allocation48_spill] sm:$0xff] %v3518_v63  ;;  %817 = vmatpush1.bf16.msra.mxu1 %v3067_v10 }
  0x5e   :  { %818 = vmatprep.subr.bf16.mxu1 %v3084_v13 }
  0x5f   :  { %713 = vmatpush1.bf16.msra.mxu0 %v3497_v1  ;;  %v3525_v1 = vld [vmem:[%s5636_s1 + $0x2b0] ss:$24 sps:$4 sm:$0xff]  }
  0x60   :  { %714 = vmatprep.subr.bf16.mxu0 %v3504_v59  ;;  %5893 = vst [vmem:[#allocation49_spill] sm:$0xff] %v3525_v1  ;;  %v3532_v59 = vld [vmem:[%s5636_s1 + $0x284] ss:$24 sps:$4 sm:$0xff]  }
  0x61   :  { %5894 = vst [vmem:[#allocation50_spill] sm:$0xff] %v3532_v59  ;;  %819 = vmatpush1.bf16.msra.mxu1 %v3102_v16 }
  0x62   :  { %820 = vmatprep.subr.bf16.mxu1 %v3107_v17 }
  0x63   :  { %715 = vmatpush2.bf16.msra.mxu0 %v3511_v62  ;;  %v3539_v62 = vld [vmem:[%s5636_s1 + $0x280] ss:$24 sps:$4 sm:$0xff]  }
  0x64   :  { %716 = vmatprep.subr.bf16.mxu0 %v3518_v63  ;;  %5895 = vst [vmem:[#allocation51_spill] sm:$0xff] %v3539_v62  ;;  %v3546_v63 = vld [vmem:[%s5636_s1 + $0x254] ss:$24 sps:$4 sm:$0xff]  }
  0x65   :  { %5896 = vst [vmem:[#allocation52_spill] sm:$0xff] %v3546_v63  ;;  %821 = vmatpush1.bf16.msra.mxu1 %v3126_v20 }
  0x66   :  { %822 = vmatprep.subr.bf16.mxu1 %v3138_v22 }
  0x67   :  { %717 = vmatpush2.bf16.msra.mxu0 %v3525_v1  ;;  %v3553_v1 = vld [vmem:[%s5636_s1 + $0x250] ss:$24 sps:$4 sm:$0xff]  }
  0x68   :  { %718 = vmatprep.subr.bf16.mxu0 %v3532_v59  ;;  %5897 = vst [vmem:[#allocation53_spill] sm:$0xff] %v3553_v1  ;;  %v3560_v59 = vld [vmem:[%s5636_s1 + $0x224] ss:$24 sps:$4 sm:$0xff]  }
  0x69   :  { %5898 = vst [vmem:[#allocation54_spill] sm:$0xff] %v3560_v59  ;;  %823 = vmatpush1.bf16.msra.mxu1 %v3150_v24 }
  0x6a   :  { %824 = vmatprep.subr.bf16.mxu1 %v3162_v26 }
  0x6b   :  { %719 = vmatpush2.bf16.msra.mxu0 %v3539_v62  ;;  %v3567_v62 = vld [vmem:[%s5636_s1 + $0x220] ss:$24 sps:$4 sm:$0xff]  }
  0x6c   :  { %720 = vmatprep.subr.bf16.mxu0 %v3546_v63  ;;  %5899 = vst [vmem:[#allocation55_spill] sm:$0xff] %v3567_v62  ;;  %v3574_v63 = vld [vmem:[%s5636_s1 + $0x1f4] ss:$24 sps:$4 sm:$0xff]  }
  0x6d   :  { %5900 = vst [vmem:[#allocation56_spill] sm:$0xff] %v3574_v63  ;;  %825 = vmatpush2.bf16.msra.mxu1 %v3174_v28 }
  0x6e   :  { %826 = vmatprep.subr.bf16.mxu1 %v3186_v30 }
  0x6f   :  { %721 = vmatpush2.bf16.msra.mxu0 %v3553_v1  ;;  %v3581_v1 = vld [vmem:[%s5636_s1 + $0x1f0] ss:$24 sps:$4 sm:$0xff]  }
  0x70   :  { %722 = vmatprep.subr.bf16.mxu0 %v3560_v59  ;;  %5901 = vst [vmem:[#allocation57_spill] sm:$0xff] %v3581_v1  ;;  %v3588_v59 = vld [vmem:[%s5636_s1 + $0x1c4] ss:$24 sps:$4 sm:$0xff]  }
  0x71   :  { %827 = vmatpush2.bf16.msra.mxu1 %v3198_v32 }
  0x72   :  { %828 = vmatprep.subr.bf16.mxu1 %v3210_v34 }
  0x73   :  { %723 = vmatpush2.bf16.msra.mxu0 %v3567_v62  ;;  %v3595_v62 = vld [vmem:[%s5636_s1 + $0x1c0] ss:$24 sps:$4 sm:$0xff]  }
  0x74   :  { %724 = vmatprep.subr.bf16.mxu0 %v3574_v63  ;;  %v3602_v63 = vld [vmem:[%s5636_s1 + $0x194] ss:$24 sps:$4 sm:$0xff]  }
  0x75   :  { %829 = vmatpush2.bf16.msra.mxu1 %v3222_v36 }
  0x76   :  { %830 = vmatprep.subr.bf16.mxu1 %v3234_v38 }
  0x77   :  { %725 = vmatpush2.bf16.msra.mxu0 %v3581_v1  ;;  %v3609_v1 = vld [vmem:[%s5636_s1 + $0x190] ss:$24 sps:$4 sm:$0xff]  }
  0x78   :  { %726 = vmatprep.subr.bf16.mxu0 %v3588_v59 }
  0x79   :  { %831 = vmatpush2.bf16.msra.mxu1 %v3246_v40 }
  0x7a   :  { %832 = vmatprep.subr.bf16.mxu1 %v3258_v42 }
  0x7b   :  { %727 = vmatpush2.bf16.msra.mxu0 %v3595_v62 }
  0x7c   :  { %728 = vmatprep.subr.bf16.mxu0 %v3602_v63 }
  0x7d   :  { %833 = vmatpush2.bf16.msra.mxu1 %v3270_v44 }
  0x7e   :  { %834 = vmatprep.subr.bf16.mxu1 %v3282_v46 }
  0x7f   :  { %729 = vmatpush2.bf16.msra.mxu0 %v3609_v1 }
  0x80   :  { %849 = vmatprep.subr.bf16.mxu0 %v3073_v11 }
  0x81   :  { %835 = vmatpush2.bf16.msra.mxu1 %v3294_v48 }
  0x82   :  { %731 = vmatmul.mubr.bf16.vlgmr.msra.gmra.mxu0 %v5875_v60  ;;  %836 = vmatprep.subr.bf16.mxu1 %v3306_v50  ;;  %v5902_v60 = vld [vmem:[#allocation22_spill] sm:$0xff] }
  0x83   :  { %850 = vmatpush1.bf16.msra.mxu0 %v3078_v12 }
  0x84   :  { %851 = vmatprep.subr.bf16.mxu0 %v3091_v14 }
  0x85   :  { %837 = vmatpush2.bf16.msra.mxu1 %v3318_v52 }
  0x86   :  { %838 = vmatprep.subr.bf16.mxu1 %v3330_v54 }
  0x87   :  { %852 = vmatpush1.bf16.msra.mxu0 %v3096_v15 }
  0x88   :  { %853 = vmatprep.subr.bf16.mxu0 %v3114_v18 }
  0x89   :  { %839 = vmatpush2.bf16.msra.mxu1 %v3342_v56 }
  0x8a   :  { %890 = vmatprep.subr.bf16.mxu1 %v3354_v58 }
  0x8b   :  { %854 = vmatpush1.bf16.msra.mxu0 %v3120_v19 }
  0x8c   :  { %855 = vmatprep.subr.bf16.mxu0 %v3132_v21 }
  0x8f   :  { %856 = vmatpush1.bf16.msra.mxu0 %v3144_v23 }
  0x90   :  { %857 = vmatprep.subr.bf16.mxu0 %v3156_v25 }
  0x93   :  { %858 = vmatpush1.bf16.msra.mxu0 %v3168_v27 }
  0x94   :  { %859 = vmatprep.subr.bf16.mxu0 %v3180_v29 }
  0x97   :  { %860 = vmatpush1.bf16.msra.mxu0 %v3192_v31 }
  0x98   :  { %861 = vmatprep.subr.bf16.mxu0 %v3204_v33 }
  0x9b   :  { %862 = vmatpush1.bf16.msra.mxu0 %v3216_v35  ;;  %v5903_v35 = vld [vmem:[#allocation23_spill] sm:$0xff] }
  0x9c   :  { %863 = vmatprep.subr.bf16.mxu0 %v3228_v37  ;;  %v5904_v37 = vld [vmem:[#allocation24_spill] sm:$0xff] }
  0x9f   :  { %864 = vmatpush1.bf16.msra.mxu0 %v3240_v39  ;;  %v5905_v39 = vld [vmem:[#allocation26_spill] sm:$0xff] }
  0xa0   :  { %865 = vmatprep.subr.bf16.mxu0 %v3252_v41  ;;  %v5906_v41 = vld [vmem:[#allocation28_spill] sm:$0xff] }
  0xa3   :  { %866 = vmatpush2.bf16.msra.mxu0 %v3264_v43  ;;  %v5907_v43 = vld [vmem:[#allocation30_spill] sm:$0xff] }
  0xa4   :  { %867 = vmatprep.subr.bf16.mxu0 %v3276_v45 }
  0xa7   :  { %868 = vmatpush2.bf16.msra.mxu0 %v3288_v47 }
  0xa8   :  { %869 = vmatprep.subr.bf16.mxu0 %v3300_v49 }
  0xab   :  { %870 = vmatpush2.bf16.msra.mxu0 %v3312_v51 }
  0xac   :  { %871 = vmatprep.subr.bf16.mxu0 %v3324_v53 }
  0xaf   :  { %872 = vmatpush2.bf16.msra.mxu0 %v5902_v60 }
  0xb0   :  { %873 = vmatprep.subr.bf16.mxu0 %v5903_v35 }
  0xb3   :  { %874 = vmatpush2.bf16.msra.mxu0 %v5904_v37 }
  0xb4   :  { %875 = vmatprep.subr.bf16.mxu0 %v5905_v39 }
  0xb7   :  { %876 = vmatpush2.bf16.msra.mxu0 %v5906_v41  ;;  %v125_v41 = vld [vmem:[%s5637_s0] sm:$0xff] }
  0xb8   :  { %877 = vmatprep.subr.bf16.mxu0 %v5907_v43  ;;  %v128_v43 = vunpack.c.l.bf16 %v125_v41 }
  0xbb   :  { %878 = vmatpush2.bf16.msra.mxu0 %v3410_v61  ;;  %v129_v61 = vunpack.c.h.bf16 %v125_v41 }
  0xbc   :  { %879 = vmatprep.subr.bf16.mxu0 %v3422_v55 }
  0xbf   :  { %880 = vmatpush2.bf16.msra.mxu0 %v3434_v57 }
  0xc0   :  { %990 = vmatprep.subr.bf16.mxu0 %v3013_v0  ;;  %v126_v0 = vld [vmem:[%s5637_s0 + $0x8] sm:$0xff] }
  0xc1   :  { %v131_v31 = vunpack.c.h.bf16 %v126_v0 }
 0x102   :  { %v650_v53 = vpop.f32.mrf.mxu0 }
 0x103   :  { %v739_v45 = vadd.f32 %v650_v53, %v128_v43  ;;  %v768_v43 = vlaneseq }
 0x104   :  { %v652_v60 = vpop.f32.mrf.mxu0 }
 0x105   :  { %v740_v55 = vadd.f32 %v652_v60, %v129_v61  ;;  %v2340_v33 = vmul.f32 -1.442695, %v739_v45  ;;  %v769_v53 = vshrl.u32 %v768_v43, 7 }
 0x106   :  { %v654_v51 = vpop.f32.mrf.mxu0 }
 0x107   :  { %v2341_v57 = vmul.f32 -1.442695, %v740_v55  ;;  %2627 = vpow2.f32 %v2340_v33  ;;  %v770_v61 = vsub.s32 0, %v769_v53  ;;  %v122_v33 = vld [vmem:[%s5638_s2] sm:$0x3] }
 0x108   :  { %v655_v35 = vpop.f32.mrf.mxu0 }
 0x109   :  { %v130_v35 = vunpack.c.l.bf16 %v126_v0  ;;  %2629 = vpow2.f32 %v2341_v57 }
 0x10c   :  { %v691_v49 = vpop.f32.mrf.mxu1 }
 0x10d   :  { %v753_v51 = vadd.f32 %v691_v49, %v130_v35  ;;  %v774_v49 = vsub.s32 1, %v769_v53 }
 0x10e   :  { %v693_v37 = vpop.f32.mrf.mxu1 }
 0x10f   :  { %v2342_v29 = vmul.f32 -1.442695, %v753_v51  ;;  %v754_v27 = vadd.f32 %v693_v37, %v131_v31  ;;  %v3667_v31 = vrot.slane %v122_v33, %v770_v61 }
 0x110   :  { %v695_v39 = vpop.f32.mrf.mxu1 }
 0x111   :  { %2631 = vpow2.f32 %v2342_v29  ;;  %v2343_v39 = vmul.f32 -1.442695, %v754_v27  ;;  %5908 = vst [vmem:[#allocation58_spill] sm:$0xff] %v3667_v31  ;;  %v3672_v29 = vrot.slane %v122_v33, %v774_v49 }
 0x112   :  { %v696_v47 = vpop.f32.mrf.mxu1 }
 0x113   :  { %2633 = vpow2.f32 %v2343_v39 }
 0x114   :  { %v2628_v25 = vpop.eup %2627 }
 0x115   :  { %v747_v41 = vadd.f32 1.0, %v2628_v25  ;;  %v127_v25 = vld [vmem:[%s5637_s0 + $0x10] sm:$0xff] }
 0x116   :  { %v2630_v47 = vpop.eup %2629  ;;  %v132_v0 = vunpack.c.l.bf16 %v127_v25 }
 0x117   :  { %v748_v45 = vadd.f32 1.0, %v2630_v47  ;;  %2635 = vrcp.f32 %v747_v41  ;;  %v133_v41 = vunpack.c.h.bf16 %v127_v25 }
 0x119   :  { %2637 = vrcp.f32 %v748_v45 }
 0x11e   :  { %v2632_v55 = vpop.eup %2631 }
 0x11f   :  { %v761_v57 = vadd.f32 1.0, %v2632_v55 }
 0x120   :  { %v2634_v27 = vpop.eup %2633 }
 0x121   :  { %2639 = vrcp.f32 %v761_v57  ;;  %v762_v60 = vadd.f32 1.0, %v2634_v27 }
 0x123   :  { %2641 = vrcp.f32 %v762_v60 }
 0x124   :  { %v2636_v51 = vpop.eup %2635 }
 0x126   :  { %v2638_v45 = vpop.eup %2637 }
 0x12e   :  { %v2640_v49 = vpop.eup %2639 }
 0x12f   :  { %v786_v57 = vsub.f32 1.0, %v2640_v49 }
 0x130   :  { %v2642_v27 = vpop.eup %2641 }
 0x142   :  { %v732_v37 = vpop.f32.mrf.mxu0 }
 0x143   :  { %v778_v35 = vadd.f32 %v3667_v31, %v732_v37  ;;  %v787_v37 = vsub.f32 1.0, %v2642_v27 }
 0x144   :  { %v734_v39 = vpop.f32.mrf.mxu0 }
 0x145   :  { %v780_v47 = vmul.f32 %v2636_v51, %v778_v35  ;;  %v779_v43 = vadd.f32 %v3672_v29, %v734_v39  ;;  %v790_v35 = vmul.f32 0.0, %v2640_v49  ;;  %v791_v51 = vmul.f32 0.0, %v2642_v27  ;;  %v5951_v49 = vld [vmem:[#allocation17_spill] sm:$0xff]  ;;  %v5953_v27 = vld [vmem:[#allocation19_spill] sm:$0xff] }
 0x146   :  { %v736_v53 = vpop.f32.mrf.mxu0 }
 0x147   :  { %v782_v61 = vadd.f32 %v780_v47, %v132_v0  ;;  %v781_v55 = vmul.f32 %v2638_v45, %v779_v43  ;;  %v5914_v0 = vld [vmem:[#allocation31_spill] sm:$0xff]  ;;  %v5915_v47 = vld [vmem:[#allocation33_spill] sm:$0xff] }
 0x148   :  { %v737_v23 = vpop.f32.mrf.mxu0  ;;  %v5917_v43 = vld [vmem:[#allocation37_spill] sm:$0xff] }
 0x149   :  { %2643 = vtanh.f32 %v782_v61  ;;  %v783_v33 = vadd.f32 %v781_v55, %v133_v41  ;;  %v5916_v41 = vld [vmem:[#allocation35_spill] sm:$0xff]  ;;  %v5943_v45 = vld [vmem:[#allocation9_spill] sm:$0xff]  ;;  %v5944_v61 = vld [vmem:[#allocation10_spill] sm:$0xff] }
 0x14a   :  { %v5949_v55 = vld [vmem:[#allocation15_spill] sm:$0xff] }
 0x14b   :  { %2645 = vtanh.f32 %v783_v33  ;;  %v5950_v33 = vld [vmem:[#allocation16_spill] sm:$0xff] }
 0x156   :  { %v2644_v21 = vpop.eup %2643 }
 0x157   :  { %v788_v31 = vmul.f32 %v2644_v21, %v786_v57  ;;  %v5911_v21 = vld [vmem:[#allocation25_spill] sm:$0xff]  ;;  %v5952_v57 = vld [vmem:[#allocation18_spill] sm:$0xff] }
 0x158   :  { %v2646_v19 = vpop.eup %2645 }
 0x159   :  { %v789_v25 = vmul.f32 %v2646_v19, %v787_v37  ;;  %v3676_v39 = vadd.f32 %v790_v35, %v788_v31  ;;  %v5912_v19 = vld [vmem:[#allocation27_spill] sm:$0xff]  ;;  %v5913_v31 = vld [vmem:[#allocation29_spill] sm:$0xff]  ;;  %v5954_v37 = vld [vmem:[#allocation20_spill] sm:$0xff] }
 0x15a   :  { %v5955_v35 = vld [vmem:[#allocation21_spill] sm:$0xff] }
 0x15b   :  { %5909 = vst [vmem:[#allocation59_spill] sm:$0xff] %v3676_v39  ;;  %v3678_v53 = vadd.f32 %v791_v51, %v789_v25  ;;  %v3684_v60 = vpack.c.bf16 %v3676_v39, %v3676_v39  ;;  %v5956_v25 = vld [vmem:[#allocation22_spill] sm:$0xff]  ;;  %v5957_v51 = vld [vmem:[#allocation23_spill] sm:$0xff] }
 0x15d   :  { %5910 = vst [vmem:[#allocation60_spill] sm:$0xff] %v3678_v53  ;;  %v807_v23 = vpack.c.bf16 %v3678_v53, %v3678_v53 }
 0x15f   :  { %840 = vmatprep.mubr.bf16.mxu1 %v807_v23  ;;  %881 = vmatprep.mubr.bf16.mxu0 %v807_v23 }
 0x160   :  { %841 = vmatmul.mubr.bf16.vlgmr.msra.gmra.mxu1 %v3684_v60  ;;  %882 = vmatmul.mubr.bf16.vlgmr.msra.gmra.mxu0 %v3684_v60 }
 0x161   :  { %891 = vmatpush1.bf16.msra.mxu1 %v5911_v21  ;;  %922 = vmatprep.mubr.bf16.mxu1 %v807_v23  ;;  %v5958_v23 = vld [vmem:[#allocation24_spill] sm:$0xff] }
 0x162   :  { %892 = vmatprep.subr.bf16.mxu1 %v5912_v19  ;;  %991 = vmatpush1.bf16.msra.mxu0 %v3020_v2  ;;  %v5918_v2 = vld [vmem:[#allocation38_spill] sm:$0xff] }
 0x163   :  { %992 = vmatprep.subr.bf16.mxu0 %v3026_v3  ;;  %v5919_v3 = vld [vmem:[#allocation39_spill] sm:$0xff] }
 0x165   :  { %893 = vmatpush1.bf16.msra.mxu1 %v5913_v31 }
 0x166   :  { %894 = vmatprep.subr.bf16.mxu1 %v5914_v0  ;;  %993 = vmatpush1.bf16.msra.mxu0 %v3032_v4  ;;  %v5920_v4 = vld [vmem:[#allocation40_spill] sm:$0xff] }
 0x167   :  { %994 = vmatprep.subr.bf16.mxu0 %v3038_v5  ;;  %v5921_v5 = vld [vmem:[#allocation41_spill] sm:$0xff] }
 0x169   :  { %895 = vmatpush1.bf16.msra.mxu1 %v5915_v47 }
 0x16a   :  { %896 = vmatprep.subr.bf16.mxu1 %v5916_v41  ;;  %995 = vmatpush1.bf16.msra.mxu0 %v3044_v6  ;;  %v5922_v6 = vld [vmem:[#allocation42_spill] sm:$0xff] }
 0x16b   :  { %996 = vmatprep.subr.bf16.mxu0 %v3050_v7  ;;  %v5923_v7 = vld [vmem:[#allocation43_spill] sm:$0xff] }
 0x16d   :  { %897 = vmatpush1.bf16.msra.mxu1 %v5917_v43 }
 0x16e   :  { %898 = vmatprep.subr.bf16.mxu1 %v5918_v2  ;;  %997 = vmatpush1.bf16.msra.mxu0 %v3056_v8  ;;  %v5924_v8 = vld [vmem:[#allocation44_spill] sm:$0xff] }
 0x16f   :  { %998 = vmatprep.subr.bf16.mxu0 %v3062_v9  ;;  %v5925_v9 = vld [vmem:[#allocation45_spill] sm:$0xff] }
 0x171   :  { %899 = vmatpush1.bf16.msra.mxu1 %v5919_v3 }
 0x172   :  { %900 = vmatprep.subr.bf16.mxu1 %v5920_v4  ;;  %999 = vmatpush1.bf16.msra.mxu0 %v3067_v10  ;;  %v5926_v10 = vld [vmem:[#allocation46_spill] sm:$0xff] }
 0x173   :  { %1000 = vmatprep.subr.bf16.mxu0 %v3084_v13  ;;  %v5927_v13 = vld [vmem:[#allocation47_spill] sm:$0xff] }
 0x175   :  { %901 = vmatpush1.bf16.msra.mxu1 %v5921_v5 }
 0x176   :  { %902 = vmatprep.subr.bf16.mxu1 %v5922_v6  ;;  %1001 = vmatpush1.bf16.msra.mxu0 %v3102_v16  ;;  %v5928_v16 = vld [vmem:[#allocation48_spill] sm:$0xff] }
 0x177   :  { %1002 = vmatprep.subr.bf16.mxu0 %v3107_v17  ;;  %v5929_v17 = vld [vmem:[#allocation49_spill] sm:$0xff] }
 0x179   :  { %903 = vmatpush1.bf16.msra.mxu1 %v5923_v7 }
 0x17a   :  { %904 = vmatprep.subr.bf16.mxu1 %v5924_v8  ;;  %1003 = vmatpush1.bf16.msra.mxu0 %v3126_v20  ;;  %v5930_v20 = vld [vmem:[#allocation50_spill] sm:$0xff] }
 0x17b   :  { %1004 = vmatprep.subr.bf16.mxu0 %v3138_v22  ;;  %v5931_v22 = vld [vmem:[#allocation51_spill] sm:$0xff] }
 0x17d   :  { %905 = vmatpush1.bf16.msra.mxu1 %v5925_v9 }
 0x17e   :  { %906 = vmatprep.subr.bf16.mxu1 %v5926_v10  ;;  %1005 = vmatpush1.bf16.msra.mxu0 %v3150_v24  ;;  %v5932_v24 = vld [vmem:[#allocation52_spill] sm:$0xff] }
 0x17f   :  { %1006 = vmatprep.subr.bf16.mxu0 %v3162_v26  ;;  %v5933_v26 = vld [vmem:[#allocation53_spill] sm:$0xff] }
 0x181   :  { %907 = vmatpush2.bf16.msra.mxu1 %v5927_v13 }
 0x182   :  { %908 = vmatprep.subr.bf16.mxu1 %v5928_v16  ;;  %1007 = vmatpush2.bf16.msra.mxu0 %v3174_v28  ;;  %v5934_v28 = vld [vmem:[#allocation54_spill] sm:$0xff] }
 0x183   :  { %1008 = vmatprep.subr.bf16.mxu0 %v3186_v30  ;;  %v5935_v30 = vld [vmem:[#allocation55_spill] sm:$0xff] }
 0x185   :  { %909 = vmatpush2.bf16.msra.mxu1 %v5929_v17 }
 0x186   :  { %910 = vmatprep.subr.bf16.mxu1 %v5930_v20  ;;  %1009 = vmatpush2.bf16.msra.mxu0 %v3198_v32  ;;  %v5936_v32 = vld [vmem:[#allocation56_spill] sm:$0xff] }
 0x187   :  { %1010 = vmatprep.subr.bf16.mxu0 %v3210_v34  ;;  %v5937_v34 = vld [vmem:[#allocation57_spill] sm:$0xff] }
 0x189   :  { %911 = vmatpush2.bf16.msra.mxu1 %v5931_v22 }
 0x18a   :  { %912 = vmatprep.subr.bf16.mxu1 %v5932_v24  ;;  %1011 = vmatpush2.bf16.msra.mxu0 %v3222_v36  ;;  %v5938_v36 = vld [vmem:[#allocation4_spill] sm:$0xff] }
 0x18b   :  { %1012 = vmatprep.subr.bf16.mxu0 %v3234_v38  ;;  %v5939_v38 = vld [vmem:[#allocation5_spill] sm:$0xff] }
 0x18d   :  { %913 = vmatpush2.bf16.msra.mxu1 %v5933_v26 }
 0x18e   :  { %914 = vmatprep.subr.bf16.mxu1 %v5934_v28  ;;  %1013 = vmatpush2.bf16.msra.mxu0 %v3246_v40  ;;  %v5940_v40 = vld [vmem:[#allocation6_spill] sm:$0xff] }
 0x18f   :  { %1014 = vmatprep.subr.bf16.mxu0 %v3258_v42  ;;  %v5942_v42 = vld [vmem:[#allocation8_spill] sm:$0xff] }
 0x191   :  { %915 = vmatpush2.bf16.msra.mxu1 %v5935_v30 }
 0x192   :  { %916 = vmatprep.subr.bf16.mxu1 %v5936_v32  ;;  %1015 = vmatpush2.bf16.msra.mxu0 %v3270_v44 }
 0x193   :  { %1016 = vmatprep.subr.bf16.mxu0 %v3282_v46 }
 0x195   :  { %917 = vmatpush2.bf16.msra.mxu1 %v5937_v34 }
 0x196   :  { %918 = vmatprep.subr.bf16.mxu1 %v3588_v59  ;;  %1017 = vmatpush2.bf16.msra.mxu0 %v3294_v48 }
 0x197   :  { %1018 = vmatprep.subr.bf16.mxu0 %v3306_v50 }
 0x199   :  { %919 = vmatpush2.bf16.msra.mxu1 %v3595_v62 }
 0x19a   :  { %920 = vmatprep.subr.bf16.mxu1 %v3602_v63  ;;  %1019 = vmatpush2.bf16.msra.mxu0 %v3318_v52 }
 0x19b   :  { %1020 = vmatprep.subr.bf16.mxu0 %v3330_v54 }
 0x19d   :  { %921 = vmatpush2.bf16.msra.mxu1 %v3609_v1 }
 0x19e   :  { %1031 = vmatprep.subr.bf16.mxu1 %v3073_v11  ;;  %1021 = vmatpush2.bf16.msra.mxu0 %v3342_v56  ;;  %v5941_v11 = vld [vmem:[#allocation7_spill] sm:$0xff] }
 0x19f   :  { %1072 = vmatprep.subr.bf16.mxu0 %v3354_v58 }
 0x1a0   :  { %923 = vmatmul.mubr.bf16.vlgmr.msra.gmra.mxu1 %v3684_v60  ;;  %v5959_v60 = vld [vmem:[#allocation26_spill] sm:$0xff] }
 0x1a1   :  { %1032 = vmatpush1.bf16.msra.mxu1 %v3078_v12  ;;  %v5945_v12 = vld [vmem:[#allocation11_spill] sm:$0xff] }
 0x1a2   :  { %1033 = vmatprep.subr.bf16.mxu1 %v3091_v14  ;;  %v5946_v14 = vld [vmem:[#allocation12_spill] sm:$0xff] }
 0x1a5   :  { %1034 = vmatpush1.bf16.msra.mxu1 %v3096_v15  ;;  %v5947_v15 = vld [vmem:[#allocation13_spill] sm:$0xff] }
 0x1a6   :  { %1035 = vmatprep.subr.bf16.mxu1 %v3114_v18  ;;  %v5948_v18 = vld [vmem:[#allocation14_spill] sm:$0xff] }
 0x1a9   :  { %1036 = vmatpush1.bf16.msra.mxu1 %v5938_v36  ;;  %v5960_v36 = vld [vmem:[#allocation28_spill] sm:$0xff] }
 0x1aa   :  { %1037 = vmatprep.subr.bf16.mxu1 %v5939_v38  ;;  %v5961_v38 = vld [vmem:[#allocation30_spill] sm:$0xff] }
 0x1ad   :  { %1038 = vmatpush1.bf16.msra.mxu1 %v5940_v40  ;;  %v5962_v40 = vld [vmem:[#allocation32_spill] sm:$0xff] }
 0x1ae   :  { %1039 = vmatprep.subr.bf16.mxu1 %v5941_v11  ;;  %v5963_v11 = vld [vmem:[#allocation34_spill] sm:$0xff] }
 0x1b1   :  { %1040 = vmatpush1.bf16.msra.mxu1 %v5942_v42  ;;  %v5964_v42 = vld [vmem:[#allocation36_spill] sm:$0xff] }
 0x1b2   :  { %1041 = vmatprep.subr.bf16.mxu1 %v5943_v45  ;;  %v3787_v45 = vld [vmem:[%s5636_s1 + $0x154] ss:$24 sps:$4 sm:$0xff]  }
 0x1b3   :  { %5965 = vst [vmem:[#allocation25_spill] sm:$0xff] %v3787_v45 }
 0x1b5   :  { %1042 = vmatpush1.bf16.msra.mxu1 %v5944_v61 }
 0x1b6   :  { %1043 = vmatprep.subr.bf16.mxu1 %v5945_v12 }
 0x1b9   :  { %1044 = vmatpush1.bf16.msra.mxu1 %v5946_v14 }
 0x1ba   :  { %1045 = vmatprep.subr.bf16.mxu1 %v5947_v15 }
 0x1bd   :  { %1046 = vmatpush1.bf16.msra.mxu1 %v5948_v18 }
 0x1be   :  { %1047 = vmatprep.subr.bf16.mxu1 %v5949_v55 }
 0x1c1   :  { %1048 = vmatpush2.bf16.msra.mxu1 %v5950_v33 }
 0x1c2   :  { %1049 = vmatprep.subr.bf16.mxu1 %v5951_v49 }
 0x1c5   :  { %1050 = vmatpush2.bf16.msra.mxu1 %v5952_v57  ;;  %v2344_v57 = vld [vmem:[%s5637_s0 + $0x18] sm:$0xff] }
 0x1c6   :  { %1051 = vmatprep.subr.bf16.mxu1 %v5953_v27  ;;  %v800_v27 = vunpack.c.l.bf16 %v2344_v57 }
 0x1c9   :  { %1052 = vmatpush2.bf16.msra.mxu1 %v5954_v37  ;;  %v801_v37 = vunpack.c.h.bf16 %v2344_v57 }
 0x1ca   :  { %1053 = vmatprep.subr.bf16.mxu1 %v5955_v35 }
 0x1cd   :  { %1054 = vmatpush2.bf16.msra.mxu1 %v5956_v25 }
 0x1ce   :  { %1055 = vmatprep.subr.bf16.mxu1 %v5957_v51 }
 0x1d1   :  { %1056 = vmatpush2.bf16.msra.mxu1 %v5958_v23 }
 0x1d2   :  { %1057 = vmatprep.subr.bf16.mxu1 %v5959_v60 }
 0x1d5   :  { %1058 = vmatpush2.bf16.msra.mxu1 %v5960_v36 }
 0x1d6   :  { %1059 = vmatprep.subr.bf16.mxu1 %v5961_v38 }
 0x1d9   :  { %1060 = vmatpush2.bf16.msra.mxu1 %v5962_v40 }
 0x1da   :  { %1061 = vmatprep.subr.bf16.mxu1 %v5963_v11 }
 0x1dd   :  { %1062 = vmatpush2.bf16.msra.mxu1 %v5964_v42 }
 0x1de   :  { %1172 = vmatprep.subr.bf16.mxu1 %v3787_v45  ;;  %v2345_v45 = vld [vmem:[%s5637_s0 + $0x20] sm:$0xff] }
 0x1df   :  { %v802_v38 = vunpack.c.l.bf16 %v2345_v45 }
 0x220   :  { %v842_v61 = vpop.f32.mrf.mxu1  ;;  %v883_v12 = vpop.f32.mrf.mxu0 }
 0x221   :  { %v931_v35 = vadd.f32 %v842_v61, %v800_v27 }
 0x222   :  { %v844_v14 = vpop.f32.mrf.mxu1  ;;  %v885_v15 = vpop.f32.mrf.mxu0 }
 0x223   :  { %v932_v42 = vadd.f32 %v844_v14, %v801_v37  ;;  %v2347_v11 = vmul.f32 -1.442695, %v931_v35 }
 0x224   :  { %v846_v18 = vpop.f32.mrf.mxu1  ;;  %v887_v55 = vpop.f32.mrf.mxu0 }
 0x225   :  { %v2348_v40 = vmul.f32 -1.442695, %v932_v42  ;;  %2647 = vpow2.f32 %v2347_v11  ;;  %v803_v18 = vunpack.c.h.bf16 %v2345_v45  ;;  %v945_v55 = vadd.f32 %v883_v12, %v802_v38  ;;  %v2346_v11 = vld [vmem:[%s5637_s0 + $0x28] sm:$0xff] }
 0x226   :  { %v847_v33 = vpop.f32.mrf.mxu1  ;;  %v888_v49 = vpop.f32.mrf.mxu0  ;;  %v804_v12 = vunpack.c.l.bf16 %v2346_v11 }
 0x227   :  { %2649 = vpow2.f32 %v2348_v40  ;;  %v946_v33 = vadd.f32 %v885_v15, %v803_v18  ;;  %v2349_v49 = vmul.f32 -1.442695, %v945_v55  ;;  %v5966_v15 = vld [vmem:[#allocation58_spill] sm:$0xff] }
 0x229   :  { %v2350_v36 = vmul.f32 -1.442695, %v946_v33  ;;  %2651 = vpow2.f32 %v2349_v49 }
 0x22b   :  { %2653 = vpow2.f32 %v2350_v36  ;;  %v805_v36 = vunpack.c.h.bf16 %v2346_v11 }
 0x232   :  { %v2648_v60 = vpop.eup %2647 }
 0x233   :  { %v939_v57 = vadd.f32 1.0, %v2648_v60 }
 0x234   :  { %v2650_v23 = vpop.eup %2649 }
 0x235   :  { %v940_v61 = vadd.f32 1.0, %v2650_v23  ;;  %2655 = vrcp.f32 %v939_v57 }
 0x236   :  { %v2652_v42 = vpop.eup %2651 }
 0x237   :  { %2657 = vrcp.f32 %v940_v61  ;;  %v953_v40 = vadd.f32 1.0, %v2652_v42 }
 0x238   :  { %v2654_v14 = vpop.eup %2653 }
 0x239   :  { %v954_v38 = vadd.f32 1.0, %v2654_v14  ;;  %2659 = vrcp.f32 %v953_v40 }
 0x23b   :  { %2661 = vrcp.f32 %v954_v38 }
 0x242   :  { %v2656_v37 = vpop.eup %2655 }
 0x244   :  { %v2658_v18 = vpop.eup %2657 }
 0x246   :  { %v2660_v42 = vpop.eup %2659 }
 0x247   :  { %v967_v51 = vsub.f32 1.0, %v2660_v42  ;;  %v971_v11 = vmul.f32 %v2660_v42, %v3676_v39  ;;  %v6000_v42 = vld [vmem:[#allocation26_spill] sm:$0xff] }
 0x248   :  { %v2662_v14 = vpop.eup %2661 }
 0x260   :  { %v924_v45 = vpop.f32.mrf.mxu1 }
 0x261   :  { %v959_v27 = vadd.f32 %v924_v45, %v5966_v15  ;;  %v968_v15 = vsub.f32 1.0, %v2662_v14 }
 0x262   :  { %v926_v35 = vpop.f32.mrf.mxu1 }
 0x263   :  { %v961_v60 = vmul.f32 %v2656_v37, %v959_v27  ;;  %v960_v23 = vadd.f32 %v926_v35, %v3672_v29  ;;  %v972_v37 = vmul.f32 %v2662_v14, %v3678_v53  ;;  %v6001_v14 = vld [vmem:[#allocation28_spill] sm:$0xff] }
 0x264   :  { %v928_v55 = vpop.f32.mrf.mxu1 }
 0x265   :  { %v963_v33 = vadd.f32 %v961_v60, %v804_v12  ;;  %v962_v49 = vmul.f32 %v2658_v18, %v960_v23  ;;  %v4116_v23 = vld [vmem:[%s5636_s1 + $0x2a8] ss:$24 sps:$4 sm:$0xff]   ;;  %v4122_v18 = vld [vmem:[%s5636_s1 + $0x27c] ss:$24 sps:$4 sm:$0xff]   ;;  %v4128_v55 = vld [vmem:[%s5636_s1 + $0x278] ss:$24 sps:$4 sm:$0xff]  }
 0x266   :  { %v929_v57 = vpop.f32.mrf.mxu1  ;;  %5993 = vst [vmem:[#allocation4_spill] sm:$0xff] %v4116_v23  ;;  %5994 = vst [vmem:[#allocation5_spill] sm:$0xff] %v4122_v18 }
 0x267   :  { %2663 = vtanh.f32 %v963_v33  ;;  %v964_v61 = vadd.f32 %v962_v49, %v805_v36  ;;  %v4110_v36 = vld [vmem:[%s5636_s1 + $0x2ac] ss:$24 sps:$4 sm:$0xff]   ;;  %5995 = vst [vmem:[#allocation6_spill] sm:$0xff] %v4128_v55  ;;  %v5997_v49 = vld [vmem:[#allocation22_spill] sm:$0xff]  ;;  %v5998_v57 = vld [vmem:[#allocation23_spill] sm:$0xff] }
 0x268   :  { %5992 = vst [vmem:[#allocation57_spill] sm:$0xff] %v4110_v36  ;;  %v4134_v33 = vld [vmem:[%s5636_s1 + $0x24c] ss:$24 sps:$4 sm:$0xff]  }
 0x269   :  { %2665 = vtanh.f32 %v964_v61  ;;  %5996 = vst [vmem:[#allocation7_spill] sm:$0xff] %v4134_v33  ;;  %v5999_v61 = vld [vmem:[#allocation24_spill] sm:$0xff] }
 0x274   :  { %v2664_v45 = vpop.eup %2663 }
 0x275   :  { %v969_v25 = vmul.f32 %v2664_v45, %v967_v51  ;;  %v3826_v51 = vld [vmem:[%s5636_s1 + $0x124] ss:$24 sps:$4 sm:$0xff]   ;;  %v6002_v45 = vld [vmem:[#allocation30_spill] sm:$0xff] }
 0x276   :  { %v2666_v40 = vpop.eup %2665 }
 0x277   :  { %v970_v27 = vmul.f32 %v2666_v40, %v968_v15  ;;  %v3803_v35 = vadd.f32 %v971_v11, %v969_v25  ;;  %v3820_v25 = vld [vmem:[%s5636_s1 + $0x150] ss:$24 sps:$4 sm:$0xff]   ;;  %v6003_v40 = vld [vmem:[#allocation32_spill] sm:$0xff] }
 0x278   :  { %v4104_v15 = vld [vmem:[%s5636_s1 + $0x2d8] ss:$24 sps:$4 sm:$0xff]  }
 0x279   :  { %5967 = vst [vmem:[#allocation27_spill] sm:$0xff] %v3803_v35  ;;  %v3805_v38 = vadd.f32 %v972_v37, %v970_v27  ;;  %v3811_v60 = vpack.c.bf16 %v3803_v35, %v3803_v35  ;;  %5991 = vst [vmem:[#allocation56_spill] sm:$0xff] %v4104_v15  ;;  %v6004_v11 = vld [vmem:[#allocation34_spill] sm:$0xff]  ;;  %v6005_v27 = vld [vmem:[#allocation36_spill] sm:$0xff] }
 0x27a   :  { %v6006_v37 = vld [vmem:[#allocation25_spill] sm:$0xff] }
 0x27b   :  { %5968 = vst [vmem:[#allocation29_spill] sm:$0xff] %v3805_v38  ;;  %v989_v12 = vpack.c.bf16 %v3805_v38, %v3805_v38 }
 0x27d   :  { %1022 = vmatprep.mubr.bf16.mxu0 %v989_v12  ;;  %1063 = vmatprep.mubr.bf16.mxu1 %v989_v12 }
 0x27e   :  { %1023 = vmatmul.mubr.bf16.vlgmr.msra.gmra.mxu0 %v3811_v60  ;;  %1064 = vmatmul.mubr.bf16.vlgmr.msra.gmra.mxu1 %v3811_v60 }
 0x27f   :  { %1073 = vmatpush1.bf16.msra.mxu0 %v5911_v21  ;;  %1104 = vmatprep.mubr.bf16.mxu0 %v989_v12  ;;  %v3834_v21 = vld [vmem:[%s5636_s1 + $0x120] ss:$24 sps:$4 sm:$0xff]  }
 0x280   :  { %1074 = vmatprep.subr.bf16.mxu0 %v5912_v19  ;;  %1173 = vmatpush1.bf16.msra.mxu1 %v3820_v25  ;;  %v3840_v19 = vld [vmem:[%s5636_s1 + $0xf4] ss:$24 sps:$4 sm:$0xff]  }
 0x281   :  { %1174 = vmatprep.subr.bf16.mxu1 %v3826_v51 }
 0x283   :  { %1075 = vmatpush1.bf16.msra.mxu0 %v5913_v31  ;;  %v3848_v31 = vld [vmem:[%s5636_s1 + $0xf0] ss:$24 sps:$4 sm:$0xff]  }
 0x284   :  { %1076 = vmatprep.subr.bf16.mxu0 %v5914_v0  ;;  %1175 = vmatpush1.bf16.msra.mxu1 %v3834_v21  ;;  %v3854_v0 = vld [vmem:[%s5636_s1 + $0xc4] ss:$24 sps:$4 sm:$0xff]  }
 0x285   :  { %1176 = vmatprep.subr.bf16.mxu1 %v3840_v19 }
 0x287   :  { %1077 = vmatpush1.bf16.msra.mxu0 %v5915_v47  ;;  %v3862_v47 = vld [vmem:[%s5636_s1 + $0xc0] ss:$24 sps:$4 sm:$0xff]  }
 0x288   :  { %1078 = vmatprep.subr.bf16.mxu0 %v5916_v41  ;;  %1177 = vmatpush1.bf16.msra.mxu1 %v3848_v31  ;;  %v3868_v41 = vld [vmem:[%s5636_s1 + $0x94] ss:$24 sps:$4 sm:$0xff]  }
 0x289   :  { %1178 = vmatprep.subr.bf16.mxu1 %v3854_v0 }
 0x28b   :  { %1079 = vmatpush1.bf16.msra.mxu0 %v5917_v43  ;;  %v3876_v43 = vld [vmem:[%s5636_s1 + $0x90] ss:$24 sps:$4 sm:$0xff]  }
 0x28c   :  { %1080 = vmatprep.subr.bf16.mxu0 %v5918_v2  ;;  %1179 = vmatpush1.bf16.msra.mxu1 %v3862_v47  ;;  %v3882_v2 = vld [vmem:[%s5636_s1 + $0x64] ss:$24 sps:$4 sm:$0xff]  }
 0x28d   :  { %1180 = vmatprep.subr.bf16.mxu1 %v3868_v41 }
 0x28f   :  { %1081 = vmatpush1.bf16.msra.mxu0 %v5919_v3  ;;  %v3890_v3 = vld [vmem:[%s5636_s1 + $0x60] ss:$24 sps:$4 sm:$0xff]  }
 0x290   :  { %1082 = vmatprep.subr.bf16.mxu0 %v5920_v4  ;;  %1181 = vmatpush1.bf16.msra.mxu1 %v3876_v43  ;;  %v3896_v4 = vld [vmem:[%s5636_s1 + $0x34] ss:$24 sps:$4 sm:$0xff]  }
 0x291   :  { %1182 = vmatprep.subr.bf16.mxu1 %v3882_v2 }
 0x293   :  { %1083 = vmatpush1.bf16.msra.mxu0 %v5921_v5  ;;  %v3904_v5 = vld [vmem:[%s5636_s1 + $0x30] ss:$24 sps:$4 sm:$0xff]  }
 0x294   :  { %1084 = vmatprep.subr.bf16.mxu0 %v5922_v6  ;;  %1183 = vmatpush1.bf16.msra.mxu1 %v3890_v3  ;;  %v3910_v6 = vld [vmem:[%s5636_s1 + $0x4] ss:$24 sps:$4 sm:$0xff]  }
 0x295   :  { %1184 = vmatprep.subr.bf16.mxu1 %v3896_v4 }
 0x297   :  { %1085 = vmatpush1.bf16.msra.mxu0 %v5923_v7  ;;  %v3918_v7 = vld [vmem:[%s5636_s1] ss:$24 sps:$4 sm:$0xff]  }
 0x298   :  { %1086 = vmatprep.subr.bf16.mxu0 %v5924_v8  ;;  %1185 = vmatpush1.bf16.msra.mxu1 %v3904_v5  ;;  %v3924_v8 = vld [vmem:[%s5636_s1 + $0x2d4] ss:$24 sps:$4 sm:$0xff]  }
 0x299   :  { %1186 = vmatprep.subr.bf16.mxu1 %v3910_v6 }
 0x29b   :  { %1087 = vmatpush1.bf16.msra.mxu0 %v5925_v9  ;;  %v3932_v9 = vld [vmem:[%s5636_s1 + $0x2d0] ss:$24 sps:$4 sm:$0xff]  }
 0x29c   :  { %1088 = vmatprep.subr.bf16.mxu0 %v5926_v10  ;;  %1187 = vmatpush1.bf16.msra.mxu1 %v3918_v7  ;;  %v3938_v10 = vld [vmem:[%s5636_s1 + $0x2a4] ss:$24 sps:$4 sm:$0xff]  }
 0x29d   :  { %1188 = vmatprep.subr.bf16.mxu1 %v3924_v8 }
 0x29f   :  { %1089 = vmatpush2.bf16.msra.mxu0 %v5927_v13  ;;  %v3946_v13 = vld [vmem:[%s5636_s1 + $0x2a0] ss:$24 sps:$4 sm:$0xff]  }
 0x2a0   :  { %1090 = vmatprep.subr.bf16.mxu0 %v5928_v16  ;;  %1189 = vmatpush2.bf16.msra.mxu1 %v3932_v9  ;;  %v3952_v16 = vld [vmem:[%s5636_s1 + $0x274] ss:$24 sps:$4 sm:$0xff]  }
 0x2a1   :  { %1190 = vmatprep.subr.bf16.mxu1 %v3938_v10  ;;  %5969 = vst [vmem:[#allocation31_spill] sm:$0xff] %v3952_v16 }
 0x2a3   :  { %1091 = vmatpush2.bf16.msra.mxu0 %v5929_v17  ;;  %v3960_v17 = vld [vmem:[%s5636_s1 + $0x270] ss:$24 sps:$4 sm:$0xff]  }
 0x2a4   :  { %1092 = vmatprep.subr.bf16.mxu0 %v5930_v20  ;;  %1191 = vmatpush2.bf16.msra.mxu1 %v3946_v13  ;;  %5970 = vst [vmem:[#allocation33_spill] sm:$0xff] %v3960_v17  ;;  %v3966_v20 = vld [vmem:[%s5636_s1 + $0x244] ss:$24 sps:$4 sm:$0xff]  }
 0x2a5   :  { %1192 = vmatprep.subr.bf16.mxu1 %v3952_v16  ;;  %5971 = vst [vmem:[#allocation35_spill] sm:$0xff] %v3966_v20 }
 0x2a7   :  { %1093 = vmatpush2.bf16.msra.mxu0 %v5931_v22  ;;  %v3974_v22 = vld [vmem:[%s5636_s1 + $0x240] ss:$24 sps:$4 sm:$0xff]  }
 0x2a8   :  { %1094 = vmatprep.subr.bf16.mxu0 %v5932_v24  ;;  %1193 = vmatpush2.bf16.msra.mxu1 %v3960_v17  ;;  %5972 = vst [vmem:[#allocation37_spill] sm:$0xff] %v3974_v22  ;;  %v3980_v24 = vld [vmem:[%s5636_s1 + $0x214] ss:$24 sps:$4 sm:$0xff]  }
 0x2a9   :  { %1194 = vmatprep.subr.bf16.mxu1 %v3966_v20  ;;  %5973 = vst [vmem:[#allocation38_spill] sm:$0xff] %v3980_v24 }
 0x2ab   :  { %1095 = vmatpush2.bf16.msra.mxu0 %v5933_v26  ;;  %v4074_v26 = vld [vmem:[%s5636_s1 + $0x3c] ss:$24 sps:$4 sm:$0xff]  }
 0x2ac   :  { %1096 = vmatprep.subr.bf16.mxu0 %v5934_v28  ;;  %1195 = vmatpush2.bf16.msra.mxu1 %v3974_v22  ;;  %5986 = vst [vmem:[#allocation51_spill] sm:$0xff] %v4074_v26  ;;  %v4080_v28 = vld [vmem:[%s5636_s1 + $0x38] ss:$24 sps:$4 sm:$0xff]  }
 0x2ad   :  { %1196 = vmatprep.subr.bf16.mxu1 %v3980_v24  ;;  %5987 = vst [vmem:[#allocation52_spill] sm:$0xff] %v4080_v28 }
 0x2af   :  { %1097 = vmatpush2.bf16.msra.mxu0 %v5935_v30  ;;  %v4086_v30 = vld [vmem:[%s5636_s1 + $0xc] ss:$24 sps:$4 sm:$0xff]  }
 0x2b0   :  { %1098 = vmatprep.subr.bf16.mxu0 %v5936_v32  ;;  %1197 = vmatpush2.bf16.msra.mxu1 %v3270_v44  ;;  %v3999_v44 = vld [vmem:[%s5636_s1 + $0x15c] ss:$24 sps:$4 sm:$0xff]   ;;  %5988 = vst [vmem:[#allocation53_spill] sm:$0xff] %v4086_v30  ;;  %v4092_v32 = vld [vmem:[%s5636_s1 + $0x8] ss:$24 sps:$4 sm:$0xff]  }
 0x2b1   :  { %1198 = vmatprep.subr.bf16.mxu1 %v3282_v46  ;;  %5974 = vst [vmem:[#allocation39_spill] sm:$0xff] %v3999_v44  ;;  %v4008_v46 = vld [vmem:[%s5636_s1 + $0x158] ss:$24 sps:$4 sm:$0xff]   ;;  %5989 = vst [vmem:[#allocation54_spill] sm:$0xff] %v4092_v32 }
 0x2b2   :  { %5975 = vst [vmem:[#allocation40_spill] sm:$0xff] %v4008_v46 }
 0x2b3   :  { %1099 = vmatpush2.bf16.msra.mxu0 %v5937_v34  ;;  %v4098_v34 = vld [vmem:[%s5636_s1 + $0x2dc] ss:$24 sps:$4 sm:$0xff]  }
 0x2b4   :  { %1100 = vmatprep.subr.bf16.mxu0 %v3588_v59  ;;  %1199 = vmatpush2.bf16.msra.mxu1 %v3294_v48  ;;  %v4020_v48 = vld [vmem:[%s5636_s1 + $0x128] ss:$24 sps:$4 sm:$0xff]   ;;  %v4056_v59 = vld [vmem:[%s5636_s1 + $0x98] ss:$24 sps:$4 sm:$0xff]   ;;  %5990 = vst [vmem:[#allocation55_spill] sm:$0xff] %v4098_v34 }
 0x2b5   :  { %1200 = vmatprep.subr.bf16.mxu1 %v3306_v50  ;;  %5977 = vst [vmem:[#allocation42_spill] sm:$0xff] %v4020_v48  ;;  %v4026_v50 = vld [vmem:[%s5636_s1 + $0xfc] ss:$24 sps:$4 sm:$0xff]   ;;  %5983 = vst [vmem:[#allocation48_spill] sm:$0xff] %v4056_v59 }
 0x2b6   :  { %5978 = vst [vmem:[#allocation43_spill] sm:$0xff] %v4026_v50 }
 0x2b7   :  { %1101 = vmatpush2.bf16.msra.mxu0 %v3595_v62  ;;  %v4062_v62 = vld [vmem:[%s5636_s1 + $0x6c] ss:$24 sps:$4 sm:$0xff]  }
 0x2b8   :  { %1102 = vmatprep.subr.bf16.mxu0 %v3602_v63  ;;  %1201 = vmatpush2.bf16.msra.mxu1 %v3318_v52  ;;  %v4032_v52 = vld [vmem:[%s5636_s1 + $0xf8] ss:$24 sps:$4 sm:$0xff]   ;;  %5984 = vst [vmem:[#allocation49_spill] sm:$0xff] %v4062_v62  ;;  %v4068_v63 = vld [vmem:[%s5636_s1 + $0x68] ss:$24 sps:$4 sm:$0xff]  }
 0x2b9   :  { %1202 = vmatprep.subr.bf16.mxu1 %v3330_v54  ;;  %5979 = vst [vmem:[#allocation44_spill] sm:$0xff] %v4032_v52  ;;  %v4038_v54 = vld [vmem:[%s5636_s1 + $0xcc] ss:$24 sps:$4 sm:$0xff]   ;;  %5985 = vst [vmem:[#allocation50_spill] sm:$0xff] %v4068_v63 }
 0x2ba   :  { %5980 = vst [vmem:[#allocation45_spill] sm:$0xff] %v4038_v54 }
 0x2bb   :  { %1103 = vmatpush2.bf16.msra.mxu0 %v3609_v1  ;;  %v4014_v1 = vld [vmem:[%s5636_s1 + $0x12c] ss:$24 sps:$4 sm:$0xff]  }
 0x2bc   :  { %1213 = vmatprep.subr.bf16.mxu0 %v3999_v44  ;;  %1203 = vmatpush2.bf16.msra.mxu1 %v3342_v56  ;;  %5976 = vst [vmem:[#allocation41_spill] sm:$0xff] %v4014_v1  ;;  %v4044_v56 = vld [vmem:[%s5636_s1 + $0xc8] ss:$24 sps:$4 sm:$0xff]  }
 0x2bd   :  { %1254 = vmatprep.subr.bf16.mxu1 %v3354_v58  ;;  %5981 = vst [vmem:[#allocation46_spill] sm:$0xff] %v4044_v56  ;;  %v4050_v58 = vld [vmem:[%s5636_s1 + $0x9c] ss:$24 sps:$4 sm:$0xff]  }
 0x2be   :  { %1105 = vmatmul.mubr.bf16.vlgmr.msra.gmra.mxu0 %v3811_v60  ;;  %5982 = vst [vmem:[#allocation47_spill] sm:$0xff] %v4050_v58 }
 0x2bf   :  { %1214 = vmatpush1.bf16.msra.mxu0 %v4008_v46 }
 0x2c0   :  { %1215 = vmatprep.subr.bf16.mxu0 %v4014_v1 }
 0x2c3   :  { %1216 = vmatpush1.bf16.msra.mxu0 %v4020_v48 }
 0x2c4   :  { %1217 = vmatprep.subr.bf16.mxu0 %v4026_v50 }
 0x2c7   :  { %1218 = vmatpush1.bf16.msra.mxu0 %v4032_v52 }
 0x2c8   :  { %1219 = vmatprep.subr.bf16.mxu0 %v4038_v54 }
 0x2cb   :  { %1220 = vmatpush1.bf16.msra.mxu0 %v4044_v56 }
 0x2cc   :  { %1221 = vmatprep.subr.bf16.mxu0 %v4050_v58 }
 0x2cf   :  { %1222 = vmatpush1.bf16.msra.mxu0 %v4056_v59 }
 0x2d0   :  { %1223 = vmatprep.subr.bf16.mxu0 %v4062_v62 }
 0x2d3   :  { %1224 = vmatpush1.bf16.msra.mxu0 %v4068_v63 }
 0x2d4   :  { %1225 = vmatprep.subr.bf16.mxu0 %v4074_v26 }
 0x2d7   :  { %1226 = vmatpush1.bf16.msra.mxu0 %v4080_v28 }
 0x2d8   :  { %1227 = vmatprep.subr.bf16.mxu0 %v4086_v30 }
 0x2db   :  { %1228 = vmatpush1.bf16.msra.mxu0 %v4092_v32 }
 0x2dc   :  { %1229 = vmatprep.subr.bf16.mxu0 %v4098_v34 }
 0x2df   :  { %1230 = vmatpush2.bf16.msra.mxu0 %v4104_v15 }
 0x2e0   :  { %1231 = vmatprep.subr.bf16.mxu0 %v4110_v36 }
 0x2e3   :  { %1232 = vmatpush2.bf16.msra.mxu0 %v4116_v23 }
 0x2e4   :  { %1233 = vmatprep.subr.bf16.mxu0 %v4122_v18 }
 0x2e7   :  { %1234 = vmatpush2.bf16.msra.mxu0 %v4128_v55 }
 0x2e8   :  { %1235 = vmatprep.subr.bf16.mxu0 %v4134_v33 }
 0x2eb   :  { %1236 = vmatpush2.bf16.msra.mxu0 %v5997_v49 }
 0x2ec   :  { %1237 = vmatprep.subr.bf16.mxu0 %v5998_v57 }
 0x2ef   :  { %1238 = vmatpush2.bf16.msra.mxu0 %v5999_v61 }
 0x2f0   :  { %1239 = vmatprep.subr.bf16.mxu0 %v6000_v42 }
 0x2f3   :  { %1240 = vmatpush2.bf16.msra.mxu0 %v6001_v14  ;;  %v2351_v14 = vld [vmem:[%s5637_s0 + $0x30] sm:$0xff] }
 0x2f4   :  { %1241 = vmatprep.subr.bf16.mxu0 %v6002_v45  ;;  %v982_v45 = vunpack.c.l.bf16 %v2351_v14 }
 0x2f7   :  { %1242 = vmatpush2.bf16.msra.mxu0 %v6003_v40  ;;  %v983_v40 = vunpack.c.h.bf16 %v2351_v14 }
 0x2f8   :  { %1243 = vmatprep.subr.bf16.mxu0 %v6004_v11 }
 0x2fb   :  { %1244 = vmatpush2.bf16.msra.mxu0 %v6005_v27 }
 0x2fc   :  { %1354 = vmatprep.subr.bf16.mxu0 %v6006_v37  ;;  %v2352_v37 = vld [vmem:[%s5637_s0 + $0x38] sm:$0xff] }
 0x2fd   :  { %v984_v18 = vunpack.c.l.bf16 %v2352_v37 }
 0x33e   :  { %v1024_v12 = vpop.f32.mrf.mxu0  ;;  %v1065_v60 = vpop.f32.mrf.mxu1 }
 0x33f   :  { %v1113_v33 = vadd.f32 %v1024_v12, %v982_v45 }
 0x340   :  { %v1026_v49 = vpop.f32.mrf.mxu0  ;;  %v1067_v57 = vpop.f32.mrf.mxu1 }
 0x341   :  { %v1114_v11 = vadd.f32 %v1026_v49, %v983_v40  ;;  %v2354_v55 = vmul.f32 -1.442695, %v1113_v33 }
 0x342   :  { %v1028_v39 = vpop.f32.mrf.mxu0  ;;  %v1069_v61 = vpop.f32.mrf.mxu1 }
 0x343   :  { %v2355_v27 = vmul.f32 -1.442695, %v1114_v11  ;;  %2667 = vpow2.f32 %v2354_v55  ;;  %v985_v39 = vunpack.c.h.bf16 %v2352_v37  ;;  %v2353_v55 = vld [vmem:[%s5637_s0 + $0x40] sm:$0xff] }
 0x344   :  { %v1029_v53 = vpop.f32.mrf.mxu0  ;;  %v1070_v42 = vpop.f32.mrf.mxu1 }
 0x345   :  { %2669 = vpow2.f32 %v2355_v27  ;;  %v1127_v53 = vadd.f32 %v1065_v60, %v984_v18  ;;  %v1128_v61 = vadd.f32 %v1067_v57, %v985_v39  ;;  %v986_v60 = vunpack.c.l.bf16 %v2353_v55  ;;  %v6007_v57 = vld [vmem:[#allocation58_spill] sm:$0xff] }
 0x347   :  { %v2356_v42 = vmul.f32 -1.442695, %v1127_v53  ;;  %v2357_v23 = vmul.f32 -1.442695, %v1128_v61 }
 0x349   :  { %2671 = vpow2.f32 %v2356_v42 }
 0x34a   :  { %2673 = vpow2.f32 %v2357_v23  ;;  %v987_v23 = vunpack.c.h.bf16 %v2353_v55 }
 0x350   :  { %v2668_v36 = vpop.eup %2667 }
 0x351   :  { %v1121_v14 = vadd.f32 1.0, %v2668_v36 }
 0x352   :  { %v2670_v15 = vpop.eup %2669 }
 0x353   :  { %v1122_v12 = vadd.f32 1.0, %v2670_v15  ;;  %2675 = vrcp.f32 %v1121_v14 }
 0x355   :  { %2677 = vrcp.f32 %v1122_v12 }
 0x356   :  { %v2672_v33 = vpop.eup %2671 }
 0x357   :  { %v2674_v49 = vpop.eup %2673  ;;  %v1135_v45 = vadd.f32 1.0, %v2672_v33 }
 0x358   :  { %v1136_v18 = vadd.f32 1.0, %v2674_v49 }
 0x359   :  { %2679 = vrcp.f32 %v1135_v45 }
 0x35a   :  { %2681 = vrcp.f32 %v1136_v18 }
 0x360   :  { %v2676_v11 = vpop.eup %2675 }
 0x362   :  { %v2678_v39 = vpop.eup %2677 }
 0x366   :  { %v2680_v33 = vpop.eup %2679 }
 0x367   :  { %v2682_v49 = vpop.eup %2681  ;;  %v1149_v34 = vsub.f32 1.0, %v2680_v33  ;;  %v1153_v55 = vmul.f32 %v2680_v33, %v3803_v35  ;;  %v4251_v33 = vld [vmem:[%s5636_s1 + $0x44] ss:$24 sps:$4 sm:$0xff]  }
 0x368   :  { %v4307_v35 = vld [vmem:[%s5636_s1 + $0x284] ss:$24 sps:$4 sm:$0xff]  }
 0x37e   :  { %v1106_v37 = vpop.f32.mrf.mxu0 }
 0x37f   :  { %v1141_v40 = vadd.f32 %v1106_v37, %v6007_v57  ;;  %v1150_v57 = vsub.f32 1.0, %v2682_v49 }
 0x380   :  { %v1108_v27 = vpop.f32.mrf.mxu0 }
 0x381   :  { %v1143_v36 = vmul.f32 %v2676_v11, %v1141_v40  ;;  %v1142_v15 = vadd.f32 %v1108_v27, %v3672_v29  ;;  %v1154_v11 = vmul.f32 %v2682_v49, %v3805_v38  ;;  %v4259_v49 = vld [vmem:[%s5636_s1 + $0x40] ss:$24 sps:$4 sm:$0xff]  }
 0x382   :  { %v1110_v53 = vpop.f32.mrf.mxu0  ;;  %v4315_v38 = vld [vmem:[%s5636_s1 + $0x280] ss:$24 sps:$4 sm:$0xff]  }
 0x383   :  { %v1145_v61 = vadd.f32 %v1143_v36, %v986_v60  ;;  %v1144_v42 = vmul.f32 %v2678_v39, %v1142_v15  ;;  %v4203_v15 = vld [vmem:[%s5636_s1 + $0x100] ss:$24 sps:$4 sm:$0xff]   ;;  %v4209_v39 = vld [vmem:[%s5636_s1 + $0xd4] ss:$24 sps:$4 sm:$0xff]   ;;  %v4217_v53 = vld [vmem:[%s5636_s1 + $0xd0] ss:$24 sps:$4 sm:$0xff]  }
 0x384   :  { %v1111_v14 = vpop.f32.mrf.mxu0  ;;  %6011 = vst [vmem:[#allocation11_spill] sm:$0xff] %v4315_v38 }
 0x385   :  { %2683 = vtanh.f32 %v1145_v61  ;;  %v1146_v12 = vadd.f32 %v1144_v42, %v987_v23  ;;  %v4195_v23 = vld [vmem:[%s5636_s1 + $0x104] ss:$24 sps:$4 sm:$0xff]   ;;  %v4231_v42 = vld [vmem:[%s5636_s1 + $0xa0] ss:$24 sps:$4 sm:$0xff]   ;;  %v4237_v14 = vld [vmem:[%s5636_s1 + $0x74] ss:$24 sps:$4 sm:$0xff]  }
 0x386   :  { %v4223_v61 = vld [vmem:[%s5636_s1 + $0xa4] ss:$24 sps:$4 sm:$0xff]  }
 0x387   :  { %2685 = vtanh.f32 %v1146_v12  ;;  %v4245_v12 = vld [vmem:[%s5636_s1 + $0x70] ss:$24 sps:$4 sm:$0xff]  }
 0x392   :  { %v2684_v37 = vpop.eup %2683 }
 0x393   :  { %v1151_v32 = vmul.f32 %v2684_v37, %v1149_v34  ;;  %v4181_v34 = vld [vmem:[%s5636_s1 + $0x134] ss:$24 sps:$4 sm:$0xff]  }
 0x394   :  { %v2686_v45 = vpop.eup %2685  ;;  %v4265_v37 = vld [vmem:[%s5636_s1 + $0x14] ss:$24 sps:$4 sm:$0xff]  }
 0x395   :  { %v1152_v40 = vmul.f32 %v2686_v45, %v1150_v57  ;;  %v4160_v27 = vadd.f32 %v1153_v55, %v1151_v32  ;;  %v4175_v32 = vld [vmem:[%s5636_s1 + $0x160] ss:$24 sps:$4 sm:$0xff]   ;;  %v4189_v57 = vld [vmem:[%s5636_s1 + $0x130] ss:$24 sps:$4 sm:$0xff]   ;;  %v4279_v55 = vld [vmem:[%s5636_s1 + $0x2e4] ss:$24 sps:$4 sm:$0xff]  }
 0x396   :  { %v4273_v45 = vld [vmem:[%s5636_s1 + $0x10] ss:$24 sps:$4 sm:$0xff]  }
 0x397   :  { %6008 = vst [vmem:[#allocation8_spill] sm:$0xff] %v4160_v27  ;;  %v4162_v18 = vadd.f32 %v1154_v11, %v1152_v40  ;;  %v4168_v36 = vpack.c.bf16 %v4160_v27, %v4160_v27  ;;  %v4287_v40 = vld [vmem:[%s5636_s1 + $0x2e0] ss:$24 sps:$4 sm:$0xff]   ;;  %v4293_v11 = vld [vmem:[%s5636_s1 + $0x2b4] ss:$24 sps:$4 sm:$0xff]  }
 0x399   :  { %6009 = vst [vmem:[#allocation9_spill] sm:$0xff] %v4162_v18  ;;  %v1171_v60 = vpack.c.bf16 %v4162_v18, %v4162_v18 }
 0x39b   :  { %1204 = vmatprep.mubr.bf16.mxu1 %v1171_v60  ;;  %1245 = vmatprep.mubr.bf16.mxu0 %v1171_v60 }
 0x39c   :  { %1205 = vmatmul.mubr.bf16.vlgmr.msra.gmra.mxu1 %v4168_v36  ;;  %1246 = vmatmul.mubr.bf16.vlgmr.msra.gmra.mxu0 %v4168_v36 }
 0x39d   :  { %1255 = vmatpush1.bf16.msra.mxu1 %v4175_v32  ;;  %1286 = vmatprep.mubr.bf16.mxu1 %v1171_v60  ;;  %v4301_v60 = vld [vmem:[%s5636_s1 + $0x2b0] ss:$24 sps:$4 sm:$0xff]  }
 0x39e   :  { %1256 = vmatprep.subr.bf16.mxu1 %v4181_v34  ;;  %1355 = vmatpush1.bf16.msra.mxu0 %v3820_v25  ;;  %6010 = vst [vmem:[#allocation10_spill] sm:$0xff] %v4301_v60 }
 0x39f   :  { %1356 = vmatprep.subr.bf16.mxu0 %v3826_v51 }
 0x3a1   :  { %1257 = vmatpush1.bf16.msra.mxu1 %v4189_v57 }
 0x3a2   :  { %1258 = vmatprep.subr.bf16.mxu1 %v4195_v23  ;;  %1357 = vmatpush1.bf16.msra.mxu0 %v3834_v21 }
 0x3a3   :  { %1358 = vmatprep.subr.bf16.mxu0 %v3840_v19 }
 0x3a5   :  { %1259 = vmatpush1.bf16.msra.mxu1 %v4203_v15 }
 0x3a6   :  { %1260 = vmatprep.subr.bf16.mxu1 %v4209_v39  ;;  %1359 = vmatpush1.bf16.msra.mxu0 %v3848_v31 }
 0x3a7   :  { %1360 = vmatprep.subr.bf16.mxu0 %v3854_v0 }
 0x3a9   :  { %1261 = vmatpush1.bf16.msra.mxu1 %v4217_v53 }
 0x3aa   :  { %1262 = vmatprep.subr.bf16.mxu1 %v4223_v61  ;;  %1361 = vmatpush1.bf16.msra.mxu0 %v3862_v47 }
 0x3ab   :  { %1362 = vmatprep.subr.bf16.mxu0 %v3868_v41 }
 0x3ad   :  { %1263 = vmatpush1.bf16.msra.mxu1 %v4231_v42 }
 0x3ae   :  { %1264 = vmatprep.subr.bf16.mxu1 %v4237_v14  ;;  %1363 = vmatpush1.bf16.msra.mxu0 %v3876_v43 }
 0x3af   :  { %1364 = vmatprep.subr.bf16.mxu0 %v3882_v2 }
 0x3b1   :  { %1265 = vmatpush1.bf16.msra.mxu1 %v4245_v12 }
 0x3b2   :  { %1266 = vmatprep.subr.bf16.mxu1 %v4251_v33  ;;  %1365 = vmatpush1.bf16.msra.mxu0 %v3890_v3 }
 0x3b3   :  { %1366 = vmatprep.subr.bf16.mxu0 %v3896_v4 }
 0x3b5   :  { %1267 = vmatpush1.bf16.msra.mxu1 %v4259_v49 }
 0x3b6   :  { %1268 = vmatprep.subr.bf16.mxu1 %v4265_v37  ;;  %1367 = vmatpush1.bf16.msra.mxu0 %v3904_v5 }
 0x3b7   :  { %1368 = vmatprep.subr.bf16.mxu0 %v3910_v6 }
 0x3b9   :  { %1269 = vmatpush1.bf16.msra.mxu1 %v4273_v45 }
 0x3ba   :  { %1270 = vmatprep.subr.bf16.mxu1 %v4279_v55  ;;  %1369 = vmatpush1.bf16.msra.mxu0 %v3918_v7 }
 0x3bb   :  { %1370 = vmatprep.subr.bf16.mxu0 %v3924_v8 }
 0x3bd   :  { %1271 = vmatpush2.bf16.msra.mxu1 %v4287_v40 }
 0x3be   :  { %1272 = vmatprep.subr.bf16.mxu1 %v4293_v11  ;;  %1371 = vmatpush2.bf16.msra.mxu0 %v3932_v9 }
 0x3bf   :  { %1372 = vmatprep.subr.bf16.mxu0 %v3938_v10 }
 0x3c1   :  { %1273 = vmatpush2.bf16.msra.mxu1 %v4301_v60  ;;  %v4321_v60 = vld [vmem:[%s5636_s1 + $0x254] ss:$24 sps:$4 sm:$0xff]  }
 0x3c2   :  { %1274 = vmatprep.subr.bf16.mxu1 %v4307_v35  ;;  %1373 = vmatpush2.bf16.msra.mxu0 %v3946_v13 }
 0x3c3   :  { %1374 = vmatprep.subr.bf16.mxu0 %v3952_v16  ;;  %v4329_v16 = vld [vmem:[%s5636_s1 + $0x250] ss:$24 sps:$4 sm:$0xff]  }
 0x3c4   :  { %6012 = vst [vmem:[#allocation12_spill] sm:$0xff] %v4329_v16 }
 0x3c5   :  { %1275 = vmatpush2.bf16.msra.mxu1 %v4315_v38  ;;  %v4335_v38 = vld [vmem:[%s5636_s1 + $0x224] ss:$24 sps:$4 sm:$0xff]  }
 0x3c6   :  { %1276 = vmatprep.subr.bf16.mxu1 %v4321_v60  ;;  %1375 = vmatpush2.bf16.msra.mxu0 %v3960_v17  ;;  %6013 = vst [vmem:[#allocation13_spill] sm:$0xff] %v4335_v38 }
 0x3c7   :  { %1376 = vmatprep.subr.bf16.mxu0 %v3966_v20  ;;  %v4343_v20 = vld [vmem:[%s5636_s1 + $0x220] ss:$24 sps:$4 sm:$0xff]  }
 0x3c8   :  { %6014 = vst [vmem:[#allocation14_spill] sm:$0xff] %v4343_v20 }
 0x3c9   :  { %1277 = vmatpush2.bf16.msra.mxu1 %v4329_v16  ;;  %v4349_v16 = vld [vmem:[%s5636_s1 + $0x1f4] ss:$24 sps:$4 sm:$0xff]  }
 0x3ca   :  { %1278 = vmatprep.subr.bf16.mxu1 %v4335_v38  ;;  %1377 = vmatpush2.bf16.msra.mxu0 %v3974_v22  ;;  %6015 = vst [vmem:[#allocation15_spill] sm:$0xff] %v4349_v16  ;;  %v4355_v22 = vld [vmem:[%s5636_s1 + $0x210] ss:$24 sps:$4 sm:$0xff]  }
 0x3cb   :  { %1378 = vmatprep.subr.bf16.mxu0 %v3980_v24  ;;  %6016 = vst [vmem:[#allocation16_spill] sm:$0xff] %v4355_v22  ;;  %v4361_v24 = vld [vmem:[%s5636_s1 + $0x1e4] ss:$24 sps:$4 sm:$0xff]  }
 0x3cc   :  { %6017 = vst [vmem:[#allocation17_spill] sm:$0xff] %v4361_v24 }
 0x3cd   :  { %1279 = vmatpush2.bf16.msra.mxu1 %v4343_v20  ;;  %v4367_v20 = vld [vmem:[%s5636_s1 + $0x1f0] ss:$24 sps:$4 sm:$0xff]  }
 0x3ce   :  { %1280 = vmatprep.subr.bf16.mxu1 %v4349_v16  ;;  %1379 = vmatpush2.bf16.msra.mxu0 %v4355_v22  ;;  %6018 = vst [vmem:[#allocation18_spill] sm:$0xff] %v4367_v20  ;;  %v4373_v16 = vld [vmem:[%s5636_s1 + $0x1c4] ss:$24 sps:$4 sm:$0xff]   ;;  %v4379_v22 = vld [vmem:[%s5636_s1 + $0x1e0] ss:$24 sps:$4 sm:$0xff]  }
 0x3cf   :  { %1380 = vmatprep.subr.bf16.mxu0 %v4361_v24  ;;  %6019 = vst [vmem:[#allocation19_spill] sm:$0xff] %v4373_v16  ;;  %6020 = vst [vmem:[#allocation20_spill] sm:$0xff] %v4379_v22  ;;  %v4385_v24 = vld [vmem:[%s5636_s1 + $0x1b4] ss:$24 sps:$4 sm:$0xff]  }
 0x3d0   :  { %6021 = vst [vmem:[#allocation21_spill] sm:$0xff] %v4385_v24 }
 0x3d1   :  { %1281 = vmatpush2.bf16.msra.mxu1 %v4367_v20  ;;  %v4391_v20 = vld [vmem:[%s5636_s1 + $0x1c0] ss:$24 sps:$4 sm:$0xff]  }
 0x3d2   :  { %1282 = vmatprep.subr.bf16.mxu1 %v4373_v16  ;;  %1381 = vmatpush2.bf16.msra.mxu0 %v4379_v22  ;;  %6022 = vst [vmem:[#allocation22_spill] sm:$0xff] %v4391_v20  ;;  %v4397_v16 = vld [vmem:[%s5636_s1 + $0x194] ss:$24 sps:$4 sm:$0xff]   ;;  %v4403_v22 = vld [vmem:[%s5636_s1 + $0x1b0] ss:$24 sps:$4 sm:$0xff]  }
 0x3d3   :  { %1382 = vmatprep.subr.bf16.mxu0 %v4385_v24  ;;  %6023 = vst [vmem:[#allocation23_spill] sm:$0xff] %v4397_v16  ;;  %6024 = vst [vmem:[#allocation24_spill] sm:$0xff] %v4403_v22  ;;  %v4409_v24 = vld [vmem:[%s5636_s1 + $0x184] ss:$24 sps:$4 sm:$0xff]  }
 0x3d4   :  { %6025 = vst [vmem:[#allocation26_spill] sm:$0xff] %v4409_v24 }
 0x3d5   :  { %1283 = vmatpush2.bf16.msra.mxu1 %v4391_v20  ;;  %v4415_v20 = vld [vmem:[%s5636_s1 + $0x190] ss:$24 sps:$4 sm:$0xff]  }
 0x3d6   :  { %1284 = vmatprep.subr.bf16.mxu1 %v4397_v16  ;;  %1383 = vmatpush2.bf16.msra.mxu0 %v4403_v22  ;;  %6026 = vst [vmem:[#allocation28_spill] sm:$0xff] %v4415_v20  ;;  %v4422_v22 = vld [vmem:[%s5636_s1 + $0x180] ss:$24 sps:$4 sm:$0xff]  }
 0x3d7   :  { %1384 = vmatprep.subr.bf16.mxu0 %v4409_v24  ;;  %6027 = vst [vmem:[#allocation30_spill] sm:$0xff] %v4422_v22  ;;  %v4428_v24 = vld [vmem:[%s5636_s1 + $0x164] ss:$24 sps:$4 sm:$0xff]  }
 0x3d8   :  { %6028 = vst [vmem:[#allocation32_spill] sm:$0xff] %v4428_v24 }
 0x3d9   :  { %1285 = vmatpush2.bf16.msra.mxu1 %v4415_v20 }
 0x3da   :  { %1395 = vmatprep.subr.bf16.mxu1 %v3999_v44  ;;  %1385 = vmatpush2.bf16.msra.mxu0 %v4422_v22 }
 0x3db   :  { %1436 = vmatprep.subr.bf16.mxu0 %v4428_v24 }
 0x3dc   :  { %1287 = vmatmul.mubr.bf16.vlgmr.msra.gmra.mxu1 %v4168_v36  ;;  %v6029_v36 = vld [vmem:[#allocation54_spill] sm:$0xff] }
 0x3dd   :  { %1396 = vmatpush1.bf16.msra.mxu1 %v4008_v46 }
 0x3de   :  { %1397 = vmatprep.subr.bf16.mxu1 %v4014_v1 }
 0x3e1   :  { %1398 = vmatpush1.bf16.msra.mxu1 %v4020_v48 }
 0x3e2   :  { %1399 = vmatprep.subr.bf16.mxu1 %v4026_v50 }
 0x3e5   :  { %1400 = vmatpush1.bf16.msra.mxu1 %v4032_v52  ;;  %v6030_v52 = vld [vmem:[#allocation55_spill] sm:$0xff] }
 0x3e6   :  { %1401 = vmatprep.subr.bf16.mxu1 %v4038_v54  ;;  %v6031_v54 = vld [vmem:[#allocation56_spill] sm:$0xff] }
 0x3e9   :  { %1402 = vmatpush1.bf16.msra.mxu1 %v4044_v56  ;;  %v6032_v56 = vld [vmem:[#allocation57_spill] sm:$0xff] }
 0x3ea   :  { %1403 = vmatprep.subr.bf16.mxu1 %v4050_v58  ;;  %v6033_v58 = vld [vmem:[#allocation4_spill] sm:$0xff] }
 0x3ed   :  { %1404 = vmatpush1.bf16.msra.mxu1 %v4056_v59  ;;  %v6034_v59 = vld [vmem:[#allocation5_spill] sm:$0xff] }
 0x3ee   :  { %1405 = vmatprep.subr.bf16.mxu1 %v4062_v62  ;;  %v6035_v62 = vld [vmem:[#allocation6_spill] sm:$0xff] }
 0x3f1   :  { %1406 = vmatpush1.bf16.msra.mxu1 %v4068_v63  ;;  %v6036_v63 = vld [vmem:[#allocation7_spill] sm:$0xff] }
 0x3f2   :  { %1407 = vmatprep.subr.bf16.mxu1 %v4074_v26 }
 0x3f5   :  { %1408 = vmatpush1.bf16.msra.mxu1 %v4080_v28 }
 0x3f6   :  { %1409 = vmatprep.subr.bf16.mxu1 %v4086_v30  ;;  %v4457_v30 = vld [vmem:[%s5636_s1 + $0x248] ss:$24 sps:$4 sm:$0xff]  }
 0x3f7   :  { %6037 = vst [vmem:[#allocation34_spill] sm:$0xff] %v4457_v30 }
 0x3f9   :  { %1410 = vmatpush1.bf16.msra.mxu1 %v6029_v36 }
 0x3fa   :  { %1411 = vmatprep.subr.bf16.mxu1 %v6030_v52 }
 0x3fd   :  { %1412 = vmatpush2.bf16.msra.mxu1 %v6031_v54  ;;  %v4463_v54 = vld [vmem:[%s5636_s1 + $0x21c] ss:$24 sps:$4 sm:$0xff]  }
 0x3fe   :  { %1413 = vmatprep.subr.bf16.mxu1 %v6032_v56  ;;  %6038 = vst [vmem:[#allocation36_spill] sm:$0xff] %v4463_v54 }
 0x401   :  { %1414 = vmatpush2.bf16.msra.mxu1 %v6033_v58 }
 0x402   :  { %1415 = vmatprep.subr.bf16.mxu1 %v6034_v59 }
 0x405   :  { %1416 = vmatpush2.bf16.msra.mxu1 %v6035_v62  ;;  %v4469_v62 = vld [vmem:[%s5636_s1 + $0x218] ss:$24 sps:$4 sm:$0xff]  }
 0x406   :  { %1417 = vmatprep.subr.bf16.mxu1 %v6036_v63  ;;  %6039 = vst [vmem:[#allocation61_spill] sm:$0xff] %v4469_v62  ;;  %v4475_v63 = vld [vmem:[%s5636_s1 + $0x1ec] ss:$24 sps:$4 sm:$0xff]  }
 0x407   :  { %6040 = vst [vmem:[#allocation62_spill] sm:$0xff] %v4475_v63 }
 0x409   :  { %1418 = vmatpush2.bf16.msra.mxu1 %v4457_v30  ;;  %v4481_v30 = vld [vmem:[%s5636_s1 + $0x1e8] ss:$24 sps:$4 sm:$0xff]  }
 0x40a   :  { %1419 = vmatprep.subr.bf16.mxu1 %v4463_v54  ;;  %6041 = vst [vmem:[#allocation63_spill] sm:$0xff] %v4481_v30  ;;  %v4487_v54 = vld [vmem:[%s5636_s1 + $0x1bc] ss:$24 sps:$4 sm:$0xff]  }
 0x40b   :  { %6042 = vst [vmem:[#allocation64_spill] sm:$0xff] %v4487_v54 }
 0x40d   :  { %1420 = vmatpush2.bf16.msra.mxu1 %v4469_v62  ;;  %v4493_v62 = vld [vmem:[%s5636_s1 + $0x1b8] ss:$24 sps:$4 sm:$0xff]  }
 0x40e   :  { %1421 = vmatprep.subr.bf16.mxu1 %v4475_v63  ;;  %6043 = vst [vmem:[#allocation65_spill] sm:$0xff] %v4493_v62  ;;  %v4499_v63 = vld [vmem:[%s5636_s1 + $0x18c] ss:$24 sps:$4 sm:$0xff]  }
 0x40f   :  { %6044 = vst [vmem:[#allocation66_spill] sm:$0xff] %v4499_v63 }
 0x411   :  { %1422 = vmatpush2.bf16.msra.mxu1 %v4481_v30  ;;  %v4505_v30 = vld [vmem:[%s5636_s1 + $0x188] ss:$24 sps:$4 sm:$0xff]  }
 0x412   :  { %1423 = vmatprep.subr.bf16.mxu1 %v4487_v54  ;;  %6045 = vst [vmem:[#allocation67_spill] sm:$0xff] %v4505_v30  ;;  %v6046_v54 = vld [vmem:[#allocation25_spill] sm:$0xff] }
 0x415   :  { %1424 = vmatpush2.bf16.msra.mxu1 %v4493_v62 }
 0x416   :  { %1425 = vmatprep.subr.bf16.mxu1 %v4499_v63  ;;  %v2358_v63 = vld [vmem:[%s5637_s0 + $0x48] sm:$0xff] }
 0x417   :  { %v1164_v50 = vunpack.c.l.bf16 %v2358_v63  ;;  %v1165_v48 = vunpack.c.h.bf16 %v2358_v63 }
 0x419   :  { %1426 = vmatpush2.bf16.msra.mxu1 %v4505_v30 }
 0x41a   :  { %1536 = vmatprep.subr.bf16.mxu1 %v6046_v54  ;;  %v2359_v54 = vld [vmem:[%s5637_s0 + $0x50] sm:$0xff] }
 0x41b   :  { %v1166_v22 = vunpack.c.l.bf16 %v2359_v54 }
 0x45c   :  { %v1206_v59 = vpop.f32.mrf.mxu1  ;;  %v1247_v58 = vpop.f32.mrf.mxu0 }
 0x45d   :  { %v1295_v1 = vadd.f32 %v1206_v59, %v1164_v50  ;;  %v6047_v59 = vld [vmem:[#allocation58_spill] sm:$0xff] }
 0x45e   :  { %v1208_v56 = vpop.f32.mrf.mxu1  ;;  %v1249_v62 = vpop.f32.mrf.mxu0 }
 0x45f   :  { %v1296_v46 = vadd.f32 %v1208_v56, %v1165_v48  ;;  %v2361_v24 = vmul.f32 -1.442695, %v1295_v1 }
 0x460   :  { %v1210_v52 = vpop.f32.mrf.mxu1  ;;  %v1251_v36 = vpop.f32.mrf.mxu0 }
 0x461   :  { %v2362_v30 = vmul.f32 -1.442695, %v1296_v46  ;;  %2687 = vpow2.f32 %v2361_v24  ;;  %v1167_v52 = vunpack.c.h.bf16 %v2359_v54  ;;  %v2360_v24 = vld [vmem:[%s5637_s0 + $0x58] sm:$0xff] }
 0x462   :  { %v1211_v28 = vpop.f32.mrf.mxu1  ;;  %v1252_v26 = vpop.f32.mrf.mxu0 }
 0x463   :  { %2689 = vpow2.f32 %v2362_v30  ;;  %v1309_v28 = vadd.f32 %v1247_v58, %v1166_v22  ;;  %v1310_v26 = vadd.f32 %v1249_v62, %v1167_v52  ;;  %v1168_v58 = vunpack.c.l.bf16 %v2360_v24 }
 0x465   :  { %v2363_v36 = vmul.f32 -1.442695, %v1309_v28  ;;  %v2364_v44 = vmul.f32 -1.442695, %v1310_v26 }
 0x467   :  { %2691 = vpow2.f32 %v2363_v36 }
 0x468   :  { %2693 = vpow2.f32 %v2364_v44  ;;  %v1169_v44 = vunpack.c.h.bf16 %v2360_v24 }
 0x46e   :  { %v2688_v20 = vpop.eup %2687 }
 0x46f   :  { %v1303_v63 = vadd.f32 1.0, %v2688_v20 }
 0x470   :  { %v2690_v16 = vpop.eup %2689 }
 0x471   :  { %v1304_v48 = vadd.f32 1.0, %v2690_v16  ;;  %2695 = vrcp.f32 %v1303_v63 }
 0x473   :  { %2697 = vrcp.f32 %v1304_v48 }
 0x474   :  { %v2692_v46 = vpop.eup %2691 }
 0x475   :  { %v2694_v1 = vpop.eup %2693  ;;  %v1317_v50 = vadd.f32 1.0, %v2692_v46 }
 0x476   :  { %v1318_v22 = vadd.f32 1.0, %v2694_v1 }
 0x477   :  { %2699 = vrcp.f32 %v1317_v50 }
 0x478   :  { %2701 = vrcp.f32 %v1318_v22 }
 0x47e   :  { %v2696_v30 = vpop.eup %2695 }
 0x480   :  { %v2698_v52 = vpop.eup %2697 }
 0x484   :  { %v2700_v46 = vpop.eup %2699 }
 0x485   :  { %v2702_v1 = vpop.eup %2701  ;;  %v1331_v38 = vsub.f32 1.0, %v2700_v46  ;;  %v1335_v24 = vmul.f32 %v2700_v46, %v4160_v27  ;;  %v6080_v46 = vld [vmem:[#allocation45_spill] sm:$0xff] }
 0x49c   :  { %v1288_v56 = vpop.f32.mrf.mxu1 }
 0x49d   :  { %v1323_v62 = vadd.f32 %v1288_v56, %v6047_v59  ;;  %v1332_v59 = vsub.f32 1.0, %v2702_v1 }
 0x49e   :  { %v1290_v54 = vpop.f32.mrf.mxu1 }
 0x49f   :  { %v1325_v20 = vmul.f32 %v2696_v30, %v1323_v62  ;;  %v1324_v16 = vadd.f32 %v1290_v54, %v3672_v29  ;;  %v1336_v30 = vmul.f32 %v2702_v1, %v4162_v18  ;;  %v6081_v1 = vld [vmem:[#allocation46_spill] sm:$0xff] }
 0x4a0   :  { %v1292_v28 = vpop.f32.mrf.mxu1 }
 0x4a1   :  { %v1327_v26 = vadd.f32 %v1325_v20, %v1168_v58  ;;  %v1326_v36 = vmul.f32 %v2698_v52, %v1324_v16  ;;  %v6073_v16 = vld [vmem:[#allocation30_spill] sm:$0xff]  ;;  %v6074_v52 = vld [vmem:[#allocation32_spill] sm:$0xff] }
 0x4a2   :  { %v1293_v63 = vpop.f32.mrf.mxu1  ;;  %v6075_v28 = vld [vmem:[#allocation40_spill] sm:$0xff] }
 0x4a3   :  { %2703 = vtanh.f32 %v1327_v26  ;;  %v1328_v48 = vadd.f32 %v1326_v36, %v1169_v44  ;;  %v6072_v44 = vld [vmem:[#allocation39_spill] sm:$0xff]  ;;  %v6076_v26 = vld [vmem:[#allocation41_spill] sm:$0xff]  ;;  %v6077_v36 = vld [vmem:[#allocation42_spill] sm:$0xff] }
 0x4a4   :  { %v6078_v63 = vld [vmem:[#allocation43_spill] sm:$0xff] }
 0x4a5   :  { %2705 = vtanh.f32 %v1328_v48  ;;  %v6079_v48 = vld [vmem:[#allocation44_spill] sm:$0xff] }
 0x4b0   :  { %v2704_v56 = vpop.eup %2703 }
 0x4b1   :  { %v1333_v17 = vmul.f32 %v2704_v56, %v1331_v38  ;;  %v6050_v38 = vld [vmem:[#allocation10_spill] sm:$0xff]  ;;  %v6082_v56 = vld [vmem:[#allocation47_spill] sm:$0xff] }
 0x4b2   :  { %v2706_v50 = vpop.eup %2705 }
 0x4b3   :  { %v1334_v62 = vmul.f32 %v2706_v50, %v1332_v59  ;;  %v4522_v54 = vadd.f32 %v1335_v24, %v1333_v17  ;;  %v6070_v17 = vld [vmem:[#allocation26_spill] sm:$0xff]  ;;  %v6071_v59 = vld [vmem:[#allocation28_spill] sm:$0xff]  ;;  %v6084_v24 = vld [vmem:[#allocation49_spill] sm:$0xff] }
 0x4b4   :  { %v6083_v50 = vld [vmem:[#allocation48_spill] sm:$0xff] }
 0x4b5   :  { %6048 = vst [vmem:[#allocation25_spill] sm:$0xff] %v4522_v54  ;;  %v4524_v22 = vadd.f32 %v1336_v30, %v1334_v62  ;;  %v4530_v20 = vpack.c.bf16 %v4522_v54, %v4522_v54  ;;  %v6085_v62 = vld [vmem:[#allocation50_spill] sm:$0xff]  ;;  %v6086_v30 = vld [vmem:[#allocation51_spill] sm:$0xff] }
 0x4b7   :  { %6049 = vst [vmem:[#allocation68_spill] sm:$0xff] %v4524_v22  ;;  %v1353_v58 = vpack.c.bf16 %v4524_v22, %v4524_v22 }
 0x4b9   :  { %1386 = vmatprep.mubr.bf16.mxu0 %v1353_v58  ;;  %1427 = vmatprep.mubr.bf16.mxu1 %v1353_v58 }
 0x4ba   :  { %1387 = vmatmul.mubr.bf16.vlgmr.msra.gmra.mxu0 %v4530_v20  ;;  %1428 = vmatmul.mubr.bf16.vlgmr.msra.gmra.mxu1 %v4530_v20 }
 0x4bb   :  { %1437 = vmatpush1.bf16.msra.mxu0 %v4175_v32  ;;  %1468 = vmatprep.mubr.bf16.mxu0 %v1353_v58  ;;  %v6087_v58 = vld [vmem:[#allocation52_spill] sm:$0xff] }
 0x4bc   :  { %1438 = vmatprep.subr.bf16.mxu0 %v4181_v34  ;;  %1537 = vmatpush1.bf16.msra.mxu1 %v3820_v25  ;;  %v6051_v25 = vld [vmem:[#allocation31_spill] sm:$0xff] }
 0x4bd   :  { %1538 = vmatprep.subr.bf16.mxu1 %v3826_v51  ;;  %v6052_v51 = vld [vmem:[#allocation11_spill] sm:$0xff] }
 0x4bf   :  { %1439 = vmatpush1.bf16.msra.mxu0 %v4189_v57 }
 0x4c0   :  { %1440 = vmatprep.subr.bf16.mxu0 %v4195_v23  ;;  %1539 = vmatpush1.bf16.msra.mxu1 %v3834_v21  ;;  %v6053_v21 = vld [vmem:[#allocation33_spill] sm:$0xff] }
 0x4c1   :  { %1540 = vmatprep.subr.bf16.mxu1 %v3840_v19  ;;  %v6054_v19 = vld [vmem:[#allocation35_spill] sm:$0xff] }
 0x4c3   :  { %1441 = vmatpush1.bf16.msra.mxu0 %v4203_v15 }
 0x4c4   :  { %1442 = vmatprep.subr.bf16.mxu0 %v4209_v39  ;;  %1541 = vmatpush1.bf16.msra.mxu1 %v3848_v31  ;;  %v6055_v31 = vld [vmem:[#allocation12_spill] sm:$0xff] }
 0x4c5   :  { %1542 = vmatprep.subr.bf16.mxu1 %v3854_v0  ;;  %v6056_v0 = vld [vmem:[#allocation13_spill] sm:$0xff] }
 0x4c7   :  { %1443 = vmatpush1.bf16.msra.mxu0 %v4217_v53 }
 0x4c8   :  { %1444 = vmatprep.subr.bf16.mxu0 %v4223_v61  ;;  %1543 = vmatpush1.bf16.msra.mxu1 %v3862_v47  ;;  %v6057_v47 = vld [vmem:[#allocation37_spill] sm:$0xff] }
 0x4c9   :  { %1544 = vmatprep.subr.bf16.mxu1 %v3868_v41  ;;  %v6058_v41 = vld [vmem:[#allocation38_spill] sm:$0xff] }
 0x4cb   :  { %1445 = vmatpush1.bf16.msra.mxu0 %v4231_v42 }
 0x4cc   :  { %1446 = vmatprep.subr.bf16.mxu0 %v4237_v14  ;;  %1545 = vmatpush1.bf16.msra.mxu1 %v3876_v43  ;;  %v6059_v43 = vld [vmem:[#allocation14_spill] sm:$0xff] }
 0x4cd   :  { %1546 = vmatprep.subr.bf16.mxu1 %v3882_v2  ;;  %v6060_v2 = vld [vmem:[#allocation15_spill] sm:$0xff] }
 0x4cf   :  { %1447 = vmatpush1.bf16.msra.mxu0 %v4245_v12 }
 0x4d0   :  { %1448 = vmatprep.subr.bf16.mxu0 %v4251_v33  ;;  %1547 = vmatpush1.bf16.msra.mxu1 %v3890_v3  ;;  %v6061_v3 = vld [vmem:[#allocation16_spill] sm:$0xff] }
 0x4d1   :  { %1548 = vmatprep.subr.bf16.mxu1 %v3896_v4  ;;  %v6062_v4 = vld [vmem:[#allocation17_spill] sm:$0xff] }
 0x4d3   :  { %1449 = vmatpush1.bf16.msra.mxu0 %v4259_v49 }
 0x4d4   :  { %1450 = vmatprep.subr.bf16.mxu0 %v4265_v37  ;;  %1549 = vmatpush1.bf16.msra.mxu1 %v3904_v5  ;;  %v6063_v5 = vld [vmem:[#allocation18_spill] sm:$0xff] }
 0x4d5   :  { %1550 = vmatprep.subr.bf16.mxu1 %v3910_v6  ;;  %v6064_v6 = vld [vmem:[#allocation19_spill] sm:$0xff] }
 0x4d7   :  { %1451 = vmatpush1.bf16.msra.mxu0 %v4273_v45 }
 0x4d8   :  { %1452 = vmatprep.subr.bf16.mxu0 %v4279_v55  ;;  %1551 = vmatpush1.bf16.msra.mxu1 %v3918_v7  ;;  %v6065_v7 = vld [vmem:[#allocation20_spill] sm:$0xff] }
 0x4d9   :  { %1552 = vmatprep.subr.bf16.mxu1 %v3924_v8  ;;  %v6066_v8 = vld [vmem:[#allocation21_spill] sm:$0xff] }
 0x4db   :  { %1453 = vmatpush2.bf16.msra.mxu0 %v4287_v40 }
 0x4dc   :  { %1454 = vmatprep.subr.bf16.mxu0 %v4293_v11  ;;  %1553 = vmatpush2.bf16.msra.mxu1 %v3932_v9  ;;  %v6067_v9 = vld [vmem:[#allocation22_spill] sm:$0xff] }
 0x4dd   :  { %1554 = vmatprep.subr.bf16.mxu1 %v3938_v10  ;;  %v6068_v10 = vld [vmem:[#allocation23_spill] sm:$0xff] }
 0x4df   :  { %1455 = vmatpush2.bf16.msra.mxu0 %v6050_v38 }
 0x4e0   :  { %1456 = vmatprep.subr.bf16.mxu0 %v4307_v35  ;;  %1555 = vmatpush2.bf16.msra.mxu1 %v3946_v13  ;;  %v6069_v13 = vld [vmem:[#allocation24_spill] sm:$0xff] }
 0x4e1   :  { %1556 = vmatprep.subr.bf16.mxu1 %v6051_v25  ;;  %v6089_v25 = vld [vmem:[#allocation54_spill] sm:$0xff] }
 0x4e3   :  { %1457 = vmatpush2.bf16.msra.mxu0 %v6052_v51 }
 0x4e4   :  { %1458 = vmatprep.subr.bf16.mxu0 %v4321_v60  ;;  %1557 = vmatpush2.bf16.msra.mxu1 %v6053_v21  ;;  %v6090_v21 = vld [vmem:[#allocation55_spill] sm:$0xff] }
 0x4e5   :  { %1558 = vmatprep.subr.bf16.mxu1 %v6054_v19  ;;  %v6091_v19 = vld [vmem:[#allocation56_spill] sm:$0xff] }
 0x4e7   :  { %1459 = vmatpush2.bf16.msra.mxu0 %v6055_v31 }
 0x4e8   :  { %1460 = vmatprep.subr.bf16.mxu0 %v6056_v0  ;;  %1559 = vmatpush2.bf16.msra.mxu1 %v6057_v47  ;;  %v6092_v47 = vld [vmem:[#allocation57_spill] sm:$0xff] }
 0x4e9   :  { %1560 = vmatprep.subr.bf16.mxu1 %v6058_v41  ;;  %v6093_v41 = vld [vmem:[#allocation4_spill] sm:$0xff] }
 0x4eb   :  { %1461 = vmatpush2.bf16.msra.mxu0 %v6059_v43 }
 0x4ec   :  { %1462 = vmatprep.subr.bf16.mxu0 %v6060_v2  ;;  %1561 = vmatpush2.bf16.msra.mxu1 %v6061_v3 }
 0x4ed   :  { %1562 = vmatprep.subr.bf16.mxu1 %v6062_v4 }
 0x4ef   :  { %1463 = vmatpush2.bf16.msra.mxu0 %v6063_v5 }
 0x4f0   :  { %1464 = vmatprep.subr.bf16.mxu0 %v6064_v6  ;;  %1563 = vmatpush2.bf16.msra.mxu1 %v6065_v7 }
 0x4f1   :  { %1564 = vmatprep.subr.bf16.mxu1 %v6066_v8 }
 0x4f3   :  { %1465 = vmatpush2.bf16.msra.mxu0 %v6067_v9 }
 0x4f4   :  { %1466 = vmatprep.subr.bf16.mxu0 %v6068_v10  ;;  %1565 = vmatpush2.bf16.msra.mxu1 %v6069_v13 }
 0x4f5   :  { %1566 = vmatprep.subr.bf16.mxu1 %v6070_v17 }
 0x4f7   :  { %1467 = vmatpush2.bf16.msra.mxu0 %v6071_v59 }
 0x4f8   :  { %1577 = vmatprep.subr.bf16.mxu0 %v6072_v44  ;;  %1567 = vmatpush2.bf16.msra.mxu1 %v6073_v16  ;;  %v6094_v44 = vld [vmem:[#allocation5_spill] sm:$0xff] }
 0x4f9   :  { %1618 = vmatprep.subr.bf16.mxu1 %v6074_v52 }
 0x4fa   :  { %1469 = vmatmul.mubr.bf16.vlgmr.msra.gmra.mxu0 %v4530_v20  ;;  %v6088_v20 = vld [vmem:[#allocation53_spill] sm:$0xff] }
 0x4fb   :  { %1578 = vmatpush1.bf16.msra.mxu0 %v6075_v28  ;;  %v6095_v28 = vld [vmem:[#allocation6_spill] sm:$0xff] }
 0x4fc   :  { %1579 = vmatprep.subr.bf16.mxu0 %v6076_v26  ;;  %v6096_v26 = vld [vmem:[#allocation7_spill] sm:$0xff] }
 0x4ff   :  { %1580 = vmatpush1.bf16.msra.mxu0 %v6077_v36  ;;  %v6097_v36 = vld [vmem:[#allocation34_spill] sm:$0xff] }
 0x500   :  { %1581 = vmatprep.subr.bf16.mxu0 %v6078_v63  ;;  %v6098_v63 = vld [vmem:[#allocation36_spill] sm:$0xff] }
 0x503   :  { %1582 = vmatpush1.bf16.msra.mxu0 %v6079_v48  ;;  %v6099_v48 = vld [vmem:[#allocation61_spill] sm:$0xff] }
 0x504   :  { %1583 = vmatprep.subr.bf16.mxu0 %v6080_v46  ;;  %v6100_v46 = vld [vmem:[#allocation62_spill] sm:$0xff] }
 0x507   :  { %1584 = vmatpush1.bf16.msra.mxu0 %v6081_v1  ;;  %v6101_v1 = vld [vmem:[#allocation63_spill] sm:$0xff] }
 0x508   :  { %1585 = vmatprep.subr.bf16.mxu0 %v6082_v56  ;;  %v6102_v56 = vld [vmem:[#allocation64_spill] sm:$0xff] }
 0x50b   :  { %1586 = vmatpush1.bf16.msra.mxu0 %v6083_v50  ;;  %v6103_v50 = vld [vmem:[#allocation65_spill] sm:$0xff] }
 0x50c   :  { %1587 = vmatprep.subr.bf16.mxu0 %v6084_v24  ;;  %v6104_v24 = vld [vmem:[#allocation66_spill] sm:$0xff] }
 0x50f   :  { %1588 = vmatpush1.bf16.msra.mxu0 %v6085_v62  ;;  %v6105_v62 = vld [vmem:[#allocation67_spill] sm:$0xff] }
 0x510   :  { %1589 = vmatprep.subr.bf16.mxu0 %v6086_v30  ;;  %v4633_v30 = vld [vmem:[%s5636_s1 + $0x154] ss:$24 sps:$4 sm:$0xff]  }
 0x511   :  { %6106 = vst [vmem:[#allocation10_spill] sm:$0xff] %v4633_v30 }
 0x513   :  { %1590 = vmatpush1.bf16.msra.mxu0 %v6087_v58 }
 0x514   :  { %1591 = vmatprep.subr.bf16.mxu0 %v6088_v20 }
 0x517   :  { %1592 = vmatpush1.bf16.msra.mxu0 %v6089_v25 }
 0x518   :  { %1593 = vmatprep.subr.bf16.mxu0 %v6090_v21 }
 0x51b   :  { %1594 = vmatpush2.bf16.msra.mxu0 %v6091_v19 }
 0x51c   :  { %1595 = vmatprep.subr.bf16.mxu0 %v6092_v47 }
 0x51f   :  { %1596 = vmatpush2.bf16.msra.mxu0 %v6093_v41 }
 0x520   :  { %1597 = vmatprep.subr.bf16.mxu0 %v6094_v44 }
 0x523   :  { %1598 = vmatpush2.bf16.msra.mxu0 %v6095_v28  ;;  %v2365_v28 = vld [vmem:[%s5637_s0 + $0x60] sm:$0xff] }
 0x524   :  { %1599 = vmatprep.subr.bf16.mxu0 %v6096_v26  ;;  %v1346_v26 = vunpack.c.l.bf16 %v2365_v28  ;;  %v1347_v27 = vunpack.c.h.bf16 %v2365_v28 }
 0x527   :  { %1600 = vmatpush2.bf16.msra.mxu0 %v6097_v36 }
 0x528   :  { %1601 = vmatprep.subr.bf16.mxu0 %v6098_v63 }
 0x52b   :  { %1602 = vmatpush2.bf16.msra.mxu0 %v6099_v48 }
 0x52c   :  { %1603 = vmatprep.subr.bf16.mxu0 %v6100_v46 }
 0x52f   :  { %1604 = vmatpush2.bf16.msra.mxu0 %v6101_v1 }
 0x530   :  { %1605 = vmatprep.subr.bf16.mxu0 %v6102_v56 }
 0x533   :  { %1606 = vmatpush2.bf16.msra.mxu0 %v6103_v50 }
 0x534   :  { %1607 = vmatprep.subr.bf16.mxu0 %v6104_v24 }
 0x537   :  { %1608 = vmatpush2.bf16.msra.mxu0 %v6105_v62 }
 0x538   :  { %1718 = vmatprep.subr.bf16.mxu0 %v4633_v30  ;;  %v2366_v30 = vld [vmem:[%s5637_s0 + $0x68] sm:$0xff] }
 0x539   :  { %v1348_v56 = vunpack.c.l.bf16 %v2366_v30 }
 0x57a   :  { %v1388_v58 = vpop.f32.mrf.mxu0  ;;  %v1429_v20 = vpop.f32.mrf.mxu1 }
 0x57b   :  { %v1477_v18 = vadd.f32 %v1388_v58, %v1346_v26 }
 0x57c   :  { %v1390_v25 = vpop.f32.mrf.mxu0  ;;  %v1431_v21 = vpop.f32.mrf.mxu1 }
 0x57d   :  { %v1478_v62 = vadd.f32 %v1390_v25, %v1347_v27  ;;  %v2368_v24 = vmul.f32 -1.442695, %v1477_v18 }
 0x57e   :  { %v1392_v19 = vpop.f32.mrf.mxu0  ;;  %v1433_v47 = vpop.f32.mrf.mxu1 }
 0x57f   :  { %v2369_v50 = vmul.f32 -1.442695, %v1478_v62  ;;  %2707 = vpow2.f32 %v2368_v24  ;;  %v1349_v19 = vunpack.c.h.bf16 %v2366_v30  ;;  %v1491_v47 = vadd.f32 %v1429_v20, %v1348_v56  ;;  %v2367_v24 = vld [vmem:[%s5637_s0 + $0x70] sm:$0xff] }
 0x580   :  { %v1393_v41 = vpop.f32.mrf.mxu0  ;;  %v1434_v44 = vpop.f32.mrf.mxu1  ;;  %v1350_v58 = vunpack.c.l.bf16 %v2367_v24  ;;  %v6107_v20 = vld [vmem:[#allocation58_spill] sm:$0xff] }
 0x581   :  { %2709 = vpow2.f32 %v2369_v50  ;;  %v1492_v41 = vadd.f32 %v1431_v21, %v1349_v19  ;;  %v2370_v44 = vmul.f32 -1.442695, %v1491_v47 }
 0x583   :  { %v2371_v1 = vmul.f32 -1.442695, %v1492_v41  ;;  %2711 = vpow2.f32 %v2370_v44 }
 0x585   :  { %2713 = vpow2.f32 %v2371_v1  ;;  %v1351_v1 = vunpack.c.h.bf16 %v2367_v24 }
 0x58c   :  { %v2708_v46 = vpop.eup %2707 }
 0x58d   :  { %v1485_v28 = vadd.f32 1.0, %v2708_v46 }
 0x58e   :  { %v2710_v48 = vpop.eup %2709 }
 0x58f   :  { %v1486_v27 = vadd.f32 1.0, %v2710_v48  ;;  %2715 = vrcp.f32 %v1485_v28 }
 0x590   :  { %v2712_v18 = vpop.eup %2711 }
 0x591   :  { %2717 = vrcp.f32 %v1486_v27  ;;  %v1499_v50 = vadd.f32 1.0, %v2712_v18 }
 0x592   :  { %v2714_v62 = vpop.eup %2713 }
 0x593   :  { %v1500_v56 = vadd.f32 1.0, %v2714_v62  ;;  %2719 = vrcp.f32 %v1499_v50 }
 0x595   :  { %2721 = vrcp.f32 %v1500_v56 }
 0x59c   :  { %v2716_v21 = vpop.eup %2715 }
 0x59e   :  { %v2718_v19 = vpop.eup %2717 }
 0x5a0   :  { %v2720_v18 = vpop.eup %2719 }
 0x5a1   :  { %v1513_v63 = vsub.f32 1.0, %v2720_v18  ;;  %v1517_v24 = vmul.f32 %v2720_v18, %v4522_v54  ;;  %v6119_v18 = vld [vmem:[#allocation62_spill] sm:$0xff] }
 0x5a2   :  { %v2722_v62 = vpop.eup %2721 }
 0x5ba   :  { %v1470_v30 = vpop.f32.mrf.mxu0 }
 0x5bb   :  { %v1505_v25 = vadd.f32 %v1470_v30, %v6107_v20  ;;  %v1514_v20 = vsub.f32 1.0, %v2722_v62 }
 0x5bc   :  { %v1472_v26 = vpop.f32.mrf.mxu0 }
 0x5bd   :  { %v1507_v46 = vmul.f32 %v2716_v21, %v1505_v25  ;;  %v1506_v48 = vadd.f32 %v1472_v26, %v3672_v29  ;;  %v1518_v21 = vmul.f32 %v2722_v62, %v4524_v22  ;;  %v6120_v62 = vld [vmem:[#allocation63_spill] sm:$0xff] }
 0x5be   :  { %v1474_v47 = vpop.f32.mrf.mxu0 }
 0x5bf   :  { %v1509_v41 = vadd.f32 %v1507_v46, %v1350_v58  ;;  %v1508_v44 = vmul.f32 %v2718_v19, %v1506_v48  ;;  %v4962_v48 = vld [vmem:[%s5636_s1 + $0x2a8] ss:$24 sps:$4 sm:$0xff]   ;;  %v4968_v19 = vld [vmem:[%s5636_s1 + $0x27c] ss:$24 sps:$4 sm:$0xff]   ;;  %v4974_v47 = vld [vmem:[%s5636_s1 + $0x278] ss:$24 sps:$4 sm:$0xff]  }
 0x5c0   :  { %v1475_v28 = vpop.f32.mrf.mxu0  ;;  %6112 = vst [vmem:[#allocation12_spill] sm:$0xff] %v4962_v48  ;;  %6113 = vst [vmem:[#allocation13_spill] sm:$0xff] %v4968_v19 }
 0x5c1   :  { %2723 = vtanh.f32 %v1509_v41  ;;  %v1510_v27 = vadd.f32 %v1508_v44, %v1351_v1  ;;  %v4956_v1 = vld [vmem:[%s5636_s1 + $0x2ac] ss:$24 sps:$4 sm:$0xff]   ;;  %6114 = vst [vmem:[#allocation37_spill] sm:$0xff] %v4974_v47  ;;  %v6116_v44 = vld [vmem:[#allocation34_spill] sm:$0xff] }
 0x5c2   :  { %6111 = vst [vmem:[#allocation35_spill] sm:$0xff] %v4956_v1  ;;  %v4980_v41 = vld [vmem:[%s5636_s1 + $0x24c] ss:$24 sps:$4 sm:$0xff]  }
 0x5c3   :  { %2725 = vtanh.f32 %v1510_v27  ;;  %6115 = vst [vmem:[#allocation38_spill] sm:$0xff] %v4980_v41  ;;  %v6117_v28 = vld [vmem:[#allocation36_spill] sm:$0xff]  ;;  %v6118_v27 = vld [vmem:[#allocation61_spill] sm:$0xff] }
 0x5ce   :  { %v2724_v30 = vpop.eup %2723 }
 0x5cf   :  { %v1515_v36 = vmul.f32 %v2724_v30, %v1513_v63  ;;  %v4672_v63 = vld [vmem:[%s5636_s1 + $0x124] ss:$24 sps:$4 sm:$0xff]  }
 0x5d0   :  { %v2726_v50 = vpop.eup %2725  ;;  %v6121_v30 = vld [vmem:[#allocation64_spill] sm:$0xff] }
 0x5d1   :  { %v1516_v25 = vmul.f32 %v2726_v50, %v1514_v20  ;;  %v4649_v26 = vadd.f32 %v1517_v24, %v1515_v36  ;;  %v4666_v36 = vld [vmem:[%s5636_s1 + $0x150] ss:$24 sps:$4 sm:$0xff]  }
 0x5d2   :  { %v4950_v20 = vld [vmem:[%s5636_s1 + $0x2d8] ss:$24 sps:$4 sm:$0xff]   ;;  %v6122_v50 = vld [vmem:[#allocation65_spill] sm:$0xff] }
 0x5d3   :  { %v4651_v56 = vadd.f32 %v1518_v21, %v1516_v25  ;;  %v4657_v46 = vpack.c.bf16 %v4649_v26, %v4649_v26  ;;  %6110 = vst [vmem:[#allocation33_spill] sm:$0xff] %v4950_v20  ;;  %v6123_v24 = vld [vmem:[#allocation66_spill] sm:$0xff]  ;;  %v6124_v25 = vld [vmem:[#allocation67_spill] sm:$0xff] }
 0x5d4   :  { %v6125_v21 = vld [vmem:[#allocation10_spill] sm:$0xff] }
 0x5d5   :  { %v1535_v58 = vpack.c.bf16 %v4651_v56, %v4651_v56 }
 0x5d7   :  { %1568 = vmatprep.mubr.bf16.mxu1 %v1535_v58  ;;  %1609 = vmatprep.mubr.bf16.mxu0 %v1535_v58 }
 0x5d8   :  { %1569 = vmatmul.mubr.bf16.vlgmr.msra.gmra.mxu1 %v4657_v46  ;;  %1610 = vmatmul.mubr.bf16.vlgmr.msra.gmra.mxu0 %v4657_v46 }
 0x5d9   :  { %1619 = vmatpush1.bf16.msra.mxu1 %v4175_v32  ;;  %1650 = vmatprep.mubr.bf16.mxu1 %v1535_v58  ;;  %v4680_v32 = vld [vmem:[%s5636_s1 + $0x120] ss:$24 sps:$4 sm:$0xff]  }
 0x5da   :  { %1620 = vmatprep.subr.bf16.mxu1 %v4181_v34  ;;  %1719 = vmatpush1.bf16.msra.mxu0 %v4666_v36  ;;  %v4686_v34 = vld [vmem:[%s5636_s1 + $0xf4] ss:$24 sps:$4 sm:$0xff]  }
 0x5db   :  { %1720 = vmatprep.subr.bf16.mxu0 %v4672_v63 }
 0x5dd   :  { %1621 = vmatpush1.bf16.msra.mxu1 %v4189_v57  ;;  %v4694_v57 = vld [vmem:[%s5636_s1 + $0xf0] ss:$24 sps:$4 sm:$0xff]  }
 0x5de   :  { %1622 = vmatprep.subr.bf16.mxu1 %v4195_v23  ;;  %1721 = vmatpush1.bf16.msra.mxu0 %v4680_v32  ;;  %v4700_v23 = vld [vmem:[%s5636_s1 + $0xc4] ss:$24 sps:$4 sm:$0xff]  }
 0x5df   :  { %1722 = vmatprep.subr.bf16.mxu0 %v4686_v34 }
 0x5e1   :  { %1623 = vmatpush1.bf16.msra.mxu1 %v4203_v15  ;;  %v4708_v15 = vld [vmem:[%s5636_s1 + $0xc0] ss:$24 sps:$4 sm:$0xff]  }
 0x5e2   :  { %1624 = vmatprep.subr.bf16.mxu1 %v4209_v39  ;;  %1723 = vmatpush1.bf16.msra.mxu0 %v4694_v57  ;;  %v4714_v39 = vld [vmem:[%s5636_s1 + $0x94] ss:$24 sps:$4 sm:$0xff]  }
 0x5e3   :  { %1724 = vmatprep.subr.bf16.mxu0 %v4700_v23 }
 0x5e5   :  { %1625 = vmatpush1.bf16.msra.mxu1 %v4217_v53  ;;  %v4722_v53 = vld [vmem:[%s5636_s1 + $0x90] ss:$24 sps:$4 sm:$0xff]  }
 0x5e6   :  { %1626 = vmatprep.subr.bf16.mxu1 %v4223_v61  ;;  %1725 = vmatpush1.bf16.msra.mxu0 %v4708_v15  ;;  %v4728_v61 = vld [vmem:[%s5636_s1 + $0x64] ss:$24 sps:$4 sm:$0xff]  }
 0x5e7   :  { %1726 = vmatprep.subr.bf16.mxu0 %v4714_v39 }
 0x5e9   :  { %1627 = vmatpush1.bf16.msra.mxu1 %v4231_v42  ;;  %v4736_v42 = vld [vmem:[%s5636_s1 + $0x60] ss:$24 sps:$4 sm:$0xff]  }
 0x5ea   :  { %1628 = vmatprep.subr.bf16.mxu1 %v4237_v14  ;;  %1727 = vmatpush1.bf16.msra.mxu0 %v4722_v53  ;;  %v4742_v14 = vld [vmem:[%s5636_s1 + $0x34] ss:$24 sps:$4 sm:$0xff]  }
 0x5eb   :  { %1728 = vmatprep.subr.bf16.mxu0 %v4728_v61 }
 0x5ed   :  { %1629 = vmatpush1.bf16.msra.mxu1 %v4245_v12  ;;  %v4750_v12 = vld [vmem:[%s5636_s1 + $0x30] ss:$24 sps:$4 sm:$0xff]  }
 0x5ee   :  { %1630 = vmatprep.subr.bf16.mxu1 %v4251_v33  ;;  %1729 = vmatpush1.bf16.msra.mxu0 %v4736_v42  ;;  %v4756_v33 = vld [vmem:[%s5636_s1 + $0x4] ss:$24 sps:$4 sm:$0xff]  }
 0x5ef   :  { %1730 = vmatprep.subr.bf16.mxu0 %v4742_v14 }
 0x5f1   :  { %1631 = vmatpush1.bf16.msra.mxu1 %v4259_v49  ;;  %v4764_v49 = vld [vmem:[%s5636_s1] ss:$24 sps:$4 sm:$0xff]  }
 0x5f2   :  { %1632 = vmatprep.subr.bf16.mxu1 %v4265_v37  ;;  %1731 = vmatpush1.bf16.msra.mxu0 %v4750_v12  ;;  %v4770_v37 = vld [vmem:[%s5636_s1 + $0x2d4] ss:$24 sps:$4 sm:$0xff]  }
 0x5f3   :  { %1732 = vmatprep.subr.bf16.mxu0 %v4756_v33 }
 0x5f5   :  { %1633 = vmatpush1.bf16.msra.mxu1 %v4273_v45  ;;  %v4778_v45 = vld [vmem:[%s5636_s1 + $0x2d0] ss:$24 sps:$4 sm:$0xff]  }
 0x5f6   :  { %1634 = vmatprep.subr.bf16.mxu1 %v4279_v55  ;;  %1733 = vmatpush1.bf16.msra.mxu0 %v4764_v49  ;;  %v4784_v55 = vld [vmem:[%s5636_s1 + $0x2a4] ss:$24 sps:$4 sm:$0xff]  }
 0x5f7   :  { %1734 = vmatprep.subr.bf16.mxu0 %v4770_v37 }
 0x5f9   :  { %1635 = vmatpush2.bf16.msra.mxu1 %v4287_v40  ;;  %v4792_v40 = vld [vmem:[%s5636_s1 + $0x2a0] ss:$24 sps:$4 sm:$0xff]  }
 0x5fa   :  { %1636 = vmatprep.subr.bf16.mxu1 %v4293_v11  ;;  %1735 = vmatpush2.bf16.msra.mxu0 %v4778_v45  ;;  %v4798_v11 = vld [vmem:[%s5636_s1 + $0x274] ss:$24 sps:$4 sm:$0xff]  }
 0x5fb   :  { %1736 = vmatprep.subr.bf16.mxu0 %v4784_v55 }
 0x5fd   :  { %1637 = vmatpush2.bf16.msra.mxu1 %v6050_v38  ;;  %v4812_v38 = vld [vmem:[%s5636_s1 + $0x244] ss:$24 sps:$4 sm:$0xff]  }
 0x5fe   :  { %1638 = vmatprep.subr.bf16.mxu1 %v4307_v35  ;;  %1737 = vmatpush2.bf16.msra.mxu0 %v4792_v40  ;;  %v4806_v35 = vld [vmem:[%s5636_s1 + $0x270] ss:$24 sps:$4 sm:$0xff]  }
 0x5ff   :  { %1738 = vmatprep.subr.bf16.mxu0 %v4798_v11 }
 0x601   :  { %1639 = vmatpush2.bf16.msra.mxu1 %v6052_v51  ;;  %v4826_v51 = vld [vmem:[%s5636_s1 + $0x214] ss:$24 sps:$4 sm:$0xff]  }
 0x602   :  { %1640 = vmatprep.subr.bf16.mxu1 %v4321_v60  ;;  %1739 = vmatpush2.bf16.msra.mxu0 %v4806_v35  ;;  %v4820_v60 = vld [vmem:[%s5636_s1 + $0x240] ss:$24 sps:$4 sm:$0xff]  }
 0x603   :  { %1740 = vmatprep.subr.bf16.mxu0 %v4812_v38 }
 0x605   :  { %1641 = vmatpush2.bf16.msra.mxu1 %v6055_v31  ;;  %v4845_v31 = vld [vmem:[%s5636_s1 + $0x15c] ss:$24 sps:$4 sm:$0xff]  }
 0x606   :  { %1642 = vmatprep.subr.bf16.mxu1 %v6056_v0  ;;  %1741 = vmatpush2.bf16.msra.mxu0 %v4820_v60  ;;  %v4854_v0 = vld [vmem:[%s5636_s1 + $0x158] ss:$24 sps:$4 sm:$0xff]  }
 0x607   :  { %1742 = vmatprep.subr.bf16.mxu0 %v4826_v51 }
 0x609   :  { %1643 = vmatpush2.bf16.msra.mxu1 %v6059_v43  ;;  %v4860_v43 = vld [vmem:[%s5636_s1 + $0x12c] ss:$24 sps:$4 sm:$0xff]  }
 0x60a   :  { %1644 = vmatprep.subr.bf16.mxu1 %v6060_v2  ;;  %1743 = vmatpush2.bf16.msra.mxu0 %v6061_v3  ;;  %v4866_v2 = vld [vmem:[%s5636_s1 + $0x128] ss:$24 sps:$4 sm:$0xff]   ;;  %v4872_v3 = vld [vmem:[%s5636_s1 + $0xfc] ss:$24 sps:$4 sm:$0xff]  }
 0x60b   :  { %1744 = vmatprep.subr.bf16.mxu0 %v6062_v4  ;;  %v4878_v4 = vld [vmem:[%s5636_s1 + $0xf8] ss:$24 sps:$4 sm:$0xff]  }
 0x60d   :  { %1645 = vmatpush2.bf16.msra.mxu1 %v6063_v5  ;;  %v4884_v5 = vld [vmem:[%s5636_s1 + $0xcc] ss:$24 sps:$4 sm:$0xff]  }
 0x60e   :  { %1646 = vmatprep.subr.bf16.mxu1 %v6064_v6  ;;  %1745 = vmatpush2.bf16.msra.mxu0 %v6065_v7  ;;  %v4890_v6 = vld [vmem:[%s5636_s1 + $0xc8] ss:$24 sps:$4 sm:$0xff]   ;;  %v4896_v7 = vld [vmem:[%s5636_s1 + $0x9c] ss:$24 sps:$4 sm:$0xff]  }
 0x60f   :  { %1746 = vmatprep.subr.bf16.mxu0 %v6066_v8  ;;  %v4902_v8 = vld [vmem:[%s5636_s1 + $0x98] ss:$24 sps:$4 sm:$0xff]  }
 0x611   :  { %1647 = vmatpush2.bf16.msra.mxu1 %v6067_v9  ;;  %v4908_v9 = vld [vmem:[%s5636_s1 + $0x6c] ss:$24 sps:$4 sm:$0xff]  }
 0x612   :  { %1648 = vmatprep.subr.bf16.mxu1 %v6068_v10  ;;  %1747 = vmatpush2.bf16.msra.mxu0 %v6069_v13  ;;  %v4914_v10 = vld [vmem:[%s5636_s1 + $0x68] ss:$24 sps:$4 sm:$0xff]   ;;  %v4920_v13 = vld [vmem:[%s5636_s1 + $0x3c] ss:$24 sps:$4 sm:$0xff]  }
 0x613   :  { %1748 = vmatprep.subr.bf16.mxu0 %v6070_v17  ;;  %v4926_v17 = vld [vmem:[%s5636_s1 + $0x38] ss:$24 sps:$4 sm:$0xff]  }
 0x615   :  { %1649 = vmatpush2.bf16.msra.mxu1 %v6071_v59  ;;  %v4932_v59 = vld [vmem:[%s5636_s1 + $0xc] ss:$24 sps:$4 sm:$0xff]  }
 0x616   :  { %1759 = vmatprep.subr.bf16.mxu1 %v4845_v31  ;;  %1749 = vmatpush2.bf16.msra.mxu0 %v6073_v16  ;;  %v4938_v16 = vld [vmem:[%s5636_s1 + $0x8] ss:$24 sps:$4 sm:$0xff]  }
 0x617   :  { %1800 = vmatprep.subr.bf16.mxu0 %v6074_v52  ;;  %6108 = vst [vmem:[#allocation31_spill] sm:$0xff] %v4938_v16  ;;  %v4944_v52 = vld [vmem:[%s5636_s1 + $0x2dc] ss:$24 sps:$4 sm:$0xff]  }
 0x618   :  { %1651 = vmatmul.mubr.bf16.vlgmr.msra.gmra.mxu1 %v4657_v46  ;;  %6109 = vst [vmem:[#allocation11_spill] sm:$0xff] %v4944_v52 }
 0x619   :  { %1760 = vmatpush1.bf16.msra.mxu1 %v4854_v0 }
 0x61a   :  { %1761 = vmatprep.subr.bf16.mxu1 %v4860_v43 }
 0x61d   :  { %1762 = vmatpush1.bf16.msra.mxu1 %v4866_v2 }
 0x61e   :  { %1763 = vmatprep.subr.bf16.mxu1 %v4872_v3 }
 0x621   :  { %1764 = vmatpush1.bf16.msra.mxu1 %v4878_v4 }
 0x622   :  { %1765 = vmatprep.subr.bf16.mxu1 %v4884_v5 }
 0x625   :  { %1766 = vmatpush1.bf16.msra.mxu1 %v4890_v6 }
 0x626   :  { %1767 = vmatprep.subr.bf16.mxu1 %v4896_v7 }
 0x629   :  { %1768 = vmatpush1.bf16.msra.mxu1 %v4902_v8 }
 0x62a   :  { %1769 = vmatprep.subr.bf16.mxu1 %v4908_v9 }
 0x62d   :  { %1770 = vmatpush1.bf16.msra.mxu1 %v4914_v10 }
 0x62e   :  { %1771 = vmatprep.subr.bf16.mxu1 %v4920_v13 }
 0x631   :  { %1772 = vmatpush1.bf16.msra.mxu1 %v4926_v17 }
 0x632   :  { %1773 = vmatprep.subr.bf16.mxu1 %v4932_v59 }
 0x635   :  { %1774 = vmatpush1.bf16.msra.mxu1 %v4938_v16 }
 0x636   :  { %1775 = vmatprep.subr.bf16.mxu1 %v4944_v52 }
 0x639   :  { %1776 = vmatpush2.bf16.msra.mxu1 %v4950_v20 }
 0x63a   :  { %1777 = vmatprep.subr.bf16.mxu1 %v4956_v1 }
 0x63d   :  { %1778 = vmatpush2.bf16.msra.mxu1 %v4962_v48 }
 0x63e   :  { %1779 = vmatprep.subr.bf16.mxu1 %v4968_v19 }
 0x641   :  { %1780 = vmatpush2.bf16.msra.mxu1 %v4974_v47 }
 0x642   :  { %1781 = vmatprep.subr.bf16.mxu1 %v4980_v41 }
 0x645   :  { %1782 = vmatpush2.bf16.msra.mxu1 %v6116_v44 }
 0x646   :  { %1783 = vmatprep.subr.bf16.mxu1 %v6117_v28 }
 0x649   :  { %1784 = vmatpush2.bf16.msra.mxu1 %v6118_v27 }
 0x64a   :  { %1785 = vmatprep.subr.bf16.mxu1 %v6119_v18 }
 0x64d   :  { %1786 = vmatpush2.bf16.msra.mxu1 %v6120_v62  ;;  %v2372_v62 = vld [vmem:[%s5637_s0 + $0x78] sm:$0xff] }
 0x64e   :  { %1787 = vmatprep.subr.bf16.mxu1 %v6121_v30  ;;  %v1528_v30 = vunpack.c.l.bf16 %v2372_v62 }
 0x651   :  { %1788 = vmatpush2.bf16.msra.mxu1 %v6122_v50  ;;  %v1529_v50 = vunpack.c.h.bf16 %v2372_v62 }
 0x652   :  { %1789 = vmatprep.subr.bf16.mxu1 %v6123_v24 }
 0x655   :  { %1790 = vmatpush2.bf16.msra.mxu1 %v6124_v25 }
 0x656   :  { %1900 = vmatprep.subr.bf16.mxu1 %v6125_v21  ;;  %v2373_v21 = vld [vmem:[%s5637_s0 + $0x80] sm:$0xff] }
 0x657   :  { %v1530_v19 = vunpack.c.l.bf16 %v2373_v21 }
 0x698   :  { %v1570_v58 = vpop.f32.mrf.mxu1  ;;  %v1611_v46 = vpop.f32.mrf.mxu0 }
 0x699   :  { %v1659_v41 = vadd.f32 %v1570_v58, %v1528_v30 }
 0x69a   :  { %v1572_v44 = vpop.f32.mrf.mxu1  ;;  %v1613_v28 = vpop.f32.mrf.mxu0 }
 0x69b   :  { %v1660_v24 = vadd.f32 %v1572_v44, %v1529_v50  ;;  %v2375_v47 = vmul.f32 -1.442695, %v1659_v41 }
 0x69c   :  { %v1574_v54 = vpop.f32.mrf.mxu1  ;;  %v1615_v27 = vpop.f32.mrf.mxu0 }
 0x69d   :  { %v2376_v25 = vmul.f32 -1.442695, %v1660_v24  ;;  %2727 = vpow2.f32 %v2375_v47  ;;  %v1531_v54 = vunpack.c.h.bf16 %v2373_v21  ;;  %v2374_v47 = vld [vmem:[%s5637_s0 + $0x88] sm:$0xff] }
 0x69e   :  { %v1575_v22 = vpop.f32.mrf.mxu1  ;;  %v1616_v18 = vpop.f32.mrf.mxu0 }
 0x69f   :  { %2729 = vpow2.f32 %v2376_v25  ;;  %v1673_v22 = vadd.f32 %v1611_v46, %v1530_v19  ;;  %v1674_v27 = vadd.f32 %v1613_v28, %v1531_v54  ;;  %v1532_v46 = vunpack.c.l.bf16 %v2374_v47  ;;  %v6126_v28 = vld [vmem:[#allocation58_spill] sm:$0xff] }
 0x6a1   :  { %v2377_v18 = vmul.f32 -1.442695, %v1673_v22  ;;  %v2378_v48 = vmul.f32 -1.442695, %v1674_v27 }
 0x6a3   :  { %2731 = vpow2.f32 %v2377_v18 }
 0x6a4   :  { %2733 = vpow2.f32 %v2378_v48  ;;  %v1533_v48 = vunpack.c.h.bf16 %v2374_v47 }
 0x6aa   :  { %v2728_v1 = vpop.eup %2727 }
 0x6ab   :  { %v1667_v62 = vadd.f32 1.0, %v2728_v1 }
 0x6ac   :  { %v2730_v20 = vpop.eup %2729 }
 0x6ad   :  { %v1668_v58 = vadd.f32 1.0, %v2730_v20  ;;  %2735 = vrcp.f32 %v1667_v62 }
 0x6af   :  { %2737 = vrcp.f32 %v1668_v58 }
 0x6b0   :  { %v2732_v41 = vpop.eup %2731 }
 0x6b1   :  { %v2734_v44 = vpop.eup %2733  ;;  %v1681_v30 = vadd.f32 1.0, %v2732_v41 }
 0x6b2   :  { %v1682_v19 = vadd.f32 1.0, %v2734_v44 }
 0x6b3   :  { %2739 = vrcp.f32 %v1681_v30 }
 0x6b4   :  { %2741 = vrcp.f32 %v1682_v19 }
 0x6ba   :  { %v2736_v25 = vpop.eup %2735 }
 0x6bc   :  { %v2738_v54 = vpop.eup %2737 }
 0x6c0   :  { %v2740_v41 = vpop.eup %2739 }
 0x6c1   :  { %v2742_v44 = vpop.eup %2741  ;;  %v1695_v52 = vsub.f32 1.0, %v2740_v41  ;;  %v1699_v47 = vmul.f32 %v2740_v41, %v4649_v26  ;;  %v2966_v41 = vld [vmem:[%s5636_s1 + $0x184] ss:$24 sps:$4 sm:$0xff]  }
 0x6d8   :  { %v1652_v50 = vpop.f32.mrf.mxu1 }
 0x6d9   :  { %v1687_v24 = vadd.f32 %v1652_v50, %v6126_v28  ;;  %v1696_v28 = vsub.f32 1.0, %v2742_v44 }
 0x6da   :  { %v1654_v21 = vpop.f32.mrf.mxu1 }
 0x6db   :  { %v1689_v1 = vmul.f32 %v2736_v25, %v1687_v24  ;;  %v1688_v20 = vadd.f32 %v1654_v21, %v3672_v29  ;;  %v1700_v25 = vmul.f32 %v2742_v44, %v4651_v56  ;;  %v5243_v44 = vld [vmem:[%s5636_s1 + $0x190] ss:$24 sps:$4 sm:$0xff]  }
 0x6dc   :  { %v1656_v22 = vpop.f32.mrf.mxu1 }
 0x6dd   :  { %v1691_v27 = vadd.f32 %v1689_v1, %v1532_v46  ;;  %v1690_v18 = vmul.f32 %v2738_v54, %v1688_v20  ;;  %v5207_v20 = vld [vmem:[%s5636_s1 + $0x1f0] ss:$24 sps:$4 sm:$0xff]   ;;  %v5213_v54 = vld [vmem:[%s5636_s1 + $0x1c4] ss:$24 sps:$4 sm:$0xff]   ;;  %v2961_v22 = vld [vmem:[%s5636_s1 + $0x1e0] ss:$24 sps:$4 sm:$0xff]  }
 0x6de   :  { %v1657_v62 = vpop.f32.mrf.mxu1 }
 0x6df   :  { %2743 = vtanh.f32 %v1691_v27  ;;  %v1692_v58 = vadd.f32 %v1690_v18, %v1533_v48  ;;  %v5041_v48 = vld [vmem:[%s5636_s1 + $0x104] ss:$24 sps:$4 sm:$0xff]   ;;  %v2962_v27 = vld [vmem:[%s5636_s1 + $0x1b4] ss:$24 sps:$4 sm:$0xff]   ;;  %v5225_v18 = vld [vmem:[%s5636_s1 + $0x1c0] ss:$24 sps:$4 sm:$0xff]  }
 0x6e0   :  { %v5231_v62 = vld [vmem:[%s5636_s1 + $0x194] ss:$24 sps:$4 sm:$0xff]  }
 0x6e1   :  { %2745 = vtanh.f32 %v1692_v58  ;;  %v2965_v58 = vld [vmem:[%s5636_s1 + $0x1b0] ss:$24 sps:$4 sm:$0xff]  }
 0x6ec   :  { %v2744_v50 = vpop.eup %2743 }
 0x6ed   :  { %v1697_v16 = vmul.f32 %v2744_v50, %v1695_v52  ;;  %v5027_v52 = vld [vmem:[%s5636_s1 + $0x134] ss:$24 sps:$4 sm:$0xff]   ;;  %v2968_v50 = vld [vmem:[%s5636_s1 + $0x180] ss:$24 sps:$4 sm:$0xff]  }
 0x6ee   :  { %v2746_v30 = vpop.eup %2745 }
 0x6ef   :  { %v1698_v24 = vmul.f32 %v2746_v30, %v1696_v28  ;;  %v5006_v21 = vadd.f32 %v1699_v47, %v1697_v16  ;;  %v5021_v16 = vld [vmem:[%s5636_s1 + $0x160] ss:$24 sps:$4 sm:$0xff]   ;;  %v5035_v28 = vld [vmem:[%s5636_s1 + $0x130] ss:$24 sps:$4 sm:$0xff]   ;;  %v2969_v30 = vld [vmem:[%s5636_s1 + $0x164] ss:$24 sps:$4 sm:$0xff]  }
 0x6f0   :  { %v2977_v47 = vld [vmem:[%s5636_s1 + $0x18c] ss:$24 sps:$4 sm:$0xff]  }
 0x6f1   :  { %v5008_v19 = vadd.f32 %v1700_v25, %v1698_v24  ;;  %v5014_v1 = vpack.c.bf16 %v5006_v21, %v5006_v21  ;;  %v2978_v24 = vld [vmem:[%s5636_s1 + $0x188] ss:$24 sps:$4 sm:$0xff]   ;;  %v5306_v25 = vld [vmem:[%s5639_s3 + $0xf8] sm:$0xff] }
 0x6f3   :  { %v1717_v46 = vpack.c.bf16 %v5008_v19, %v5008_v19 }
 0x6f5   :  { %1750 = vmatprep.mubr.bf16.mxu0 %v1717_v46  ;;  %1791 = vmatprep.mubr.bf16.mxu1 %v1717_v46 }
 0x6f6   :  { %1751 = vmatmul.mubr.bf16.vlgmr.msra.gmra.mxu0 %v5014_v1  ;;  %1792 = vmatmul.mubr.bf16.vlgmr.msra.gmra.mxu1 %v5014_v1 }
 0x6f7   :  { %1801 = vmatpush1.bf16.msra.mxu0 %v5021_v16  ;;  %1832 = vmatprep.mubr.bf16.mxu0 %v1717_v46 }
 0x6f8   :  { %1802 = vmatprep.subr.bf16.mxu0 %v5027_v52  ;;  %1901 = vmatpush1.bf16.msra.mxu1 %v4666_v36  ;;  %v5049_v36 = vld [vmem:[%s5636_s1 + $0x100] ss:$24 sps:$4 sm:$0xff]  }
 0x6f9   :  { %1902 = vmatprep.subr.bf16.mxu1 %v4672_v63  ;;  %v5055_v63 = vld [vmem:[%s5636_s1 + $0xd4] ss:$24 sps:$4 sm:$0xff]  }
 0x6fb   :  { %1803 = vmatpush1.bf16.msra.mxu0 %v5035_v28 }
 0x6fc   :  { %1804 = vmatprep.subr.bf16.mxu0 %v5041_v48  ;;  %1903 = vmatpush1.bf16.msra.mxu1 %v4680_v32  ;;  %v5063_v32 = vld [vmem:[%s5636_s1 + $0xd0] ss:$24 sps:$4 sm:$0xff]  }
 0x6fd   :  { %1904 = vmatprep.subr.bf16.mxu1 %v4686_v34  ;;  %v5069_v34 = vld [vmem:[%s5636_s1 + $0xa4] ss:$24 sps:$4 sm:$0xff]  }
 0x6ff   :  { %1805 = vmatpush1.bf16.msra.mxu0 %v5049_v36 }
 0x700   :  { %1806 = vmatprep.subr.bf16.mxu0 %v5055_v63  ;;  %1905 = vmatpush1.bf16.msra.mxu1 %v4694_v57  ;;  %v5077_v57 = vld [vmem:[%s5636_s1 + $0xa0] ss:$24 sps:$4 sm:$0xff]  }
 0x701   :  { %1906 = vmatprep.subr.bf16.mxu1 %v4700_v23  ;;  %v5083_v23 = vld [vmem:[%s5636_s1 + $0x74] ss:$24 sps:$4 sm:$0xff]  }
 0x703   :  { %1807 = vmatpush1.bf16.msra.mxu0 %v5063_v32 }
 0x704   :  { %1808 = vmatprep.subr.bf16.mxu0 %v5069_v34  ;;  %1907 = vmatpush1.bf16.msra.mxu1 %v4708_v15  ;;  %v5091_v15 = vld [vmem:[%s5636_s1 + $0x70] ss:$24 sps:$4 sm:$0xff]  }
 0x705   :  { %1908 = vmatprep.subr.bf16.mxu1 %v4714_v39  ;;  %v5097_v39 = vld [vmem:[%s5636_s1 + $0x44] ss:$24 sps:$4 sm:$0xff]  }
 0x707   :  { %1809 = vmatpush1.bf16.msra.mxu0 %v5077_v57 }
 0x708   :  { %1810 = vmatprep.subr.bf16.mxu0 %v5083_v23  ;;  %1909 = vmatpush1.bf16.msra.mxu1 %v4722_v53  ;;  %v5105_v53 = vld [vmem:[%s5636_s1 + $0x40] ss:$24 sps:$4 sm:$0xff]  }
 0x709   :  { %1910 = vmatprep.subr.bf16.mxu1 %v4728_v61  ;;  %v5111_v61 = vld [vmem:[%s5636_s1 + $0x14] ss:$24 sps:$4 sm:$0xff]  }
 0x70b   :  { %1811 = vmatpush1.bf16.msra.mxu0 %v5091_v15 }
 0x70c   :  { %1812 = vmatprep.subr.bf16.mxu0 %v5097_v39  ;;  %1911 = vmatpush1.bf16.msra.mxu1 %v4736_v42  ;;  %v5119_v42 = vld [vmem:[%s5636_s1 + $0x10] ss:$24 sps:$4 sm:$0xff]  }
 0x70d   :  { %1912 = vmatprep.subr.bf16.mxu1 %v4742_v14  ;;  %v5125_v14 = vld [vmem:[%s5636_s1 + $0x2e4] ss:$24 sps:$4 sm:$0xff]  }
 0x70f   :  { %1813 = vmatpush1.bf16.msra.mxu0 %v5105_v53 }
 0x710   :  { %1814 = vmatprep.subr.bf16.mxu0 %v5111_v61  ;;  %1913 = vmatpush1.bf16.msra.mxu1 %v4750_v12  ;;  %v5133_v12 = vld [vmem:[%s5636_s1 + $0x2e0] ss:$24 sps:$4 sm:$0xff]  }
 0x711   :  { %1914 = vmatprep.subr.bf16.mxu1 %v4756_v33  ;;  %v5139_v33 = vld [vmem:[%s5636_s1 + $0x2b4] ss:$24 sps:$4 sm:$0xff]  }
 0x713   :  { %1815 = vmatpush1.bf16.msra.mxu0 %v5119_v42 }
 0x714   :  { %1816 = vmatprep.subr.bf16.mxu0 %v5125_v14  ;;  %1915 = vmatpush1.bf16.msra.mxu1 %v4764_v49  ;;  %v5147_v49 = vld [vmem:[%s5636_s1 + $0x2b0] ss:$24 sps:$4 sm:$0xff]  }
 0x715   :  { %1916 = vmatprep.subr.bf16.mxu1 %v4770_v37  ;;  %v5153_v37 = vld [vmem:[%s5636_s1 + $0x284] ss:$24 sps:$4 sm:$0xff]  }
 0x717   :  { %1817 = vmatpush2.bf16.msra.mxu0 %v5133_v12 }
 0x718   :  { %1818 = vmatprep.subr.bf16.mxu0 %v5139_v33  ;;  %1917 = vmatpush2.bf16.msra.mxu1 %v4778_v45  ;;  %v5161_v45 = vld [vmem:[%s5636_s1 + $0x280] ss:$24 sps:$4 sm:$0xff]  }
 0x719   :  { %1918 = vmatprep.subr.bf16.mxu1 %v4784_v55  ;;  %v5167_v55 = vld [vmem:[%s5636_s1 + $0x254] ss:$24 sps:$4 sm:$0xff]  }
 0x71b   :  { %1819 = vmatpush2.bf16.msra.mxu0 %v5147_v49 }
 0x71c   :  { %1820 = vmatprep.subr.bf16.mxu0 %v5153_v37  ;;  %1919 = vmatpush2.bf16.msra.mxu1 %v4792_v40  ;;  %v5175_v40 = vld [vmem:[%s5636_s1 + $0x250] ss:$24 sps:$4 sm:$0xff]  }
 0x71d   :  { %1920 = vmatprep.subr.bf16.mxu1 %v4798_v11  ;;  %v5181_v11 = vld [vmem:[%s5636_s1 + $0x224] ss:$24 sps:$4 sm:$0xff]  }
 0x71f   :  { %1821 = vmatpush2.bf16.msra.mxu0 %v5161_v45 }
 0x720   :  { %1822 = vmatprep.subr.bf16.mxu0 %v5167_v55  ;;  %1921 = vmatpush2.bf16.msra.mxu1 %v4806_v35  ;;  %v5189_v35 = vld [vmem:[%s5636_s1 + $0x220] ss:$24 sps:$4 sm:$0xff]  }
 0x721   :  { %1922 = vmatprep.subr.bf16.mxu1 %v4812_v38  ;;  %v5195_v38 = vld [vmem:[%s5636_s1 + $0x1f4] ss:$24 sps:$4 sm:$0xff]  }
 0x723   :  { %1823 = vmatpush2.bf16.msra.mxu0 %v5175_v40 }
 0x724   :  { %1824 = vmatprep.subr.bf16.mxu0 %v5181_v11  ;;  %1923 = vmatpush2.bf16.msra.mxu1 %v4820_v60  ;;  %v2957_v60 = vld [vmem:[%s5636_s1 + $0x210] ss:$24 sps:$4 sm:$0xff]  }
 0x725   :  { %1924 = vmatprep.subr.bf16.mxu1 %v4826_v51  ;;  %v2958_v51 = vld [vmem:[%s5636_s1 + $0x1e4] ss:$24 sps:$4 sm:$0xff]  }
 0x727   :  { %1825 = vmatpush2.bf16.msra.mxu0 %v5189_v35 }
 0x728   :  { %1826 = vmatprep.subr.bf16.mxu0 %v5195_v38  ;;  %1925 = vmatpush2.bf16.msra.mxu1 %v2957_v60 }
 0x729   :  { %1926 = vmatprep.subr.bf16.mxu1 %v2958_v51 }
 0x72b   :  { %1827 = vmatpush2.bf16.msra.mxu0 %v5207_v20 }
 0x72c   :  { %1828 = vmatprep.subr.bf16.mxu0 %v5213_v54  ;;  %1927 = vmatpush2.bf16.msra.mxu1 %v2961_v22 }
 0x72d   :  { %1928 = vmatprep.subr.bf16.mxu1 %v2962_v27 }
 0x72f   :  { %1829 = vmatpush2.bf16.msra.mxu0 %v5225_v18 }
 0x730   :  { %1830 = vmatprep.subr.bf16.mxu0 %v5231_v62  ;;  %1929 = vmatpush2.bf16.msra.mxu1 %v2965_v58 }
 0x731   :  { %1930 = vmatprep.subr.bf16.mxu1 %v2966_v41 }
 0x733   :  { %1831 = vmatpush2.bf16.msra.mxu0 %v5243_v44 }
 0x734   :  { %1941 = vmatprep.subr.bf16.mxu0 %v4845_v31  ;;  %1931 = vmatpush2.bf16.msra.mxu1 %v2968_v50  ;;  %v6127_v31 = vld [vmem:[#allocation31_spill] sm:$0xff]  ;;  %v2379_v50 = vld [vmem:[%s5637_s0 + $0x90] sm:$0xff] }
 0x735   :  { %1982 = vmatprep.subr.bf16.mxu1 %v2969_v30  ;;  %v1710_v30 = vunpack.c.l.bf16 %v2379_v50 }
 0x736   :  { %1833 = vmatmul.mubr.bf16.vlgmr.msra.gmra.mxu0 %v5014_v1 }
 0x737   :  { %1942 = vmatpush1.bf16.msra.mxu0 %v4854_v0  ;;  %v6128_v0 = vld [vmem:[#allocation11_spill] sm:$0xff] }
 0x738   :  { %1943 = vmatprep.subr.bf16.mxu0 %v4860_v43  ;;  %v6129_v43 = vld [vmem:[#allocation33_spill] sm:$0xff] }
 0x73b   :  { %1944 = vmatpush1.bf16.msra.mxu0 %v4866_v2  ;;  %v6130_v2 = vld [vmem:[#allocation35_spill] sm:$0xff] }
 0x73c   :  { %1945 = vmatprep.subr.bf16.mxu0 %v4872_v3  ;;  %v6131_v3 = vld [vmem:[#allocation12_spill] sm:$0xff] }
 0x73f   :  { %1946 = vmatpush1.bf16.msra.mxu0 %v4878_v4  ;;  %v6132_v4 = vld [vmem:[#allocation13_spill] sm:$0xff] }
 0x740   :  { %1947 = vmatprep.subr.bf16.mxu0 %v4884_v5  ;;  %v6133_v5 = vld [vmem:[#allocation37_spill] sm:$0xff] }
 0x743   :  { %1948 = vmatpush1.bf16.msra.mxu0 %v4890_v6  ;;  %v6134_v6 = vld [vmem:[#allocation38_spill] sm:$0xff] }
 0x744   :  { %1949 = vmatprep.subr.bf16.mxu0 %v4896_v7  ;;  %v2970_v7 = vld [vmem:[%s5636_s1 + $0x248] ss:$24 sps:$4 sm:$0xff]  }
 0x747   :  { %1950 = vmatpush1.bf16.msra.mxu0 %v4902_v8  ;;  %v2971_v8 = vld [vmem:[%s5636_s1 + $0x21c] ss:$24 sps:$4 sm:$0xff]  }
 0x748   :  { %1951 = vmatprep.subr.bf16.mxu0 %v4908_v9  ;;  %v2972_v9 = vld [vmem:[%s5636_s1 + $0x218] ss:$24 sps:$4 sm:$0xff]  }
 0x74b   :  { %1952 = vmatpush1.bf16.msra.mxu0 %v4914_v10  ;;  %v2973_v10 = vld [vmem:[%s5636_s1 + $0x1ec] ss:$24 sps:$4 sm:$0xff]  }
 0x74c   :  { %1953 = vmatprep.subr.bf16.mxu0 %v4920_v13  ;;  %v2974_v13 = vld [vmem:[%s5636_s1 + $0x1e8] ss:$24 sps:$4 sm:$0xff]  }
 0x74f   :  { %1954 = vmatpush1.bf16.msra.mxu0 %v4926_v17  ;;  %v2975_v17 = vld [vmem:[%s5636_s1 + $0x1bc] ss:$24 sps:$4 sm:$0xff]  }
 0x750   :  { %1955 = vmatprep.subr.bf16.mxu0 %v4932_v59  ;;  %v2976_v59 = vld [vmem:[%s5636_s1 + $0x1b8] ss:$24 sps:$4 sm:$0xff]  }
 0x753   :  { %1956 = vmatpush1.bf16.msra.mxu0 %v6127_v31  ;;  %v1711_v31 = vunpack.c.h.bf16 %v2379_v50 }
 0x754   :  { %1957 = vmatprep.subr.bf16.mxu0 %v6128_v0 }
 0x757   :  { %1958 = vmatpush2.bf16.msra.mxu0 %v6129_v43 }
 0x758   :  { %1959 = vmatprep.subr.bf16.mxu0 %v6130_v2 }
 0x75b   :  { %1960 = vmatpush2.bf16.msra.mxu0 %v6131_v3 }
 0x75c   :  { %1961 = vmatprep.subr.bf16.mxu0 %v6132_v4  ;;  %v2380_v4 = vld [vmem:[%s5637_s0 + $0x98] sm:$0xff] }
 0x75f   :  { %1962 = vmatpush2.bf16.msra.mxu0 %v6133_v5  ;;  %v1712_v5 = vunpack.c.l.bf16 %v2380_v4 }
 0x760   :  { %1963 = vmatprep.subr.bf16.mxu0 %v6134_v6  ;;  %v1713_v6 = vunpack.c.h.bf16 %v2380_v4 }
 0x763   :  { %1964 = vmatpush2.bf16.msra.mxu0 %v2970_v7 }
 0x764   :  { %1965 = vmatprep.subr.bf16.mxu0 %v2971_v8 }
 0x767   :  { %1966 = vmatpush2.bf16.msra.mxu0 %v2972_v9 }
 0x768   :  { %1967 = vmatprep.subr.bf16.mxu0 %v2973_v10 }
 0x76b   :  { %1968 = vmatpush2.bf16.msra.mxu0 %v2974_v13 }
 0x76c   :  { %1969 = vmatprep.subr.bf16.mxu0 %v2975_v17 }
 0x76f   :  { %1970 = vmatpush2.bf16.msra.mxu0 %v2976_v59 }
 0x770   :  { %1971 = vmatprep.subr.bf16.mxu0 %v2977_v47 }
 0x773   :  { %1972 = vmatpush2.bf16.msra.mxu0 %v2978_v24 }
 0x774   :  { %2394 = vmatprep.subr.mxu0 %v5306_v25 }
 0x7b6   :  { %v1752_v46 = vpop.f32.mrf.mxu0  ;;  %v1793_v1 = vpop.f32.mrf.mxu1 }
 0x7b7   :  { %v1841_v0 = vadd.f32 %v1752_v46, %v1710_v30  ;;  %v1855_v7 = vadd.f32 %v1793_v1, %v1712_v5 }
 0x7b8   :  { %v1754_v60 = vpop.f32.mrf.mxu0  ;;  %v1795_v51 = vpop.f32.mrf.mxu1 }
 0x7b9   :  { %v1842_v43 = vadd.f32 %v1754_v60, %v1711_v31  ;;  %v2382_v2 = vmul.f32 -1.442695, %v1841_v0  ;;  %v1856_v8 = vadd.f32 %v1795_v51, %v1713_v6  ;;  %v2384_v9 = vmul.f32 -1.442695, %v1855_v7  ;;  %v2381_v60 = vld [vmem:[%s5637_s0 + $0xa0] sm:$0xff] }
 0x7ba   :  { %v1756_v22 = vpop.f32.mrf.mxu0  ;;  %v1797_v27 = vpop.f32.mrf.mxu1  ;;  %v1714_v51 = vunpack.c.l.bf16 %v2381_v60  ;;  %v1715_v0 = vunpack.c.h.bf16 %v2381_v60 }
 0x7bb   :  { %v2383_v3 = vmul.f32 -1.442695, %v1842_v43  ;;  %2747 = vpow2.f32 %v2382_v2  ;;  %v2385_v10 = vmul.f32 -1.442695, %v1856_v8 }
 0x7bc   :  { %v1757_v58 = vpop.f32.mrf.mxu0  ;;  %v1798_v41 = vpop.f32.mrf.mxu1 }
 0x7bd   :  { %2749 = vpow2.f32 %v2383_v3  ;;  %v6135_v58 = vld [vmem:[#allocation58_spill] sm:$0xff] }
 0x7be   :  { %2751 = vpow2.f32 %v2384_v9 }
 0x7bf   :  { %2753 = vpow2.f32 %v2385_v10 }
 0x7c8   :  { %v2748_v13 = vpop.eup %2747 }
 0x7c9   :  { %v1849_v59 = vadd.f32 1.0, %v2748_v13 }
 0x7ca   :  { %v2750_v17 = vpop.eup %2749 }
 0x7cb   :  { %v1850_v47 = vadd.f32 1.0, %v2750_v17  ;;  %2755 = vrcp.f32 %v1849_v59  ;;  %v2752_v24 = vpop.eup %2751 }
 0x7cc   :  { %v2754_v46 = vpop.eup %2753  ;;  %v1863_v22 = vadd.f32 1.0, %v2752_v24 }
 0x7cd   :  { %2757 = vrcp.f32 %v1850_v47  ;;  %v1864_v1 = vadd.f32 1.0, %v2754_v46 }
 0x7ce   :  { %2759 = vrcp.f32 %v1863_v22 }
 0x7cf   :  { %2761 = vrcp.f32 %v1864_v1 }
 0x7d8   :  { %v2756_v50 = vpop.eup %2755 }
 0x7da   :  { %v2758_v2 = vpop.eup %2757 }
 0x7db   :  { %v2760_v8 = vpop.eup %2759 }
 0x7dc   :  { %v2762_v9 = vpop.eup %2761  ;;  %v1877_v10 = vsub.f32 1.0, %v2760_v8  ;;  %v1881_v24 = vmul.f32 %v2760_v8, %v5006_v21  ;;  %v5452_v8 = vld [vmem:[%s5639_s3 + $0x30] sm:$0xff] }
 0x7dd   :  { %v1878_v17 = vsub.f32 1.0, %v2762_v9  ;;  %v1882_v60 = vmul.f32 %v2762_v9, %v5008_v19  ;;  %v5466_v9 = vld [vmem:[%s5639_s3 + $0x28] sm:$0xff] }
 0x7f6   :  { %v1834_v27 = vpop.f32.mrf.mxu0 }
 0x7f7   :  { %v1869_v41 = vadd.f32 %v1834_v27, %v6135_v58 }
 0x7f8   :  { %v1836_v30 = vpop.f32.mrf.mxu0 }
 0x7f9   :  { %v1871_v31 = vmul.f32 %v2756_v50, %v1869_v41  ;;  %v1870_v43 = vadd.f32 %v1836_v30, %v3672_v29  ;;  %v5335_v41 = vld [vmem:[%s5639_s3 + $0x78] sm:$0xff]  ;;  %v5340_v50 = vld [vmem:[%s5639_s3 + $0xf0] sm:$0xff] }
 0x7fa   :  { %v1838_v3 = vpop.f32.mrf.mxu0  ;;  %v5347_v30 = vld [vmem:[%s5639_s3 + $0x70] sm:$0xff] }
 0x7fb   :  { %v1873_v4 = vadd.f32 %v1871_v31, %v1714_v51  ;;  %v1872_v5 = vmul.f32 %v2758_v2, %v1870_v43  ;;  %v5354_v31 = vld [vmem:[%s5639_s3 + $0xe8] sm:$0xff]  ;;  %v6136_v43 = vld [vmem:[#allocation60_spill] sm:$0xff]  ;;  %v5381_v3 = vld [vmem:[%s5639_s3 + $0xd8] sm:$0xff] }
 0x7fc   :  { %v1839_v6 = vpop.f32.mrf.mxu0  ;;  %v5374_v2 = vld [vmem:[%s5639_s3 + $0x60] sm:$0xff] }
 0x7fd   :  { %2763 = vtanh.f32 %v1873_v4  ;;  %v1874_v7 = vadd.f32 %v1872_v5, %v1715_v0  ;;  %v5360_v0 = vld [vmem:[%s5639_s3 + $0x68] sm:$0xff]  ;;  %v5400_v4 = vld [vmem:[%s5639_s3 + $0x50] sm:$0xff]  ;;  %v5426_v6 = vld [vmem:[%s5639_s3 + $0x40] sm:$0xff] }
 0x7fe   :  { %v5414_v5 = vld [vmem:[%s5639_s3 + $0x48] sm:$0xff] }
 0x7ff   :  { %2765 = vtanh.f32 %v1874_v7  ;;  %v5440_v7 = vld [vmem:[%s5639_s3 + $0x38] sm:$0xff] }
 0x80a   :  { %v2764_v13 = vpop.eup %2763 }
 0x80b   :  { %v1879_v59 = vmul.f32 %v2764_v13, %v1877_v10  ;;  %v5478_v10 = vld [vmem:[%s5639_s3 + $0x20] sm:$0xff]  ;;  %v5492_v13 = vld [vmem:[%s5639_s3 + $0x18] sm:$0xff] }
 0x80c   :  { %v2766_v47 = vpop.eup %2765 }
 0x80d   :  { %v1880_v46 = vmul.f32 %v2766_v47, %v1878_v17  ;;  %v5322_v22 = vadd.f32 %v1881_v24, %v1879_v59  ;;  %v5504_v17 = vld [vmem:[%s5639_s3 + $0x10] sm:$0xff]  ;;  %v2089_v59 = vld [vmem:[%s5639_s3 + $0x8] sm:$0xff]  ;;  %v2088_v47 = vld [vmem:[%s5639_s3] sm:$0xff] }
 0x80e   :  { %v6138_v24 = vld [vmem:[#allocation29_spill] sm:$0xff] }
 0x80f   :  { %v5324_v27 = vadd.f32 %v1882_v60, %v1880_v46  ;;  %v5330_v51 = vpack.c.bf16 %v5322_v22, %v5322_v22  ;;  %v6139_v46 = vld [vmem:[#allocation27_spill] sm:$0xff]  ;;  %v6140_v60 = vld [vmem:[#allocation9_spill] sm:$0xff] }
 0x811   :  { %v1899_v1 = vpack.c.bf16 %v5324_v27, %v5324_v27 }
 0x813   :  { %1932 = vmatprep.mubr.bf16.mxu1 %v1899_v1  ;;  %1973 = vmatprep.mubr.bf16.mxu0 %v1899_v1 }
 0x814   :  { %1933 = vmatmul.mubr.bf16.vlgmr.msra.gmra.mxu1 %v5330_v51  ;;  %1974 = vmatmul.mubr.bf16.vlgmr.msra.gmra.mxu0 %v5330_v51 }
 0x815   :  { %1983 = vmatpush1.bf16.msra.mxu1 %v5021_v16  ;;  %2395 = vmatpush3.msra.mxu0 %v5335_v41  ;;  %v5367_v16 = vld [vmem:[%s5639_s3 + $0xe0] sm:$0xff] }
 0x816   :  { %2014 = vmatprep.mubr.bf16.mxu1 %v1899_v1  ;;  %2396 = vmatprep.subr.mxu0 %v5340_v50 }
 0x817   :  { %2191 = vmatprep.mubr.f32.mxu0 %v6136_v43  ;;  %2397 = vmatpush3.msra.mxu0 %v5347_v30 }
 0x818   :  { %1984 = vmatprep.subr.bf16.mxu1 %v5027_v52  ;;  %2398 = vmatprep.subr.mxu0 %v5354_v31  ;;  %v5388_v52 = vld [vmem:[%s5639_s3 + $0x58] sm:$0xff] }
 0x819   :  { %1985 = vmatpush1.bf16.msra.mxu1 %v5035_v28  ;;  %2399 = vmatpush3.msra.mxu0 %v5360_v0  ;;  %v5394_v28 = vld [vmem:[%s5639_s3 + $0xd0] sm:$0xff] }
 0x81a   :  { %2400 = vmatprep.subr.mxu0 %v5367_v16  ;;  %1986 = vmatprep.subr.bf16.mxu1 %v5041_v48  ;;  %v5407_v48 = vld [vmem:[%s5639_s3 + $0xc8] sm:$0xff] }
 0x81b   :  { %2401 = vmatpush3.msra.mxu0 %v5374_v2 }
 0x81c   :  { %2402 = vmatprep.subr.mxu0 %v5381_v3 }
 0x81d   :  { %1987 = vmatpush1.bf16.msra.mxu1 %v5049_v36  ;;  %2403 = vmatpush3.msra.mxu0 %v5388_v52  ;;  %v5420_v36 = vld [vmem:[%s5639_s3 + $0xc0] sm:$0xff] }
 0x81e   :  { %2404 = vmatprep.subr.mxu0 %v5394_v28  ;;  %1988 = vmatprep.subr.bf16.mxu1 %v5055_v63  ;;  %v5433_v63 = vld [vmem:[%s5639_s3 + $0xb8] sm:$0xff] }
 0x81f   :  { %2405 = vmatpush3.msra.mxu0 %v5400_v4 }
 0x820   :  { %2406 = vmatprep.subr.mxu0 %v5407_v48 }
 0x821   :  { %1989 = vmatpush1.bf16.msra.mxu1 %v5063_v32  ;;  %2407 = vmatpush3.msra.mxu0 %v5414_v5  ;;  %v5446_v32 = vld [vmem:[%s5639_s3 + $0xb0] sm:$0xff] }
 0x822   :  { %2408 = vmatprep.subr.mxu0 %v5420_v36  ;;  %1990 = vmatprep.subr.bf16.mxu1 %v5069_v34  ;;  %v5459_v34 = vld [vmem:[%s5639_s3 + $0xa8] sm:$0xff] }
 0x823   :  { %2409 = vmatpush3.msra.mxu0 %v5426_v6 }
 0x824   :  { %2410 = vmatprep.subr.mxu0 %v5433_v63 }
 0x825   :  { %1991 = vmatpush1.bf16.msra.mxu1 %v5077_v57  ;;  %2411 = vmatpush3.msra.mxu0 %v5440_v7  ;;  %v5472_v57 = vld [vmem:[%s5639_s3 + $0xa0] sm:$0xff] }
 0x826   :  { %2412 = vmatprep.subr.mxu0 %v5446_v32  ;;  %1992 = vmatprep.subr.bf16.mxu1 %v5083_v23  ;;  %v5485_v23 = vld [vmem:[%s5639_s3 + $0x98] sm:$0xff] }
 0x827   :  { %2413 = vmatpush3.msra.mxu0 %v5452_v8 }
 0x828   :  { %2414 = vmatprep.subr.mxu0 %v5459_v34 }
 0x829   :  { %1993 = vmatpush1.bf16.msra.mxu1 %v5091_v15  ;;  %2415 = vmatpush3.msra.mxu0 %v5466_v9  ;;  %v5498_v15 = vld [vmem:[%s5639_s3 + $0x90] sm:$0xff] }
 0x82a   :  { %2416 = vmatprep.subr.mxu0 %v5472_v57  ;;  %1994 = vmatprep.subr.bf16.mxu1 %v5097_v39  ;;  %v5511_v39 = vld [vmem:[%s5639_s3 + $0x88] sm:$0xff] }
 0x82b   :  { %2417 = vmatpush3.msra.mxu0 %v5478_v10 }
 0x82c   :  { %2418 = vmatprep.subr.mxu0 %v5485_v23 }
 0x82d   :  { %1995 = vmatpush1.bf16.msra.mxu1 %v5105_v53  ;;  %2419 = vmatpush3.msra.mxu0 %v5492_v13  ;;  %v2104_v53 = vld [vmem:[%s5639_s3 + $0x80] sm:$0xff] }
 0x82e   :  { %2420 = vmatprep.subr.mxu0 %v5498_v15  ;;  %1996 = vmatprep.subr.bf16.mxu1 %v5111_v61  ;;  %v6137_v61 = vld [vmem:[#allocation59_spill] sm:$0xff] }
 0x82f   :  { %2421 = vmatpush3.msra.mxu0 %v5504_v17 }
 0x830   :  { %2422 = vmatprep.subr.mxu0 %v5511_v39 }
 0x831   :  { %1997 = vmatpush1.bf16.msra.mxu1 %v5119_v42  ;;  %2423 = vmatpush3.msra.mxu0 %v2089_v59  ;;  %v6141_v42 = vld [vmem:[#allocation8_spill] sm:$0xff] }
 0x832   :  { %2424 = vmatprep.subr.mxu0 %v2104_v53  ;;  %1998 = vmatprep.subr.bf16.mxu1 %v5125_v14  ;;  %v6142_v14 = vld [vmem:[#allocation68_spill] sm:$0xff] }
 0x833   :  { %2425 = vmatpush3.msra.mxu0 %v2088_v47 }
 0x834   :  { %2192 = vmatmul.mubr.f32.vlgmr.msra.gmra.mxu0 %v6137_v61 }
 0x835   :  { %1999 = vmatpush2.bf16.msra.mxu1 %v5133_v12  ;;  %2196 = vmatprep.mubr.f32.mxu0 %v6138_v24  ;;  %v6143_v12 = vld [vmem:[#allocation25_spill] sm:$0xff] }
 0x836   :  { %2000 = vmatprep.subr.bf16.mxu1 %v5139_v33 }
 0x838   :  { %2197 = vmatmul.mubr.f32.gmra.mxu0 %v6139_v46 }
 0x839   :  { %2001 = vmatpush2.bf16.msra.mxu1 %v5147_v49  ;;  %2201 = vmatprep.mubr.f32.mxu0 %v6140_v60 }
 0x83a   :  { %2002 = vmatprep.subr.bf16.mxu1 %v5153_v37 }
 0x83c   :  { %2202 = vmatmul.mubr.f32.gmra.mxu0 %v6141_v42 }
 0x83d   :  { %2003 = vmatpush2.bf16.msra.mxu1 %v5161_v45  ;;  %2206 = vmatprep.mubr.f32.mxu0 %v6142_v14 }
 0x83e   :  { %2004 = vmatprep.subr.bf16.mxu1 %v5167_v55 }
 0x840   :  { %2207 = vmatmul.mubr.f32.gmra.mxu0 %v6143_v12 }
 0x841   :  { %2005 = vmatpush2.bf16.msra.mxu1 %v5175_v40 }
 0x842   :  { %2006 = vmatprep.subr.bf16.mxu1 %v5181_v11 }
 0x845   :  { %2007 = vmatpush2.bf16.msra.mxu1 %v5189_v35 }
 0x846   :  { %2008 = vmatprep.subr.bf16.mxu1 %v5195_v38 }
 0x849   :  { %2009 = vmatpush2.bf16.msra.mxu1 %v5207_v20 }
 0x84a   :  { %2010 = vmatprep.subr.bf16.mxu1 %v5213_v54 }
 0x84d   :  { %2011 = vmatpush2.bf16.msra.mxu1 %v5225_v18 }
 0x84e   :  { %2012 = vmatprep.subr.bf16.mxu1 %v5231_v62  ;;  %v2387_v62 = vld [vmem:[%s5637_s0 + $0xb0] sm:$0xff] }
 0x851   :  { %2013 = vmatpush2.bf16.msra.mxu1 %v5243_v44  ;;  %v5595_v44 = vld [vmem:[%s5640_s4] ss:$0 sm:$0xff] }
 0x852   :  { %2450 = vmatprep.subr.mxu1 %v5306_v25 }
 0x854   :  { %2015 = vmatmul.mubr.bf16.vlgmr.msra.gmra.mxu1 %v5330_v51  ;;  %v1894_v51 = vunpack.c.l.bf16 %v2387_v62 }
 0x855   :  { %2466 = vmatpush3.msra.mxu1 %v5335_v41  ;;  %2211 = vmatprep.mubr.f32.mxu1 %v4651_v56 }
 0x856   :  { %2451 = vmatprep.subr.mxu1 %v5340_v50  ;;  %v1895_v50 = vunpack.c.h.bf16 %v2387_v62 }
 0x857   :  { %2467 = vmatpush3.msra.mxu1 %v5347_v30 }
 0x858   :  { %2452 = vmatprep.subr.mxu1 %v5354_v31 }
 0x859   :  { %2468 = vmatpush3.msra.mxu1 %v5360_v0 }
 0x85a   :  { %2453 = vmatprep.subr.mxu1 %v5367_v16 }
 0x85b   :  { %2469 = vmatpush3.msra.mxu1 %v5374_v2 }
 0x85c   :  { %2454 = vmatprep.subr.mxu1 %v5381_v3 }
 0x85d   :  { %2470 = vmatpush3.msra.mxu1 %v5388_v52 }
 0x85e   :  { %2455 = vmatprep.subr.mxu1 %v5394_v28 }
 0x85f   :  { %2471 = vmatpush3.msra.mxu1 %v5400_v4 }
 0x860   :  { %2456 = vmatprep.subr.mxu1 %v5407_v48 }
 0x861   :  { %2472 = vmatpush3.msra.mxu1 %v5414_v5 }
 0x862   :  { %2457 = vmatprep.subr.mxu1 %v5420_v36 }
 0x863   :  { %2473 = vmatpush3.msra.mxu1 %v5426_v6 }
 0x864   :  { %2458 = vmatprep.subr.mxu1 %v5433_v63 }
 0x865   :  { %2474 = vmatpush3.msra.mxu1 %v5440_v7 }
 0x866   :  { %2459 = vmatprep.subr.mxu1 %v5446_v32 }
 0x867   :  { %2475 = vmatpush3.msra.mxu1 %v5452_v8 }
 0x868   :  { %2460 = vmatprep.subr.mxu1 %v5459_v34 }
 0x869   :  { %2476 = vmatpush3.msra.mxu1 %v5466_v9 }
 0x86a   :  { %2461 = vmatprep.subr.mxu1 %v5472_v57 }
 0x86b   :  { %2477 = vmatpush3.msra.mxu1 %v5478_v10 }
 0x86c   :  { %2462 = vmatprep.subr.mxu1 %v5485_v23  ;;  %v2388_v23 = vld [vmem:[%s5637_s0 + $0xb8] sm:$0xff] }
 0x86d   :  { %2478 = vmatpush3.msra.mxu1 %v5492_v13  ;;  %v1897_v24 = vunpack.c.h.bf16 %v2388_v23 }
 0x86e   :  { %2463 = vmatprep.subr.mxu1 %v5498_v15 }
 0x86f   :  { %2479 = vmatpush3.msra.mxu1 %v5504_v17 }
 0x870   :  { %2464 = vmatprep.subr.mxu1 %v5511_v39  ;;  %v1896_v39 = vunpack.c.l.bf16 %v2388_v23 }
 0x871   :  { %2480 = vmatpush3.msra.mxu1 %v2089_v59 }
 0x872   :  { %2465 = vmatprep.subr.mxu1 %v2104_v53 }
 0x873   :  { %2481 = vmatpush3.msra.mxu1 %v2088_v47 }
 0x874   :  { %2212 = vmatmul.mubr.f32.vlgmr.msra.gmra.mxu1 %v4649_v26  ;;  %v2386_v26 = vld [vmem:[%s5637_s0 + $0xa8] sm:$0xff] }
 0x875   :  { %2216 = vmatprep.mubr.f32.mxu1 %v5008_v19  ;;  %v1892_v35 = vunpack.c.l.bf16 %v2386_v26  ;;  %v1893_v19 = vunpack.c.h.bf16 %v2386_v26 }
 0x878   :  { %2217 = vmatmul.mubr.f32.gmra.mxu1 %v5006_v21 }
 0x879   :  { %2221 = vmatprep.mubr.f32.mxu1 %v5324_v27 }
 0x87c   :  { %2222 = vmatmul.mubr.f32.gmra.mxu1 %v5322_v22 }
 0x8d4   :  { %v1934_v56 = vpop.f32.mrf.mxu1  ;;  %v1975_v33 = vpop.f32.mrf.mxu0 }
 0x8d5   :  { %v2023_v38 = vadd.f32 %v1934_v56, %v1892_v35  ;;  %v2037_v43 = vadd.f32 %v1975_v33, %v1894_v51 }
 0x8d6   :  { %v1936_v49 = vpop.f32.mrf.mxu1  ;;  %v1977_v37 = vpop.f32.mrf.mxu0 }
 0x8d7   :  { %v2024_v21 = vadd.f32 %v1936_v49, %v1893_v19  ;;  %v2389_v20 = vmul.f32 -1.442695, %v2023_v38  ;;  %v2038_v2 = vadd.f32 %v1977_v37, %v1895_v50  ;;  %v2391_v4 = vmul.f32 -1.442695, %v2037_v43 }
 0x8d8   :  { %v1938_v45 = vpop.f32.mrf.mxu1  ;;  %v1979_v55 = vpop.f32.mrf.mxu0 }
 0x8d9   :  { %v2390_v54 = vmul.f32 -1.442695, %v2024_v21  ;;  %2767 = vpow2.f32 %v2389_v20  ;;  %v2392_v5 = vmul.f32 -1.442695, %v2038_v2 }
 0x8da   :  { %v1939_v40 = vpop.f32.mrf.mxu1  ;;  %v1980_v11 = vpop.f32.mrf.mxu0 }
 0x8db   :  { %2769 = vpow2.f32 %v2390_v54 }
 0x8dc   :  { %2771 = vpow2.f32 %v2391_v4 }
 0x8dd   :  { %2773 = vpow2.f32 %v2392_v5 }
 0x8e6   :  { %v2768_v6 = vpop.eup %2767 }
 0x8e7   :  { %v2031_v8 = vadd.f32 1.0, %v2768_v6 }
 0x8e8   :  { %v2770_v32 = vpop.eup %2769 }
 0x8e9   :  { %v2032_v9 = vadd.f32 1.0, %v2770_v32  ;;  %2775 = vrcp.f32 %v2031_v8  ;;  %v2772_v57 = vpop.eup %2771 }
 0x8ea   :  { %v2774_v10 = vpop.eup %2773  ;;  %v2045_v13 = vadd.f32 1.0, %v2772_v57 }
 0x8eb   :  { %2777 = vrcp.f32 %v2032_v9  ;;  %v2046_v17 = vadd.f32 1.0, %v2774_v10 }
 0x8ec   :  { %2779 = vrcp.f32 %v2045_v13 }
 0x8ed   :  { %2781 = vrcp.f32 %v2046_v17 }
 0x8f4   :  { %v2426_v18 = vpop.f32.mrf.mxu0 }
 0x8f6   :  { %v2427_v25 = vpop.f32.mrf.mxu0  ;;  %v2776_v53 = vpop.eup %2775 }
 0x8f7   :  { %v2428_v1 = vadd.f32 %v2427_v25, %v2426_v18 }
 0x8f8   :  { %v2429_v41 = vpop.f32.mrf.mxu0  ;;  %v2778_v60 = vpop.eup %2777 }
 0x8f9   :  { %v2194_v30 = vadd.f32 %v2428_v1, %v5595_v44  ;;  %v2780_v49 = vpop.eup %2779 }
 0x8fa   :  { %v2430_v31 = vpop.f32.mrf.mxu0  ;;  %v2782_v37 = vpop.eup %2781  ;;  %v2063_v35 = vmul.f32 %v2780_v49, %v5322_v22 }
 0x8fb   :  { %2232 = vst [vmem:[%s5641_s5] sm:$0xff] %v2194_v30  ;;  %v2431_v0 = vadd.f32 %v2430_v31, %v2429_v41  ;;  %v2060_v55 = vsub.f32 1.0, %v2782_v37 }
 0x8fc   :  { %v2432_v16 = vpop.f32.mrf.mxu0 }
 0x8fd   :  { %v2199_v3 = vadd.f32 %v2431_v0, %v5595_v44 }
 0x8fe   :  { %v2433_v52 = vpop.f32.mrf.mxu0 }
 0x8ff   :  { %2233 = vst [vmem:[%s5641_s5 + $0x8] sm:$0xff] %v2199_v3  ;;  %v2434_v28 = vadd.f32 %v2433_v52, %v2432_v16 }
 0x900   :  { %v2435_v48 = vpop.f32.mrf.mxu0 }
 0x901   :  { %v2204_v36 = vadd.f32 %v2434_v28, %v5595_v44 }
 0x902   :  { %v2436_v63 = vpop.f32.mrf.mxu0 }
 0x903   :  { %2234 = vst [vmem:[%s5641_s5 + $0x10] sm:$0xff] %v2204_v36  ;;  %v2437_v7 = vadd.f32 %v2436_v63, %v2435_v48 }
 0x905   :  { %v2209_v34 = vadd.f32 %v2437_v7, %v5595_v44 }
 0x907   :  { %2235 = vst [vmem:[%s5641_s5 + $0x18] sm:$0xff] %v2209_v34 }
 0x914   :  { %v2016_v15 = vpop.f32.mrf.mxu1 }
 0x915   :  { %v2051_v59 = vadd.f32 %v2016_v15, %v6135_v58  ;;  %v2059_v58 = vsub.f32 1.0, %v2780_v49 }
 0x916   :  { %v2018_v47 = vpop.f32.mrf.mxu1 }
 0x917   :  { %v2053_v61 = vmul.f32 %v2776_v53, %v2051_v59  ;;  %v2052_v46 = vadd.f32 %v2018_v47, %v3672_v29  ;;  %v2064_v29 = vmul.f32 %v2782_v37, %v5324_v27 }
 0x918   :  { %v2020_v42 = vpop.f32.mrf.mxu1 }
 0x919   :  { %v2055_v14 = vadd.f32 %v2053_v61, %v1896_v39  ;;  %v2054_v12 = vmul.f32 %v2778_v60, %v2052_v46 }
 0x91a   :  { %v2021_v56 = vpop.f32.mrf.mxu1 }
 0x91b   :  { %2783 = vtanh.f32 %v2055_v14  ;;  %v2056_v33 = vadd.f32 %v2054_v12, %v1897_v24 }
 0x91d   :  { %2785 = vtanh.f32 %v2056_v33 }
 0x928   :  { %v2784_v45 = vpop.eup %2783 }
 0x929   :  { %v2061_v11 = vmul.f32 %v2784_v45, %v2059_v58 }
 0x92a   :  { %v2786_v40 = vpop.eup %2785 }
 0x92b   :  { %v2062_v26 = vmul.f32 %v2786_v40, %v2060_v55  ;;  %v2065_v38 = vadd.f32 %v2063_v35, %v2061_v11 }
 0x92d   :  { %v2066_v19 = vadd.f32 %v2064_v29, %v2062_v26 }
 0x92f   :  { %2226 = vmatprep.mubr.f32.mxu1 %v2066_v19 }
 0x930   :  { %2227 = vmatmul.mubr.f32.gmra.mxu1 %v2065_v38 }
 0x934   :  { %v2438_v21 = vpop.f32.mrf.mxu1 }
 0x936   :  { %v2439_v20 = vpop.f32.mrf.mxu1 }
 0x937   :  { %v2440_v54 = vadd.f32 %v2439_v20, %v2438_v21 }
 0x938   :  { %v2441_v18 = vpop.f32.mrf.mxu1 }
 0x939   :  { %v2214_v62 = vadd.f32 %v2440_v54, %v5595_v44 }
 0x93a   :  { %v2442_v25 = vpop.f32.mrf.mxu1 }
 0x93b   :  { %2236 = vst [vmem:[%s5641_s5 + $0x20] sm:$0xff] %v2214_v62  ;;  %v2443_v1 = vadd.f32 %v2442_v25, %v2441_v18 }
 0x93c   :  { %v2444_v51 = vpop.f32.mrf.mxu1 }
 0x93d   :  { %v2219_v27 = vadd.f32 %v2443_v1, %v5595_v44 }
 0x93e   :  { %v2445_v22 = vpop.f32.mrf.mxu1 }
 0x93f   :  { %2237 = vst [vmem:[%s5641_s5 + $0x28] sm:$0xff] %v2219_v27  ;;  %v2446_v41 = vadd.f32 %v2445_v22, %v2444_v51 }
 0x941   :  { %v2224_v50 = vadd.f32 %v2446_v41, %v5595_v44 }
 0x943   :  { %2238 = vst [vmem:[%s5641_s5 + $0x30] sm:$0xff] %v2224_v50 }
 0x9f0   :  { %v2447_v30 = vpop.f32.mrf.mxu1 }
 0x9f2   :  { %v2448_v31 = vpop.f32.mrf.mxu1 }
 0x9f3   :  { %v2449_v0 = vadd.f32 %v2448_v31, %v2447_v30 }
 0x9f5   :  { %v2229_v43 = vadd.f32 %v2449_v0, %v5595_v44 }
 0x9f7   :  { %2239 = vst [vmem:[%s5641_s5 + $0x38] sm:$0xff] %v2229_v43 }

</bundles_post_ra>
